<compile_context>
chip_gen: v7x
topology: tpu7x:2x2x1
jax: 0.10.0
libtpu: 0.0.40
codegen_flags: <defaults>
</compile_context>

<pallas_src>
import math
from functools import partial

import jax
import jax.numpy as jnp
from jax.experimental import pallas as pl
from jax.experimental.pallas import tpu as pltpu

F32 = jnp.float32


# ------------------------------ kernel helpers ------------------------------

def _gelu(x):
    # TODO(synk): PyTorch nn.GELU() default is the exact erf-based GELU; the
    # tanh approximation is used because lax.erf is not guaranteed to lower
    # through Mosaic.
    c = math.sqrt(2.0 / math.pi)
    return 0.5 * x * (1.0 + jnp.tanh(c * (x + 0.044715 * x * x * x)))


def _layernorm(x, g, b):
    mu = jnp.mean(x, axis=-1, keepdims=True)
    var = jnp.mean((x - mu) ** 2, axis=-1, keepdims=True)
    return (x - mu) * jax.lax.rsqrt(var + 1e-5) * g + b


# ----------------------------- Pallas kernels -------------------------------

def _split_linear_kernel(x1_ref, x2_ref, w1_ref, w2_ref, b_ref, o_ref):
    # linear on concat(x1, x2) expressed as two matmuls (no in-kernel concat).
    o_ref[...] = (jnp.dot(x1_ref[...], w1_ref[...], preferred_element_type=F32)
                  + jnp.dot(x2_ref[...], w2_ref[...], preferred_element_type=F32)
                  + b_ref[...])


def _online_transition_kernel(
        state0_ref, obs0_ref, enc_ws_ref, enc_wo_ref, enc_b_ref,
        shifted_ref, obsseq_ref,
        act_wa_ref, act_wr_ref, act_wob_ref, act_b_ref,
        ln_g_ref, ln_b_ref,
        wq_ref, bq_ref, wk_ref, bk_ref, wv_ref, bv_ref, wo_ref, bo_ref,
        ln1_g_ref, ln1_b_ref, ln2_g_ref, ln2_b_ref,
        w1_ref, b1_ref, w2_ref, b2_ref,
        out_ref):
    # Whole online path fused: obs_encoder(t=0) + per-t [act_encoder ->
    # interleave -> LN -> n_layer EncodeBlocks] for all T-1 timesteps.
    Tm1, B, N, A1 = shifted_ref.shape
    L, H, D, hd = wq_ref.shape
    S = 2 * N
    scale = 1.0 / math.sqrt(hd)

    # TODO(synk): the real obs/act encoders are external modules handed to JPR;
    # stand-in deterministic linear encoders on the concatenated inputs.
    obs_rep = (jnp.dot(state0_ref[...], enc_ws_ref[...], preferred_element_type=F32)
               + jnp.dot(obs0_ref[...], enc_wo_ref[...], preferred_element_type=F32)
               + enc_b_ref[...])                                  # (B*N, D)

    for t in range(Tm1):                                          # static unroll
        shifted = shifted_ref[t].reshape(B * N, A1)
        obs_t = obsseq_ref[t].reshape(B * N, -1)
        act_rep = (jnp.dot(shifted, act_wa_ref[...], preferred_element_type=F32)
                   + jnp.dot(obs_rep, act_wr_ref[...], preferred_element_type=F32)
                   + jnp.dot(obs_t, act_wob_ref[...], preferred_element_type=F32)
                   + act_b_ref[...])                              # (B*N, D)

        # interleave: x[:, ::2] = obs_rep ; x[:, 1::2] = act_rep
        x = jnp.stack([obs_rep.reshape(B, N, D), act_rep.reshape(B, N, D)],
                      axis=2).reshape(B, S, D)
        x = _layernorm(x, ln_g_ref[...], ln_b_ref[...])

        # TODO(synk): EncodeBlock source is not in the prompt; implemented as
        # the standard MAT post-LN block: x = ln1(x + MHSA(x)); x = ln2(x + MLP(x)).
        for l in range(L):
            x2 = x.reshape(B * S, D)
            # MHSA — per-head weights were pre-split outside the kernel, so no
            # lane-axis slices or concatenates on activations are needed; the
            # output projection is accumulated head by head.
            attn = jnp.zeros((B * S, D), F32) + bo_ref[l]
            for h in range(H):
                q = (jnp.dot(x2, wq_ref[l, h], preferred_element_type=F32)
                     + bq_ref[l, h]) * scale                      # scale folded into q
                k = jnp.dot(x2, wk_ref[l, h], preferred_element_type=F32) + bk_ref[l, h]
                v = jnp.dot(x2, wv_ref[l, h], preferred_element_type=F32) + bv_ref[l, h]
                q = q.reshape(B, S, hd)
                k = k.reshape(B, S, hd)
                v = v.reshape(B, S, hd)
                s = jnp.einsum('bqd,bkd->bqk', q, k, preferred_element_type=F32)
                s = s - jnp.max(s, axis=-1, keepdims=True)
                p = jnp.exp(s)
                p = p * pl.reciprocal(jnp.sum(p, axis=-1, keepdims=True), approx=True)
                o_h = jnp.einsum('bqk,bkd->bqd', p, v, preferred_element_type=F32)
                attn = attn + jnp.dot(o_h.reshape(B * S, hd), wo_ref[l, h],
                                      preferred_element_type=F32)
            x = _layernorm(x + attn.reshape(B, S, D), ln1_g_ref[l], ln1_b_ref[l])
            # MLPHead (use_bn=False, use_gelu=True): fc1 -> GELU -> fc2
            x2 = x.reshape(B * S, D)
            hmid = _gelu(jnp.dot(x2, w1_ref[l], preferred_element_type=F32) + b1_ref[l])
            m = jnp.dot(hmid, w2_ref[l], preferred_element_type=F32) + b2_ref[l]
            x = _layernorm(x + m.reshape(B, S, D), ln2_g_ref[l], ln2_b_ref[l])

        next_rep = x.reshape(B, N, 2, D)[:, :, 0, :]              # even tokens
        out_ref[t] = next_rep
        obs_rep = next_rep.reshape(B * N, D)


def _byol_tail_kernel(rep_ref, trep_ref,
                      pw1_ref, pb1_ref, pw2_ref, pb2_ref,
                      qw1_ref, qb1_ref, qw2_ref, qb2_ref,
                      tw1_ref, tb1_ref, tw2_ref, tb2_ref,
                      o_ref):
    # projector -> predictor -> target_projector -> normalized MSE, fused.
    # TODO(synk): target-projector no_grad isolation is irrelevant here (the
    # script only runs the forward pass); wrap in stop_gradient if grads are added.
    def mlp(x, w1, b1, w2, b2):
        h = _gelu(jnp.dot(x, w1, preferred_element_type=F32) + b1)
        return jnp.dot(h, w2, preferred_element_type=F32) + b2

    proj = mlp(rep_ref[...], pw1_ref[...], pb1_ref[...], pw2_ref[...], pb2_ref[...])
    pred = mlp(proj, qw1_ref[...], qb1_ref[...], qw2_ref[...], qb2_ref[...])
    tproj = mlp(trep_ref[...], tw1_ref[...], tb1_ref[...], tw2_ref[...], tb2_ref[...])

    # F.normalize(p=2, eps=1e-3) on both operands, squared diff summed over D.
    pn = pred / jnp.maximum(
        jnp.sqrt(jnp.sum(pred * pred, axis=-1, keepdims=True)), 0.001)
    tn = tproj / jnp.maximum(
        jnp.sqrt(jnp.sum(tproj * tproj, axis=-1, keepdims=True)), 0.001)
    d = pn - tn
    rows = jnp.sum(d * d, axis=-1, keepdims=True)          # (rows, 1)
    loss = jnp.mean(rows, axis=0, keepdims=True)            # (1, 1)
    # lane-dense output slab; scalar read back as out[0, 0]
    o_ref[...] = jnp.zeros(o_ref.shape, F32) + loss


# --------------------------- pallas_call wrappers ---------------------------

def _vspec():
    return pl.BlockSpec(memory_space=pltpu.MemorySpace.VMEM)


def pallas_obs_encoder(states2d, obs2d, ws, wo, b):
    return pl.pallas_call(
        _split_linear_kernel,
        out_shape=jax.ShapeDtypeStruct((states2d.shape[0], ws.shape[1]), F32),
        in_specs=[_vspec()] * 5,
        out_specs=_vspec(),
    )(states2d, obs2d, ws, wo, b)


def _pack_transition_params(params, n_head):
    layers = params['transition']
    D = params['ln_g'].shape[-1]
    hd = D // n_head

    def split_cols(w):      # (D, D) -> (H, D, hd): per-head output columns
        return jnp.transpose(w.reshape(D, n_head, hd), (1, 0, 2))

    def split_bias(b):      # (1, D) -> (H, 1, hd)
        return jnp.transpose(b.reshape(1, n_head, hd), (1, 0, 2))

    def split_rows(w):      # (D, D) -> (H, hd, D): per-head input rows (out-proj)
        return w.reshape(n_head, hd, D)

    stk = lambda f, key: jnp.stack([f(l[key[0]][key[1]] if len(key) > 1 else l[key[0]])
                                    for l in layers])
    return {
        'wq': stk(split_cols, ('attn', 'wq')), 'bq': stk(split_bias, ('attn', 'bq')),
        'wk': stk(split_cols, ('attn', 'wk')), 'bk': stk(split_bias, ('attn', 'bk')),
        'wv': stk(split_cols, ('attn', 'wv')), 'bv': stk(split_bias, ('attn', 'bv')),
        'wo': stk(split_rows, ('attn', 'wo')),
        'bo': jnp.stack([l['attn']['bo'] for l in layers]),
        'ln1_g': jnp.stack([l['ln1_g'] for l in layers]),
        'ln1_b': jnp.stack([l['ln1_b'] for l in layers]),
        'ln2_g': jnp.stack([l['ln2_g'] for l in layers]),
        'ln2_b': jnp.stack([l['ln2_b'] for l in layers]),
        'w1': jnp.stack([l['mlp_fc1']['w'] for l in layers]),
        'b1': jnp.stack([l['mlp_fc1']['b'] for l in layers]),
        'w2': jnp.stack([l['mlp_fc2']['w'] for l in layers]),
        'b2': jnp.stack([l['mlp_fc2']['b'] for l in layers]),
    }


def pallas_online_transition(params, state0, obs0, shifted_all, obs_all,
                             action_dim, n_head):
    B, N, state_dim = state0.shape
    obs_dim = obs0.shape[-1]
    D = params['ln_g'].shape[-1]
    Tm1 = shifted_all.shape[0]
    a1 = action_dim + 1

    packed = _pack_transition_params(params, n_head)
    enc_w = params['obs_encoder']['w']
    act_w = params['act_encoder']['w']

    args = (
        state0.reshape(B * N, state_dim), obs0.reshape(B * N, obs_dim),
        enc_w[:state_dim], enc_w[state_dim:], params['obs_encoder']['b'],
        shifted_all, obs_all,
        act_w[:a1], act_w[a1:a1 + D], act_w[a1 + D:], params['act_encoder']['b'],
        params['ln_g'], params['ln_b'],
        packed['wq'], packed['bq'], packed['wk'], packed['bk'],
        packed['wv'], packed['bv'], packed['wo'], packed['bo'],
        packed['ln1_g'], packed['ln1_b'], packed['ln2_g'], packed['ln2_b'],
        packed['w1'], packed['b1'], packed['w2'], packed['b2'],
    )
    return pl.pallas_call(
        _online_transition_kernel,
        out_shape=jax.ShapeDtypeStruct((Tm1, B, N, D), F32),
        in_specs=[_vspec()] * len(args),
        out_specs=_vspec(),
    )(*args)


def pallas_byol_tail(params, rep2d, trep2d):
    args = (
        rep2d, trep2d,
        params['projector']['fc1']['w'], params['projector']['fc1']['b'],
        params['projector']['fc2']['w'], params['projector']['fc2']['b'],
        params['predictor']['fc1']['w'], params['predictor']['fc1']['b'],
        params['predictor']['fc2']['w'], params['predictor']['fc2']['b'],
        params['target_projector']['fc1']['w'], params['target_projector']['fc1']['b'],
        params['target_projector']['fc2']['w'], params['target_projector']['fc2']['b'],
    )
    out = pl.pallas_call(
        _byol_tail_kernel,
        out_shape=jax.ShapeDtypeStruct((1, 128), F32),
        in_specs=[_vspec()] * len(args),
        out_specs=_vspec(),
    )(*args)
    return out[0, 0]


# ------------------------------ model pieces --------------------------------

def jpr_forward(params, state_seq, obs_seq, action_seq, action_dim, n_head):
    B, T, N = state_seq.shape[:3]
    state_dim = state_seq.shape[-1]

    # Discrete action -> shifted one-hot action for all t = 0..T-2 (cheap glue).
    a = action_seq[:, :T - 1, :, 0].astype(jnp.int32)             # (B, T-1, N)
    one_hot = jax.nn.one_hot(a, action_dim, dtype=F32)            # (B, T-1, N, A)
    shifted = jnp.zeros((B, T - 1, N, action_dim + 1), F32)
    shifted = shifted.at[:, :, 0, 0].set(1.0)
    shifted = shifted.at[:, :, 1:, 1:].set(one_hot[:, :, :-1, :])
    shifted_all = jnp.transpose(shifted, (1, 0, 2, 3))            # (T-1, B, N, A+1)
    obs_all = jnp.transpose(obs_seq[:, :T - 1], (1, 0, 2, 3))     # (T-1, B, N, obs)

    # Online path: single fused kernel for all T-1 timesteps.
    online_next = pallas_online_transition(params, state_seq[:, 0], obs_seq[:, 0],
                                           shifted_all, obs_all, action_dim, n_head)
    online_next = jnp.transpose(online_next, (1, 0, 2, 3))        # (B, T-1, N, D)

    # Target path (jpr_ssl_tech == 'byol'): EMA encoder, no grad, batched over t.
    tw = params['target_obs_encoder']['w']
    tgt_states = state_seq[:, 1:].reshape(B * (T - 1) * N, state_dim)
    tgt_obs = obs_seq[:, 1:].reshape(B * (T - 1) * N, -1)
    target = pallas_obs_encoder(tgt_states, tgt_obs, tw[:state_dim], tw[state_dim:],
                                params['target_obs_encoder']['b'])
    target_next = jax.lax.stop_gradient(target.reshape(B, T - 1, N, -1))
    return online_next, target_next


def byol_loss(params, rep, target_rep):
    B, T, N, D = rep.shape
    rows = B * T * N
    # sum(-1).mean(2).mean(1).mean(0) == mean over all row-sums
    return pallas_byol_tail(params, rep.reshape(rows, D),
                            jax.lax.stop_gradient(target_rep).reshape(rows, D))


def jpr_get_loss(params, state, obs, action, action_dim, n_head):
    rep, target_rep = jpr_forward(params, state, obs, action, action_dim, n_head)
    return byol_loss(params, rep, target_rep)


# ---------------------------------- main -------------------------------------

def _linear_params(key, fan_in, fan_out):
    kw, kb = jax.random.split(key)
    bound = 1.0 / math.sqrt(fan_in)
    return {'w': jax.random.uniform(kw, (fan_in, fan_out), F32, -bound, bound),
            'b': jax.random.uniform(kb, (1, fan_out), F32, -bound, bound)}


if __name__ == "__main__":
    # Small config consistent with the module.
    B, T, N = 2, 3, 2                      # jpr_bsz, seq len, num_agents
    n_embd, n_head, n_layer = 32, 2, 2     # hidden_size, jpr_mawm_n_head/layer
    state_dim, obs_dim, action_dim = 12, 10, 4
    latent_dim, proj_dim = 64, 32          # jpr_latent_dim, jpr_projection_dim (== n_embd)

    keys = iter(jax.random.split(jax.random.PRNGKey(0), 64))

    def lin(fan_in, fan_out):
        return _linear_params(next(keys), fan_in, fan_out)

    def mlp_params(din, hidden, dout):
        return {'fc1': lin(din, hidden), 'fc2': lin(hidden, dout)}

    def attn_params():
        q, k, v, o = (lin(n_embd, n_embd) for _ in range(4))
        return {'wq': q['w'], 'bq': q['b'], 'wk': k['w'], 'bk': k['b'],
                'wv': v['w'], 'bv': v['b'], 'wo': o['w'], 'bo': o['b']}

    obs_enc = lin(state_dim + obs_dim, n_embd)
    params = {
        'obs_encoder': obs_enc,
        'target_obs_encoder': dict(obs_enc),      # deepcopy semantics (same init)
        'act_encoder': lin((action_dim + 1) + n_embd + obs_dim, n_embd),
        'ln_g': jnp.ones((1, n_embd), F32),       # nn.LayerNorm default init
        'ln_b': jnp.zeros((1, n_embd), F32),
        'transition': [],
        'projector': mlp_params(n_embd, latent_dim, proj_dim),
        'target_projector': mlp_params(n_embd, latent_dim, proj_dim),
        'predictor': mlp_params(proj_dim, latent_dim, proj_dim),
    }
    for _ in range(n_layer):
        params['transition'].append({
            'attn': attn_params(),
            'ln1_g': jnp.ones((1, n_embd), F32), 'ln1_b': jnp.zeros((1, n_embd), F32),
            'ln2_g': jnp.ones((1, n_embd), F32), 'ln2_b': jnp.zeros((1, n_embd), F32),
            'mlp_fc1': lin(n_embd, n_embd), 'mlp_fc2': lin(n_embd, n_embd),
        })

    ki1, ki2, ki3 = jax.random.split(next(keys), 3)
    state_seq = jax.random.normal(ki1, (B, T, N, state_dim), F32)
    obs_seq = jax.random.normal(ki2, (B, T, N, obs_dim), F32)
    action_seq = jax.random.randint(ki3, (B, T, N, 1), 0, action_dim)

    fwd = jax.jit(partial(jpr_forward, action_dim=action_dim, n_head=n_head))
    loss_fn = jax.jit(partial(jpr_get_loss, action_dim=action_dim, n_head=n_head))

    rep, target_rep = fwd(params, state_seq, obs_seq, action_seq)
    loss = loss_fn(params, state_seq, obs_seq, action_seq)
    jax.block_until_ready((rep, target_rep, loss))
    assert rep.shape == (B, T - 1, N, n_embd) and target_rep.shape == rep.shape
    assert loss.shape == ()
    print("KERNEL_OK")
</pallas_src>

<mosaic_0001>
module attributes {stable_mosaic.version = 11 : i64} {
  func.func @_split_linear_kernel(%arg0: memref<8x12xf32, #tpu.memory_space<vmem>>, %arg1: memref<8x10xf32, #tpu.memory_space<vmem>>, %arg2: memref<12x32xf32, #tpu.memory_space<vmem>>, %arg3: memref<10x32xf32, #tpu.memory_space<vmem>>, %arg4: memref<1x32xf32, #tpu.memory_space<vmem>>, %arg5: memref<8x32xf32, #tpu.memory_space<vmem>>) attributes {dimension_semantics = [], scalar_prefetch = 0 : i64, scratch_operands = 0 : i64, tpu.core_type = #tpu.core_type<tc>} {
    %c0 = arith.constant 0 : index
    %c0_0 = arith.constant 0 : index
    %0 = vector.load %arg0[%c0, %c0_0] : memref<8x12xf32, #tpu.memory_space<vmem>>, vector<8x12xf32>
    %c0_1 = arith.constant 0 : index
    %c0_2 = arith.constant 0 : index
    %1 = vector.load %arg2[%c0_1, %c0_2] : memref<12x32xf32, #tpu.memory_space<vmem>>, vector<12x32xf32>
    %cst = arith.constant dense<0.000000e+00> : vector<8x32xf32>
    %2 = tpu.matmul %0, %1, %cst {dimension_numbers = #tpu.dot_dimension_numbers<[1], [0], [0], [1], [0, 0, 1, 1], [], []>} : vector<8x12xf32>, vector<12x32xf32>, vector<8x32xf32> -> vector<8x32xf32>
    %c0_3 = arith.constant 0 : index
    %c0_4 = arith.constant 0 : index
    %3 = vector.load %arg1[%c0_3, %c0_4] : memref<8x10xf32, #tpu.memory_space<vmem>>, vector<8x10xf32>
    %c0_5 = arith.constant 0 : index
    %c0_6 = arith.constant 0 : index
    %4 = vector.load %arg3[%c0_5, %c0_6] : memref<10x32xf32, #tpu.memory_space<vmem>>, vector<10x32xf32>
    %cst_7 = arith.constant dense<0.000000e+00> : vector<8x32xf32>
    %5 = tpu.matmul %3, %4, %cst_7 {dimension_numbers = #tpu.dot_dimension_numbers<[1], [0], [0], [1], [0, 0, 1, 1], [], []>} : vector<8x10xf32>, vector<10x32xf32>, vector<8x32xf32> -> vector<8x32xf32>
    %6 = arith.addf %2, %5 : vector<8x32xf32>
    %c0_8 = arith.constant 0 : index
    %c0_9 = arith.constant 0 : index
    %7 = vector.load %arg4[%c0_8, %c0_9] : memref<1x32xf32, #tpu.memory_space<vmem>>, vector<1x32xf32>
    %8 = vector.broadcast %7 : vector<1x32xf32> to vector<8x32xf32>
    %9 = arith.addf %6, %8 : vector<8x32xf32>
    %c0_10 = arith.constant 0 : index
    %c0_11 = arith.constant 0 : index
    %10 = vector.load %arg5[%c0_10, %c0_11] : memref<8x32xf32, #tpu.memory_space<vmem>>, vector<8x32xf32>
    tpu.vector_store %arg5[%c0_10, %c0_11], %9 {strides = array<i32>} : memref<8x32xf32, #tpu.memory_space<vmem>>, vector<8x32xf32>,
    return
  }
}

module attributes {stable_mosaic.version = 11 : i64} {
  func.func @_online_transition_kernel(%arg0: memref<4x12xf32, #tpu.memory_space<vmem>>, %arg1: memref<4x10xf32, #tpu.memory_space<vmem>>, %arg2: memref<12x32xf32, #tpu.memory_space<vmem>>, %arg3: memref<10x32xf32, #tpu.memory_space<vmem>>, %arg4: memref<1x32xf32, #tpu.memory_space<vmem>>, %arg5: memref<2x2x2x5xf32, #tpu.memory_space<vmem>>, %arg6: memref<2x2x2x10xf32, #tpu.memory_space<vmem>>, %arg7: memref<5x32xf32, #tpu.memory_space<vmem>>, %arg8: memref<32x32xf32, #tpu.memory_space<vmem>>, %arg9: memref<10x32xf32, #tpu.memory_space<vmem>>, %arg10: memref<1x32xf32, #tpu.memory_space<vmem>>, %arg11: memref<1x32xf32, #tpu.memory_space<vmem>>, %arg12: memref<1x32xf32, #tpu.memory_space<vmem>>, %arg13: memref<2x2x32x16xf32, #tpu.memory_space<vmem>>, %arg14: memref<2x2x1x16xf32, #tpu.memory_space<vmem>>, %arg15: memref<2x2x32x16xf32, #tpu.memory_space<vmem>>, %arg16: memref<2x2x1x16xf32, #tpu.memory_space<vmem>>, %arg17: memref<2x2x32x16xf32, #tpu.memory_space<vmem>>, %arg18: memref<2x2x1x16xf32, #tpu.memory_space<vmem>>, %arg19: memref<2x2x16x32xf32, #tpu.memory_space<vmem>>, %arg20: memref<2x1x32xf32, #tpu.memory_space<vmem>>, %arg21: memref<2x1x32xf32, #tpu.memory_space<vmem>>, %arg22: memref<2x1x32xf32, #tpu.memory_space<vmem>>, %arg23: memref<2x1x32xf32, #tpu.memory_space<vmem>>, %arg24: memref<2x1x32xf32, #tpu.memory_space<vmem>>, %arg25: memref<2x32x32xf32, #tpu.memory_space<vmem>>, %arg26: memref<2x1x32xf32, #tpu.memory_space<vmem>>, %arg27: memref<2x32x32xf32, #tpu.memory_space<vmem>>, %arg28: memref<2x1x32xf32, #tpu.memory_space<vmem>>, %arg29: memref<2x2x2x32xf32, #tpu.memory_space<vmem>>) attributes {dimension_semantics = [], scalar_prefetch = 0 : i64, scratch_operands = 0 : i64, tpu.core_type = #tpu.core_type<tc>} {
    %c0 = arith.constant 0 : index
    %c0_0 = arith.constant 0 : index
    %0 = vector.load %arg0[%c0, %c0_0] : memref<4x12xf32, #tpu.memory_space<vmem>>, vector<4x12xf32>
    %c0_1 = arith.constant 0 : index
    %c0_2 = arith.constant 0 : index
    %1 = vector.load %arg2[%c0_1, %c0_2] : memref<12x32xf32, #tpu.memory_space<vmem>>, vector<12x32xf32>
    %cst = arith.constant dense<0.000000e+00> : vector<4x32xf32>
    %2 = tpu.matmul %0, %1, %cst {dimension_numbers = #tpu.dot_dimension_numbers<[1], [0], [0], [1], [0, 0, 1, 1], [], []>} : vector<4x12xf32>, vector<12x32xf32>, vector<4x32xf32> -> vector<4x32xf32>
    %c0_3 = arith.constant 0 : index
    %c0_4 = arith.constant 0 : index
    %3 = vector.load %arg1[%c0_3, %c0_4] : memref<4x10xf32, #tpu.memory_space<vmem>>, vector<4x10xf32>
    %c0_5 = arith.constant 0 : index
    %c0_6 = arith.constant 0 : index
    %4 = vector.load %arg3[%c0_5, %c0_6] : memref<10x32xf32, #tpu.memory_space<vmem>>, vector<10x32xf32>
    %cst_7 = arith.constant dense<0.000000e+00> : vector<4x32xf32>
    %5 = tpu.matmul %3, %4, %cst_7 {dimension_numbers = #tpu.dot_dimension_numbers<[1], [0], [0], [1], [0, 0, 1, 1], [], []>} : vector<4x10xf32>, vector<10x32xf32>, vector<4x32xf32> -> vector<4x32xf32>
    %6 = arith.addf %2, %5 : vector<4x32xf32>
    %c0_8 = arith.constant 0 : index
    %c0_9 = arith.constant 0 : index
    %7 = vector.load %arg4[%c0_8, %c0_9] : memref<1x32xf32, #tpu.memory_space<vmem>>, vector<1x32xf32>
    %8 = vector.broadcast %7 : vector<1x32xf32> to vector<4x32xf32>
    %9 = arith.addf %6, %8 : vector<4x32xf32>
    %c0_10 = arith.constant 0 : index
    %c0_11 = arith.constant 0 : index
    %c0_12 = arith.constant 0 : index
    %c0_13 = arith.constant 0 : index
    %10 = vector.load %arg5[%c0_10, %c0_11, %c0_12, %c0_13] : memref<2x2x2x5xf32, #tpu.memory_space<vmem>>, vector<1x2x2x5xf32>
    %11 = vector.shape_cast %10 : vector<1x2x2x5xf32> to vector<2x2x5xf32>
    %12 = vector.shape_cast %11 : vector<2x2x5xf32> to vector<4x5xf32>
    %c0_14 = arith.constant 0 : index
    %c0_15 = arith.constant 0 : index
    %c0_16 = arith.constant 0 : index
    %c0_17 = arith.constant 0 : index
    %13 = vector.load %arg6[%c0_14, %c0_15, %c0_16, %c0_17] : memref<2x2x2x10xf32, #tpu.memory_space<vmem>>, vector<1x2x2x10xf32>
    %14 = vector.shape_cast %13 : vector<1x2x2x10xf32> to vector<2x2x10xf32>
    %15 = vector.shape_cast %14 : vector<2x2x10xf32> to vector<4x10xf32>
    %c0_18 = arith.constant 0 : index
    %c0_19 = arith.constant 0 : index
    %16 = vector.load %arg7[%c0_18, %c0_19] : memref<5x32xf32, #tpu.memory_space<vmem>>, vector<5x32xf32>
    %cst_20 = arith.constant dense<0.000000e+00> : vector<4x32xf32>
    %17 = tpu.matmul %12, %16, %cst_20 {dimension_numbers = #tpu.dot_dimension_numbers<[1], [0], [0], [1], [0, 0, 1, 1], [], []>} : vector<4x5xf32>, vector<5x32xf32>, vector<4x32xf32> -> vector<4x32xf32>
    %c0_21 = arith.constant 0 : index
    %c0_22 = arith.constant 0 : index
    %18 = vector.load %arg8[%c0_21, %c0_22] : memref<32x32xf32, #tpu.memory_space<vmem>>, vector<32x32xf32>
    %cst_23 = arith.constant dense<0.000000e+00> : vector<4x32xf32>
    %19 = tpu.matmul %9, %18, %cst_23 {dimension_numbers = #tpu.dot_dimension_numbers<[1], [0], [0], [1], [0, 0, 1, 1], [], []>} : vector<4x32xf32>, vector<32x32xf32>, vector<4x32xf32> -> vector<4x32xf32>
    %20 = arith.addf %17, %19 : vector<4x32xf32>
    %c0_24 = arith.constant 0 : index
    %c0_25 = arith.constant 0 : index
    %21 = vector.load %arg9[%c0_24, %c0_25] : memref<10x32xf32, #tpu.memory_space<vmem>>, vector<10x32xf32>
    %cst_26 = arith.constant dense<0.000000e+00> : vector<4x32xf32>
    %22 = tpu.matmul %15, %21, %cst_26 {dimension_numbers = #tpu.dot_dimension_numbers<[1], [0], [0], [1], [0, 0, 1, 1], [], []>} : vector<4x10xf32>, vector<10x32xf32>, vector<4x32xf32> -> vector<4x32xf32>
    %23 = arith.addf %20, %22 : vector<4x32xf32>
    %c0_27 = arith.constant 0 : index
    %c0_28 = arith.constant 0 : index
    %24 = vector.load %arg10[%c0_27, %c0_28] : memref<1x32xf32, #tpu.memory_space<vmem>>, vector<1x32xf32>
    %25 = vector.broadcast %24 : vector<1x32xf32> to vector<4x32xf32>
    %26 = arith.addf %23, %25 : vector<4x32xf32>
    %27 = vector.shape_cast %9 : vector<4x32xf32> to vector<2x2x32xf32>
    %28 = vector.shape_cast %26 : vector<4x32xf32> to vector<2x2x32xf32>
    %29 = vector.shape_cast %27 : vector<2x2x32xf32> to vector<2x2x1x32xf32>
    %30 = vector.shape_cast %28 : vector<2x2x32xf32> to vector<2x2x1x32xf32>
    %31 = tpu.concatenate %29, %30 in 2 : vector<2x2x1x32xf32>, vector<2x2x1x32xf32> -> vector<2x2x2x32xf32>
    %32 = vector.shape_cast %31 : vector<2x2x2x32xf32> to vector<2x4x32xf32>
    %c0_29 = arith.constant 0 : index
    %c0_30 = arith.constant 0 : index
    %33 = vector.load %arg11[%c0_29, %c0_30] : memref<1x32xf32, #tpu.memory_space<vmem>>, vector<1x32xf32>
    %c0_31 = arith.constant 0 : index
    %c0_32 = arith.constant 0 : index
    %34 = vector.load %arg12[%c0_31, %c0_32] : memref<1x32xf32, #tpu.memory_space<vmem>>, vector<1x32xf32>
    %cst_33 = arith.constant dense<0.000000e+00> : vector<2x4xf32>
    %35 = vector.multi_reduction <add>, %32, %cst_33 [2] : vector<2x4x32xf32> to vector<2x4xf32>
    %36 = vector.shape_cast %35 : vector<2x4xf32> to vector<2x4x1xf32>
    %cst_34 = arith.constant 3.200000e+01 : f32
    %37 = vector.broadcast %cst_34 : f32 to vector<2x4x1xf32>
    %38 = arith.divf %36, %37 : vector<2x4x1xf32>
    %39 = vector.broadcast %38 : vector<2x4x1xf32> to vector<2x4x32xf32>
    %40 = arith.subf %32, %39 : vector<2x4x32xf32>
    %41 = arith.mulf %40, %40 : vector<2x4x32xf32>
    %cst_35 = arith.constant dense<0.000000e+00> : vector<2x4xf32>
    %42 = vector.multi_reduction <add>, %41, %cst_35 [2] : vector<2x4x32xf32> to vector<2x4xf32>
    %43 = vector.shape_cast %42 : vector<2x4xf32> to vector<2x4x1xf32>
    %cst_36 = arith.constant 3.200000e+01 : f32
    %44 = vector.broadcast %cst_36 : f32 to vector<2x4x1xf32>
    %45 = arith.divf %43, %44 : vector<2x4x1xf32>
    %46 = vector.broadcast %38 : vector<2x4x1xf32> to vector<2x4x32xf32>
    %47 = arith.subf %32, %46 : vector<2x4x32xf32>
    %cst_37 = arith.constant 9.99999974E-6 : f32
    %48 = vector.broadcast %cst_37 : f32 to vector<2x4x1xf32>
    %49 = arith.addf %45, %48 : vector<2x4x1xf32>
    %50 = math.rsqrt %49 : vector<2x4x1xf32>
    %51 = vector.broadcast %50 : vector<2x4x1xf32> to vector<2x4x32xf32>
    %52 = arith.mulf %47, %51 : vector<2x4x32xf32>
    %53 = vector.shape_cast %33 : vector<1x32xf32> to vector<1x1x32xf32>
    %54 = vector.broadcast %53 : vector<1x1x32xf32> to vector<2x4x32xf32>
    %55 = arith.mulf %52, %54 : vector<2x4x32xf32>
    %56 = vector.shape_cast %34 : vector<1x32xf32> to vector<1x1x32xf32>
    %57 = vector.broadcast %56 : vector<1x1x32xf32> to vector<2x4x32xf32>
    %58 = arith.addf %55, %57 : vector<2x4x32xf32>
    %59 = vector.shape_cast %58 : vector<2x4x32xf32> to vector<8x32xf32>
    %cst_38 = arith.constant 0.000000e+00 : f32
    %60 = vector.broadcast %cst_38 : f32 to vector<8x32xf32>
    %c0_39 = arith.constant 0 : index
    %c0_40 = arith.constant 0 : index
    %c0_41 = arith.constant 0 : index
    %61 = vector.load %arg20[%c0_39, %c0_40, %c0_41] : memref<2x1x32xf32, #tpu.memory_space<vmem>>, vector<1x1x32xf32>
    %62 = vector.shape_cast %61 : vector<1x1x32xf32> to vector<1x32xf32>
    %63 = vector.broadcast %62 : vector<1x32xf32> to vector<8x32xf32>
    %64 = arith.addf %60, %63 : vector<8x32xf32>
    %c0_42 = arith.constant 0 : index
    %c0_43 = arith.constant 0 : index
    %c0_44 = arith.constant 0 : index
    %c0_45 = arith.constant 0 : index
    %65 = vector.load %arg13[%c0_42, %c0_43, %c0_44, %c0_45] : memref<2x2x32x16xf32, #tpu.memory_space<vmem>>, vector<1x1x32x16xf32>
    %66 = vector.shape_cast %65 : vector<1x1x32x16xf32> to vector<32x16xf32>
    %cst_46 = arith.constant dense<0.000000e+00> : vector<8x16xf32>
    %67 = tpu.matmul %59, %66, %cst_46 {dimension_numbers = #tpu.dot_dimension_numbers<[1], [0], [0], [1], [0, 0, 1, 1], [], []>} : vector<8x32xf32>, vector<32x16xf32>, vector<8x16xf32> -> vector<8x16xf32>
    %c0_47 = arith.constant 0 : index
    %c0_48 = arith.constant 0 : index
    %c0_49 = arith.constant 0 : index
    %c0_50 = arith.constant 0 : index
    %68 = vector.load %arg14[%c0_47, %c0_48, %c0_49, %c0_50] : memref<2x2x1x16xf32, #tpu.memory_space<vmem>>, vector<1x1x1x16xf32>
    %69 = vector.shape_cast %68 : vector<1x1x1x16xf32> to vector<1x16xf32>
    %70 = vector.broadcast %69 : vector<1x16xf32> to vector<8x16xf32>
    %71 = arith.addf %67, %70 : vector<8x16xf32>
    %cst_51 = arith.constant 2.500000e-01 : f32
    %72 = vector.broadcast %cst_51 : f32 to vector<8x16xf32>
    %73 = arith.mulf %71, %72 : vector<8x16xf32>
    %c0_52 = arith.constant 0 : index
    %c0_53 = arith.constant 0 : index
    %c0_54 = arith.constant 0 : index
    %c0_55 = arith.constant 0 : index
    %74 = vector.load %arg15[%c0_52, %c0_53, %c0_54, %c0_55] : memref<2x2x32x16xf32, #tpu.memory_space<vmem>>, vector<1x1x32x16xf32>
    %75 = vector.shape_cast %74 : vector<1x1x32x16xf32> to vector<32x16xf32>
    %cst_56 = arith.constant dense<0.000000e+00> : vector<8x16xf32>
    %76 = tpu.matmul %59, %75, %cst_56 {dimension_numbers = #tpu.dot_dimension_numbers<[1], [0], [0], [1], [0, 0, 1, 1], [], []>} : vector<8x32xf32>, vector<32x16xf32>, vector<8x16xf32> -> vector<8x16xf32>
    %c0_57 = arith.constant 0 : index
    %c0_58 = arith.constant 0 : index
    %c0_59 = arith.constant 0 : index
    %c0_60 = arith.constant 0 : index
    %77 = vector.load %arg16[%c0_57, %c0_58, %c0_59, %c0_60] : memref<2x2x1x16xf32, #tpu.memory_space<vmem>>, vector<1x1x1x16xf32>
    %78 = vector.shape_cast %77 : vector<1x1x1x16xf32> to vector<1x16xf32>
    %79 = vector.broadcast %78 : vector<1x16xf32> to vector<8x16xf32>
    %80 = arith.addf %76, %79 : vector<8x16xf32>
    %c0_61 = arith.constant 0 : index
    %c0_62 = arith.constant 0 : index
    %c0_63 = arith.constant 0 : index
    %c0_64 = arith.constant 0 : index
    %81 = vector.load %arg17[%c0_61, %c0_62, %c0_63, %c0_64] : memref<2x2x32x16xf32, #tpu.memory_space<vmem>>, vector<1x1x32x16xf32>
    %82 = vector.shape_cast %81 : vector<1x1x32x16xf32> to vector<32x16xf32>
    %cst_65 = arith.constant dense<0.000000e+00> : vector<8x16xf32>
    %83 = tpu.matmul %59, %82, %cst_65 {dimension_numbers = #tpu.dot_dimension_numbers<[1], [0], [0], [1], [0, 0, 1, 1], [], []>} : vector<8x32xf32>, vector<32x16xf32>, vector<8x16xf32> -> vector<8x16xf32>
    %c0_66 = arith.constant 0 : index
    %c0_67 = arith.constant 0 : index
    %c0_68 = arith.constant 0 : index
    %c0_69 = arith.constant 0 : index
    %84 = vector.load %arg18[%c0_66, %c0_67, %c0_68, %c0_69] : memref<2x2x1x16xf32, #tpu.memory_space<vmem>>, vector<1x1x1x16xf32>
    %85 = vector.shape_cast %84 : vector<1x1x1x16xf32> to vector<1x16xf32>
    %86 = vector.broadcast %85 : vector<1x16xf32> to vector<8x16xf32>
    %87 = arith.addf %83, %86 : vector<8x16xf32>
    %88 = vector.shape_cast %73 : vector<8x16xf32> to vector<2x4x16xf32>
    %89 = vector.shape_cast %80 : vector<8x16xf32> to vector<2x4x16xf32>
    %90 = vector.shape_cast %87 : vector<8x16xf32> to vector<2x4x16xf32>
    "tpu.trace_start"() <{level = 10 : i32, message = "bqd,bkd->bqk"}> : () -> ()
    %cst_70 = arith.constant dense<0.000000e+00> : vector<2x4x4xf32>
    %91 = tpu.matmul %88, %89, %cst_70 {dimension_numbers = #tpu.dot_dimension_numbers<[2], [2], [1], [1], [0, 0, 0, 1, 1, 1], [0], [0]>} : vector<2x4x16xf32>, vector<2x4x16xf32>, vector<2x4x4xf32> -> vector<2x4x4xf32>
    "tpu.trace_stop"() : () -> ()
    %cst_71 = arith.constant dense<0xFF800000> : vector<2x4xf32>
    %92 = vector.multi_reduction <maximumf>, %91, %cst_71 [2] : vector<2x4x4xf32> to vector<2x4xf32>
    %93 = vector.shape_cast %92 : vector<2x4xf32> to vector<2x4x1xf32>
    %94 = vector.broadcast %93 : vector<2x4x1xf32> to vector<2x4x4xf32>
    %95 = arith.subf %91, %94 : vector<2x4x4xf32>
    %96 = math.exp %95 : vector<2x4x4xf32>
    %cst_72 = arith.constant dense<0.000000e+00> : vector<2x4xf32>
    %97 = vector.multi_reduction <add>, %96, %cst_72 [2] : vector<2x4x4xf32> to vector<2x4xf32>
    %98 = vector.shape_cast %97 : vector<2x4xf32> to vector<2x4x1xf32>
    %99 = tpu.reciprocal %98 {approx = true} : vector<2x4x1xf32> -> vector<2x4x1xf32>
    %100 = vector.broadcast %99 : vector<2x4x1xf32> to vector<2x4x4xf32>
    %101 = arith.mulf %96, %100 : vector<2x4x4xf32>
    "tpu.trace_start"() <{level = 10 : i32, message = "bqk,bkd->bqd"}> : () -> ()
    %cst_73 = arith.constant dense<0.000000e+00> : vector<2x4x16xf32>
    %102 = tpu.matmul %101, %90, %cst_73 {dimension_numbers = #tpu.dot_dimension_numbers<[2], [1], [1], [2], [0, 0, 0, 1, 1, 2], [0], [0]>} : vector<2x4x4xf32>, vector<2x4x16xf32>, vector<2x4x16xf32> -> vector<2x4x16xf32>
    "tpu.trace_stop"() : () -> ()
    %103 = vector.shape_cast %102 : vector<2x4x16xf32> to vector<8x16xf32>
    %c0_74 = arith.constant 0 : index
    %c0_75 = arith.constant 0 : index
    %c0_76 = arith.constant 0 : index
    %c0_77 = arith.constant 0 : index
    %104 = vector.load %arg19[%c0_74, %c0_75, %c0_76, %c0_77] : memref<2x2x16x32xf32, #tpu.memory_space<vmem>>, vector<1x1x16x32xf32>
    %105 = vector.shape_cast %104 : vector<1x1x16x32xf32> to vector<16x32xf32>
    %cst_78 = arith.constant dense<0.000000e+00> : vector<8x32xf32>
    %106 = tpu.matmul %103, %105, %cst_78 {dimension_numbers = #tpu.dot_dimension_numbers<[1], [0], [0], [1], [0, 0, 1, 1], [], []>} : vector<8x16xf32>, vector<16x32xf32>, vector<8x32xf32> -> vector<8x32xf32>
    %107 = arith.addf %64, %106 : vector<8x32xf32>
    %c0_79 = arith.constant 0 : index
    %c1 = arith.constant 1 : index
    %c0_80 = arith.constant 0 : index
    %c0_81 = arith.constant 0 : index
    %108 = vector.load %arg13[%c0_79, %c1, %c0_80, %c0_81] : memref<2x2x32x16xf32, #tpu.memory_space<vmem>>, vector<1x1x32x16xf32>
    %109 = vector.shape_cast %108 : vector<1x1x32x16xf32> to vector<32x16xf32>
    %cst_82 = arith.constant dense<0.000000e+00> : vector<8x16xf32>
    %110 = tpu.matmul %59, %109, %cst_82 {dimension_numbers = #tpu.dot_dimension_numbers<[1], [0], [0], [1], [0, 0, 1, 1], [], []>} : vector<8x32xf32>, vector<32x16xf32>, vector<8x16xf32> -> vector<8x16xf32>
    %c0_83 = arith.constant 0 : index
    %c1_84 = arith.constant 1 : index
    %c0_85 = arith.constant 0 : index
    %c0_86 = arith.constant 0 : index
    %111 = vector.load %arg14[%c0_83, %c1_84, %c0_85, %c0_86] : memref<2x2x1x16xf32, #tpu.memory_space<vmem>>, vector<1x1x1x16xf32>
    %112 = vector.shape_cast %111 : vector<1x1x1x16xf32> to vector<1x16xf32>
    %113 = vector.broadcast %112 : vector<1x16xf32> to vector<8x16xf32>
    %114 = arith.addf %110, %113 : vector<8x16xf32>
    %cst_87 = arith.constant 2.500000e-01 : f32
    %115 = vector.broadcast %cst_87 : f32 to vector<8x16xf32>
    %116 = arith.mulf %114, %115 : vector<8x16xf32>
    %c0_88 = arith.constant 0 : index
    %c1_89 = arith.constant 1 : index
    %c0_90 = arith.constant 0 : index
    %c0_91 = arith.constant 0 : index
    %117 = vector.load %arg15[%c0_88, %c1_89, %c0_90, %c0_91] : memref<2x2x32x16xf32, #tpu.memory_space<vmem>>, vector<1x1x32x16xf32>
    %118 = vector.shape_cast %117 : vector<1x1x32x16xf32> to vector<32x16xf32>
    %cst_92 = arith.constant dense<0.000000e+00> : vector<8x16xf32>
    %119 = tpu.matmul %59, %118, %cst_92 {dimension_numbers = #tpu.dot_dimension_numbers<[1], [0], [0], [1], [0, 0, 1, 1], [], []>} : vector<8x32xf32>, vector<32x16xf32>, vector<8x16xf32> -> vector<8x16xf32>
    %c0_93 = arith.constant 0 : index
    %c1_94 = arith.constant 1 : index
    %c0_95 = arith.constant 0 : index
    %c0_96 = arith.constant 0 : index
    %120 = vector.load %arg16[%c0_93, %c1_94, %c0_95, %c0_96] : memref<2x2x1x16xf32, #tpu.memory_space<vmem>>, vector<1x1x1x16xf32>
    %121 = vector.shape_cast %120 : vector<1x1x1x16xf32> to vector<1x16xf32>
    %122 = vector.broadcast %121 : vector<1x16xf32> to vector<8x16xf32>
    %123 = arith.addf %119, %122 : vector<8x16xf32>
    %c0_97 = arith.constant 0 : index
    %c1_98 = arith.constant 1 : index
    %c0_99 = arith.constant 0 : index
    %c0_100 = arith.constant 0 : index
    %124 = vector.load %arg17[%c0_97, %c1_98, %c0_99, %c0_100] : memref<2x2x32x16xf32, #tpu.memory_space<vmem>>, vector<1x1x32x16xf32>
    %125 = vector.shape_cast %124 : vector<1x1x32x16xf32> to vector<32x16xf32>
    %cst_101 = arith.constant dense<0.000000e+00> : vector<8x16xf32>
    %126 = tpu.matmul %59, %125, %cst_101 {dimension_numbers = #tpu.dot_dimension_numbers<[1], [0], [0], [1], [0, 0, 1, 1], [], []>} : vector<8x32xf32>, vector<32x16xf32>, vector<8x16xf32> -> vector<8x16xf32>
    %c0_102 = arith.constant 0 : index
    %c1_103 = arith.constant 1 : index
    %c0_104 = arith.constant 0 : index
    %c0_105 = arith.constant 0 : index
    %127 = vector.load %arg18[%c0_102, %c1_103, %c0_104, %c0_105] : memref<2x2x1x16xf32, #tpu.memory_space<vmem>>, vector<1x1x1x16xf32>
    %128 = vector.shape_cast %127 : vector<1x1x1x16xf32> to vector<1x16xf32>
    %129 = vector.broadcast %128 : vector<1x16xf32> to vector<8x16xf32>
    %130 = arith.addf %126, %129 : vector<8x16xf32>
    %131 = vector.shape_cast %116 : vector<8x16xf32> to vector<2x4x16xf32>
    %132 = vector.shape_cast %123 : vector<8x16xf32> to vector<2x4x16xf32>
    %133 = vector.shape_cast %130 : vector<8x16xf32> to vector<2x4x16xf32>
    "tpu.trace_start"() <{level = 10 : i32, message = "bqd,bkd->bqk"}> : () -> ()
    %cst_106 = arith.constant dense<0.000000e+00> : vector<2x4x4xf32>
    %134 = tpu.matmul %131, %132, %cst_106 {dimension_numbers = #tpu.dot_dimension_numbers<[2], [2], [1], [1], [0, 0, 0, 1, 1, 1], [0], [0]>} : vector<2x4x16xf32>, vector<2x4x16xf32>, vector<2x4x4xf32> -> vector<2x4x4xf32>
    "tpu.trace_stop"() : () -> ()
    %cst_107 = arith.constant dense<0xFF800000> : vector<2x4xf32>
    %135 = vector.multi_reduction <maximumf>, %134, %cst_107 [2] : vector<2x4x4xf32> to vector<2x4xf32>
    %136 = vector.shape_cast %135 : vector<2x4xf32> to vector<2x4x1xf32>
    %137 = vector.broadcast %136 : vector<2x4x1xf32> to vector<2x4x4xf32>
    %138 = arith.subf %134, %137 : vector<2x4x4xf32>
    %139 = math.exp %138 : vector<2x4x4xf32>
    %cst_108 = arith.constant dense<0.000000e+00> : vector<2x4xf32>
    %140 = vector.multi_reduction <add>, %139, %cst_108 [2] : vector<2x4x4xf32> to vector<2x4xf32>
    %141 = vector.shape_cast %140 : vector<2x4xf32> to vector<2x4x1xf32>
    %142 = tpu.reciprocal %141 {approx = true} : vector<2x4x1xf32> -> vector<2x4x1xf32>
    %143 = vector.broadcast %142 : vector<2x4x1xf32> to vector<2x4x4xf32>
    %144 = arith.mulf %139, %143 : vector<2x4x4xf32>
    "tpu.trace_start"() <{level = 10 : i32, message = "bqk,bkd->bqd"}> : () -> ()
    %cst_109 = arith.constant dense<0.000000e+00> : vector<2x4x16xf32>
    %145 = tpu.matmul %144, %133, %cst_109 {dimension_numbers = #tpu.dot_dimension_numbers<[2], [1], [1], [2], [0, 0, 0, 1, 1, 2], [0], [0]>} : vector<2x4x4xf32>, vector<2x4x16xf32>, vector<2x4x16xf32> -> vector<2x4x16xf32>
    "tpu.trace_stop"() : () -> ()
    %146 = vector.shape_cast %145 : vector<2x4x16xf32> to vector<8x16xf32>
    %c0_110 = arith.constant 0 : index
    %c1_111 = arith.constant 1 : index
    %c0_112 = arith.constant 0 : index
    %c0_113 = arith.constant 0 : index
    %147 = vector.load %arg19[%c0_110, %c1_111, %c0_112, %c0_113] : memref<2x2x16x32xf32, #tpu.memory_space<vmem>>, vector<1x1x16x32xf32>
    %148 = vector.shape_cast %147 : vector<1x1x16x32xf32> to vector<16x32xf32>
    %cst_114 = arith.constant dense<0.000000e+00> : vector<8x32xf32>
    %149 = tpu.matmul %146, %148, %cst_114 {dimension_numbers = #tpu.dot_dimension_numbers<[1], [0], [0], [1], [0, 0, 1, 1], [], []>} : vector<8x16xf32>, vector<16x32xf32>, vector<8x32xf32> -> vector<8x32xf32>
    %150 = arith.addf %107, %149 : vector<8x32xf32>
    %151 = vector.shape_cast %150 : vector<8x32xf32> to vector<2x4x32xf32>
    %152 = arith.addf %58, %151 : vector<2x4x32xf32>
    %c0_115 = arith.constant 0 : index
    %c0_116 = arith.constant 0 : index
    %c0_117 = arith.constant 0 : index
    %153 = vector.load %arg21[%c0_115, %c0_116, %c0_117] : memref<2x1x32xf32, #tpu.memory_space<vmem>>, vector<1x1x32xf32>
    %154 = vector.shape_cast %153 : vector<1x1x32xf32> to vector<1x32xf32>
    %c0_118 = arith.constant 0 : index
    %c0_119 = arith.constant 0 : index
    %c0_120 = arith.constant 0 : index
    %155 = vector.load %arg22[%c0_118, %c0_119, %c0_120] : memref<2x1x32xf32, #tpu.memory_space<vmem>>, vector<1x1x32xf32>
    %156 = vector.shape_cast %155 : vector<1x1x32xf32> to vector<1x32xf32>
    %cst_121 = arith.constant dense<0.000000e+00> : vector<2x4xf32>
    %157 = vector.multi_reduction <add>, %152, %cst_121 [2] : vector<2x4x32xf32> to vector<2x4xf32>
    %158 = vector.shape_cast %157 : vector<2x4xf32> to vector<2x4x1xf32>
    %cst_122 = arith.constant 3.200000e+01 : f32
    %159 = vector.broadcast %cst_122 : f32 to vector<2x4x1xf32>
    %160 = arith.divf %158, %159 : vector<2x4x1xf32>
    %161 = vector.broadcast %160 : vector<2x4x1xf32> to vector<2x4x32xf32>
    %162 = arith.subf %152, %161 : vector<2x4x32xf32>
    %163 = arith.mulf %162, %162 : vector<2x4x32xf32>
    %cst_123 = arith.constant dense<0.000000e+00> : vector<2x4xf32>
    %164 = vector.multi_reduction <add>, %163, %cst_123 [2] : vector<2x4x32xf32> to vector<2x4xf32>
    %165 = vector.shape_cast %164 : vector<2x4xf32> to vector<2x4x1xf32>
    %cst_124 = arith.constant 3.200000e+01 : f32
    %166 = vector.broadcast %cst_124 : f32 to vector<2x4x1xf32>
    %167 = arith.divf %165, %166 : vector<2x4x1xf32>
    %168 = vector.broadcast %160 : vector<2x4x1xf32> to vector<2x4x32xf32>
    %169 = arith.subf %152, %168 : vector<2x4x32xf32>
    %cst_125 = arith.constant 9.99999974E-6 : f32
    %170 = vector.broadcast %cst_125 : f32 to vector<2x4x1xf32>
    %171 = arith.addf %167, %170 : vector<2x4x1xf32>
    %172 = math.rsqrt %171 : vector<2x4x1xf32>
    %173 = vector.broadcast %172 : vector<2x4x1xf32> to vector<2x4x32xf32>
    %174 = arith.mulf %169, %173 : vector<2x4x32xf32>
    %175 = vector.shape_cast %154 : vector<1x32xf32> to vector<1x1x32xf32>
    %176 = vector.broadcast %175 : vector<1x1x32xf32> to vector<2x4x32xf32>
    %177 = arith.mulf %174, %176 : vector<2x4x32xf32>
    %178 = vector.shape_cast %156 : vector<1x32xf32> to vector<1x1x32xf32>
    %179 = vector.broadcast %178 : vector<1x1x32xf32> to vector<2x4x32xf32>
    %180 = arith.addf %177, %179 : vector<2x4x32xf32>
    %181 = vector.shape_cast %180 : vector<2x4x32xf32> to vector<8x32xf32>
    %c0_126 = arith.constant 0 : index
    %c0_127 = arith.constant 0 : index
    %c0_128 = arith.constant 0 : index
    %182 = vector.load %arg25[%c0_126, %c0_127, %c0_128] : memref<2x32x32xf32, #tpu.memory_space<vmem>>, vector<1x32x32xf32>
    %183 = vector.shape_cast %182 : vector<1x32x32xf32> to vector<32x32xf32>
    %cst_129 = arith.constant dense<0.000000e+00> : vector<8x32xf32>
    %184 = tpu.matmul %181, %183, %cst_129 {dimension_numbers = #tpu.dot_dimension_numbers<[1], [0], [0], [1], [0, 0, 1, 1], [], []>} : vector<8x32xf32>, vector<32x32xf32>, vector<8x32xf32> -> vector<8x32xf32>
    %c0_130 = arith.constant 0 : index
    %c0_131 = arith.constant 0 : index
    %c0_132 = arith.constant 0 : index
    %185 = vector.load %arg26[%c0_130, %c0_131, %c0_132] : memref<2x1x32xf32, #tpu.memory_space<vmem>>, vector<1x1x32xf32>
    %186 = vector.shape_cast %185 : vector<1x1x32xf32> to vector<1x32xf32>
    %187 = vector.broadcast %186 : vector<1x32xf32> to vector<8x32xf32>
    %188 = arith.addf %184, %187 : vector<8x32xf32>
    %cst_133 = arith.constant 5.000000e-01 : f32
    %189 = vector.broadcast %cst_133 : f32 to vector<8x32xf32>
    %190 = arith.mulf %189, %188 : vector<8x32xf32>
    %cst_134 = arith.constant 4.471500e-02 : f32
    %191 = vector.broadcast %cst_134 : f32 to vector<8x32xf32>
    %192 = arith.mulf %191, %188 : vector<8x32xf32>
    %193 = arith.mulf %192, %188 : vector<8x32xf32>
    %194 = arith.mulf %193, %188 : vector<8x32xf32>
    %195 = arith.addf %188, %194 : vector<8x32xf32>
    %cst_135 = arith.constant 0.797884583 : f32
    %196 = vector.broadcast %cst_135 : f32 to vector<8x32xf32>
    %197 = arith.mulf %196, %195 : vector<8x32xf32>
    %198 = math.tanh %197 : vector<8x32xf32>
    %cst_136 = arith.constant 1.000000e+00 : f32
    %199 = vector.broadcast %cst_136 : f32 to vector<8x32xf32>
    %200 = arith.addf %199, %198 : vector<8x32xf32>
    %201 = arith.mulf %190, %200 : vector<8x32xf32>
    %c0_137 = arith.constant 0 : index
    %c0_138 = arith.constant 0 : index
    %c0_139 = arith.constant 0 : index
    %202 = vector.load %arg27[%c0_137, %c0_138, %c0_139] : memref<2x32x32xf32, #tpu.memory_space<vmem>>, vector<1x32x32xf32>
    %203 = vector.shape_cast %202 : vector<1x32x32xf32> to vector<32x32xf32>
    %cst_140 = arith.constant dense<0.000000e+00> : vector<8x32xf32>
    %204 = tpu.matmul %201, %203, %cst_140 {dimension_numbers = #tpu.dot_dimension_numbers<[1], [0], [0], [1], [0, 0, 1, 1], [], []>} : vector<8x32xf32>, vector<32x32xf32>, vector<8x32xf32> -> vector<8x32xf32>
    %c0_141 = arith.constant 0 : index
    %c0_142 = arith.constant 0 : index
    %c0_143 = arith.constant 0 : index
    %205 = vector.load %arg28[%c0_141, %c0_142, %c0_143] : memref<2x1x32xf32, #tpu.memory_space<vmem>>, vector<1x1x32xf32>
    %206 = vector.shape_cast %205 : vector<1x1x32xf32> to vector<1x32xf32>
    %207 = vector.broadcast %206 : vector<1x32xf32> to vector<8x32xf32>
    %208 = arith.addf %204, %207 : vector<8x32xf32>
    %209 = vector.shape_cast %208 : vector<8x32xf32> to vector<2x4x32xf32>
    %210 = arith.addf %180, %209 : vector<2x4x32xf32>
    %c0_144 = arith.constant 0 : index
    %c0_145 = arith.constant 0 : index
    %c0_146 = arith.constant 0 : index
    %211 = vector.load %arg23[%c0_144, %c0_145, %c0_146] : memref<2x1x32xf32, #tpu.memory_space<vmem>>, vector<1x1x32xf32>
    %212 = vector.shape_cast %211 : vector<1x1x32xf32> to vector<1x32xf32>
    %c0_147 = arith.constant 0 : index
    %c0_148 = arith.constant 0 : index
    %c0_149 = arith.constant 0 : index
    %213 = vector.load %arg24[%c0_147, %c0_148, %c0_149] : memref<2x1x32xf32, #tpu.memory_space<vmem>>, vector<1x1x32xf32>
    %214 = vector.shape_cast %213 : vector<1x1x32xf32> to vector<1x32xf32>
    %cst_150 = arith.constant dense<0.000000e+00> : vector<2x4xf32>
    %215 = vector.multi_reduction <add>, %210, %cst_150 [2] : vector<2x4x32xf32> to vector<2x4xf32>
    %216 = vector.shape_cast %215 : vector<2x4xf32> to vector<2x4x1xf32>
    %cst_151 = arith.constant 3.200000e+01 : f32
    %217 = vector.broadcast %cst_151 : f32 to vector<2x4x1xf32>
    %218 = arith.divf %216, %217 : vector<2x4x1xf32>
    %219 = vector.broadcast %218 : vector<2x4x1xf32> to vector<2x4x32xf32>
    %220 = arith.subf %210, %219 : vector<2x4x32xf32>
    %221 = arith.mulf %220, %220 : vector<2x4x32xf32>
    %cst_152 = arith.constant dense<0.000000e+00> : vector<2x4xf32>
    %222 = vector.multi_reduction <add>, %221, %cst_152 [2] : vector<2x4x32xf32> to vector<2x4xf32>
    %223 = vector.shape_cast %222 : vector<2x4xf32> to vector<2x4x1xf32>
    %cst_153 = arith.constant 3.200000e+01 : f32
    %224 = vector.broadcast %cst_153 : f32 to vector<2x4x1xf32>
    %225 = arith.divf %223, %224 : vector<2x4x1xf32>
    %226 = vector.broadcast %218 : vector<2x4x1xf32> to vector<2x4x32xf32>
    %227 = arith.subf %210, %226 : vector<2x4x32xf32>
    %cst_154 = arith.constant 9.99999974E-6 : f32
    %228 = vector.broadcast %cst_154 : f32 to vector<2x4x1xf32>
    %229 = arith.addf %225, %228 : vector<2x4x1xf32>
    %230 = math.rsqrt %229 : vector<2x4x1xf32>
    %231 = vector.broadcast %230 : vector<2x4x1xf32> to vector<2x4x32xf32>
    %232 = arith.mulf %227, %231 : vector<2x4x32xf32>
    %233 = vector.shape_cast %212 : vector<1x32xf32> to vector<1x1x32xf32>
    %234 = vector.broadcast %233 : vector<1x1x32xf32> to vector<2x4x32xf32>
    %235 = arith.mulf %232, %234 : vector<2x4x32xf32>
    %236 = vector.shape_cast %214 : vector<1x32xf32> to vector<1x1x32xf32>
    %237 = vector.broadcast %236 : vector<1x1x32xf32> to vector<2x4x32xf32>
    %238 = arith.addf %235, %237 : vector<2x4x32xf32>
    %239 = vector.shape_cast %238 : vector<2x4x32xf32> to vector<8x32xf32>
    %cst_155 = arith.constant 0.000000e+00 : f32
    %240 = vector.broadcast %cst_155 : f32 to vector<8x32xf32>
    %c1_156 = arith.constant 1 : index
    %c0_157 = arith.constant 0 : index
    %c0_158 = arith.constant 0 : index
    %241 = vector.load %arg20[%c1_156, %c0_157, %c0_158] : memref<2x1x32xf32, #tpu.memory_space<vmem>>, vector<1x1x32xf32>
    %242 = vector.shape_cast %241 : vector<1x1x32xf32> to vector<1x32xf32>
    %243 = vector.broadcast %242 : vector<1x32xf32> to vector<8x32xf32>
    %244 = arith.addf %240, %243 : vector<8x32xf32>
    %c1_159 = arith.constant 1 : index
    %c0_160 = arith.constant 0 : index
    %c0_161 = arith.constant 0 : index
    %c0_162 = arith.constant 0 : index
    %245 = vector.load %arg13[%c1_159, %c0_160, %c0_161, %c0_162] : memref<2x2x32x16xf32, #tpu.memory_space<vmem>>, vector<1x1x32x16xf32>
    %246 = vector.shape_cast %245 : vector<1x1x32x16xf32> to vector<32x16xf32>
    %cst_163 = arith.constant dense<0.000000e+00> : vector<8x16xf32>
    %247 = tpu.matmul %239, %246, %cst_163 {dimension_numbers = #tpu.dot_dimension_numbers<[1], [0], [0], [1], [0, 0, 1, 1], [], []>} : vector<8x32xf32>, vector<32x16xf32>, vector<8x16xf32> -> vector<8x16xf32>
    %c1_164 = arith.constant 1 : index
    %c0_165 = arith.constant 0 : index
    %c0_166 = arith.constant 0 : index
    %c0_167 = arith.constant 0 : index
    %248 = vector.load %arg14[%c1_164, %c0_165, %c0_166, %c0_167] : memref<2x2x1x16xf32, #tpu.memory_space<vmem>>, vector<1x1x1x16xf32>
    %249 = vector.shape_cast %248 : vector<1x1x1x16xf32> to vector<1x16xf32>
    %250 = vector.broadcast %249 : vector<1x16xf32> to vector<8x16xf32>
    %251 = arith.addf %247, %250 : vector<8x16xf32>
    %cst_168 = arith.constant 2.500000e-01 : f32
    %252 = vector.broadcast %cst_168 : f32 to vector<8x16xf32>
    %253 = arith.mulf %251, %252 : vector<8x16xf32>
    %c1_169 = arith.constant 1 : index
    %c0_170 = arith.constant 0 : index
    %c0_171 = arith.constant 0 : index
    %c0_172 = arith.constant 0 : index
    %254 = vector.load %arg15[%c1_169, %c0_170, %c0_171, %c0_172] : memref<2x2x32x16xf32, #tpu.memory_space<vmem>>, vector<1x1x32x16xf32>
    %255 = vector.shape_cast %254 : vector<1x1x32x16xf32> to vector<32x16xf32>
    %cst_173 = arith.constant dense<0.000000e+00> : vector<8x16xf32>
    %256 = tpu.matmul %239, %255, %cst_173 {dimension_numbers = #tpu.dot_dimension_numbers<[1], [0], [0], [1], [0, 0, 1, 1], [], []>} : vector<8x32xf32>, vector<32x16xf32>, vector<8x16xf32> -> vector<8x16xf32>
    %c1_174 = arith.constant 1 : index
    %c0_175 = arith.constant 0 : index
    %c0_176 = arith.constant 0 : index
    %c0_177 = arith.constant 0 : index
    %257 = vector.load %arg16[%c1_174, %c0_175, %c0_176, %c0_177] : memref<2x2x1x16xf32, #tpu.memory_space<vmem>>, vector<1x1x1x16xf32>
    %258 = vector.shape_cast %257 : vector<1x1x1x16xf32> to vector<1x16xf32>
    %259 = vector.broadcast %258 : vector<1x16xf32> to vector<8x16xf32>
    %260 = arith.addf %256, %259 : vector<8x16xf32>
    %c1_178 = arith.constant 1 : index
    %c0_179 = arith.constant 0 : index
    %c0_180 = arith.constant 0 : index
    %c0_181 = arith.constant 0 : index
    %261 = vector.load %arg17[%c1_178, %c0_179, %c0_180, %c0_181] : memref<2x2x32x16xf32, #tpu.memory_space<vmem>>, vector<1x1x32x16xf32>
    %262 = vector.shape_cast %261 : vector<1x1x32x16xf32> to vector<32x16xf32>
    %cst_182 = arith.constant dense<0.000000e+00> : vector<8x16xf32>
    %263 = tpu.matmul %239, %262, %cst_182 {dimension_numbers = #tpu.dot_dimension_numbers<[1], [0], [0], [1], [0, 0, 1, 1], [], []>} : vector<8x32xf32>, vector<32x16xf32>, vector<8x16xf32> -> vector<8x16xf32>
    %c1_183 = arith.constant 1 : index
    %c0_184 = arith.constant 0 : index
    %c0_185 = arith.constant 0 : index
    %c0_186 = arith.constant 0 : index
    %264 = vector.load %arg18[%c1_183, %c0_184, %c0_185, %c0_186] : memref<2x2x1x16xf32, #tpu.memory_space<vmem>>, vector<1x1x1x16xf32>
    %265 = vector.shape_cast %264 : vector<1x1x1x16xf32> to vector<1x16xf32>
    %266 = vector.broadcast %265 : vector<1x16xf32> to vector<8x16xf32>
    %267 = arith.addf %263, %266 : vector<8x16xf32>
    %268 = vector.shape_cast %253 : vector<8x16xf32> to vector<2x4x16xf32>
    %269 = vector.shape_cast %260 : vector<8x16xf32> to vector<2x4x16xf32>
    %270 = vector.shape_cast %267 : vector<8x16xf32> to vector<2x4x16xf32>
    "tpu.trace_start"() <{level = 10 : i32, message = "bqd,bkd->bqk"}> : () -> ()
    %cst_187 = arith.constant dense<0.000000e+00> : vector<2x4x4xf32>
    %271 = tpu.matmul %268, %269, %cst_187 {dimension_numbers = #tpu.dot_dimension_numbers<[2], [2], [1], [1], [0, 0, 0, 1, 1, 1], [0], [0]>} : vector<2x4x16xf32>, vector<2x4x16xf32>, vector<2x4x4xf32> -> vector<2x4x4xf32>
    "tpu.trace_stop"() : () -> ()
    %cst_188 = arith.constant dense<0xFF800000> : vector<2x4xf32>
    %272 = vector.multi_reduction <maximumf>, %271, %cst_188 [2] : vector<2x4x4xf32> to vector<2x4xf32>
    %273 = vector.shape_cast %272 : vector<2x4xf32> to vector<2x4x1xf32>
    %274 = vector.broadcast %273 : vector<2x4x1xf32> to vector<2x4x4xf32>
    %275 = arith.subf %271, %274 : vector<2x4x4xf32>
    %276 = math.exp %275 : vector<2x4x4xf32>
    %cst_189 = arith.constant dense<0.000000e+00> : vector<2x4xf32>
    %277 = vector.multi_reduction <add>, %276, %cst_189 [2] : vector<2x4x4xf32> to vector<2x4xf32>
    %278 = vector.shape_cast %277 : vector<2x4xf32> to vector<2x4x1xf32>
    %279 = tpu.reciprocal %278 {approx = true} : vector<2x4x1xf32> -> vector<2x4x1xf32>
    %280 = vector.broadcast %279 : vector<2x4x1xf32> to vector<2x4x4xf32>
    %281 = arith.mulf %276, %280 : vector<2x4x4xf32>
    "tpu.trace_start"() <{level = 10 : i32, message = "bqk,bkd->bqd"}> : () -> ()
    %cst_190 = arith.constant dense<0.000000e+00> : vector<2x4x16xf32>
    %282 = tpu.matmul %281, %270, %cst_190 {dimension_numbers = #tpu.dot_dimension_numbers<[2], [1], [1], [2], [0, 0, 0, 1, 1, 2], [0], [0]>} : vector<2x4x4xf32>, vector<2x4x16xf32>, vector<2x4x16xf32> -> vector<2x4x16xf32>
    "tpu.trace_stop"() : () -> ()
    %283 = vector.shape_cast %282 : vector<2x4x16xf32> to vector<8x16xf32>
    %c1_191 = arith.constant 1 : index
    %c0_192 = arith.constant 0 : index
    %c0_193 = arith.constant 0 : index
    %c0_194 = arith.constant 0 : index
    %284 = vector.load %arg19[%c1_191, %c0_192, %c0_193, %c0_194] : memref<2x2x16x32xf32, #tpu.memory_space<vmem>>, vector<1x1x16x32xf32>
    %285 = vector.shape_cast %284 : vector<1x1x16x32xf32> to vector<16x32xf32>
    %cst_195 = arith.constant dense<0.000000e+00> : vector<8x32xf32>
    %286 = tpu.matmul %283, %285, %cst_195 {dimension_numbers = #tpu.dot_dimension_numbers<[1], [0], [0], [1], [0, 0, 1, 1], [], []>} : vector<8x16xf32>, vector<16x32xf32>, vector<8x32xf32> -> vector<8x32xf32>
    %287 = arith.addf %244, %286 : vector<8x32xf32>
    %c1_196 = arith.constant 1 : index
    %c1_197 = arith.constant 1 : index
    %c0_198 = arith.constant 0 : index
    %c0_199 = arith.constant 0 : index
    %288 = vector.load %arg13[%c1_196, %c1_197, %c0_198, %c0_199] : memref<2x2x32x16xf32, #tpu.memory_space<vmem>>, vector<1x1x32x16xf32>
    %289 = vector.shape_cast %288 : vector<1x1x32x16xf32> to vector<32x16xf32>
    %cst_200 = arith.constant dense<0.000000e+00> : vector<8x16xf32>
    %290 = tpu.matmul %239, %289, %cst_200 {dimension_numbers = #tpu.dot_dimension_numbers<[1], [0], [0], [1], [0, 0, 1, 1], [], []>} : vector<8x32xf32>, vector<32x16xf32>, vector<8x16xf32> -> vector<8x16xf32>
    %c1_201 = arith.constant 1 : index
    %c1_202 = arith.constant 1 : index
    %c0_203 = arith.constant 0 : index
    %c0_204 = arith.constant 0 : index
    %291 = vector.load %arg14[%c1_201, %c1_202, %c0_203, %c0_204] : memref<2x2x1x16xf32, #tpu.memory_space<vmem>>, vector<1x1x1x16xf32>
    %292 = vector.shape_cast %291 : vector<1x1x1x16xf32> to vector<1x16xf32>
    %293 = vector.broadcast %292 : vector<1x16xf32> to vector<8x16xf32>
    %294 = arith.addf %290, %293 : vector<8x16xf32>
    %cst_205 = arith.constant 2.500000e-01 : f32
    %295 = vector.broadcast %cst_205 : f32 to vector<8x16xf32>
    %296 = arith.mulf %294, %295 : vector<8x16xf32>
    %c1_206 = arith.constant 1 : index
    %c1_207 = arith.constant 1 : index
    %c0_208 = arith.constant 0 : index
    %c0_209 = arith.constant 0 : index
    %297 = vector.load %arg15[%c1_206, %c1_207, %c0_208, %c0_209] : memref<2x2x32x16xf32, #tpu.memory_space<vmem>>, vector<1x1x32x16xf32>
    %298 = vector.shape_cast %297 : vector<1x1x32x16xf32> to vector<32x16xf32>
    %cst_210 = arith.constant dense<0.000000e+00> : vector<8x16xf32>
    %299 = tpu.matmul %239, %298, %cst_210 {dimension_numbers = #tpu.dot_dimension_numbers<[1], [0], [0], [1], [0, 0, 1, 1], [], []>} : vector<8x32xf32>, vector<32x16xf32>, vector<8x16xf32> -> vector<8x16xf32>
    %c1_211 = arith.constant 1 : index
    %c1_212 = arith.constant 1 : index
    %c0_213 = arith.constant 0 : index
    %c0_214 = arith.constant 0 : index
    %300 = vector.load %arg16[%c1_211, %c1_212, %c0_213, %c0_214] : memref<2x2x1x16xf32, #tpu.memory_space<vmem>>, vector<1x1x1x16xf32>
    %301 = vector.shape_cast %300 : vector<1x1x1x16xf32> to vector<1x16xf32>
    %302 = vector.broadcast %301 : vector<1x16xf32> to vector<8x16xf32>
    %303 = arith.addf %299, %302 : vector<8x16xf32>
    %c1_215 = arith.constant 1 : index
    %c1_216 = arith.constant 1 : index
    %c0_217 = arith.constant 0 : index
    %c0_218 = arith.constant 0 : index
    %304 = vector.load %arg17[%c1_215, %c1_216, %c0_217, %c0_218] : memref<2x2x32x16xf32, #tpu.memory_space<vmem>>, vector<1x1x32x16xf32>
    %305 = vector.shape_cast %304 : vector<1x1x32x16xf32> to vector<32x16xf32>
    %cst_219 = arith.constant dense<0.000000e+00> : vector<8x16xf32>
    %306 = tpu.matmul %239, %305, %cst_219 {dimension_numbers = #tpu.dot_dimension_numbers<[1], [0], [0], [1], [0, 0, 1, 1], [], []>} : vector<8x32xf32>, vector<32x16xf32>, vector<8x16xf32> -> vector<8x16xf32>
    %c1_220 = arith.constant 1 : index
    %c1_221 = arith.constant 1 : index
    %c0_222 = arith.constant 0 : index
    %c0_223 = arith.constant 0 : index
    %307 = vector.load %arg18[%c1_220, %c1_221, %c0_222, %c0_223] : memref<2x2x1x16xf32, #tpu.memory_space<vmem>>, vector<1x1x1x16xf32>
    %308 = vector.shape_cast %307 : vector<1x1x1x16xf32> to vector<1x16xf32>
    %309 = vector.broadcast %308 : vector<1x16xf32> to vector<8x16xf32>
    %310 = arith.addf %306, %309 : vector<8x16xf32>
    %311 = vector.shape_cast %296 : vector<8x16xf32> to vector<2x4x16xf32>
    %312 = vector.shape_cast %303 : vector<8x16xf32> to vector<2x4x16xf32>
    %313 = vector.shape_cast %310 : vector<8x16xf32> to vector<2x4x16xf32>
    "tpu.trace_start"() <{level = 10 : i32, message = "bqd,bkd->bqk"}> : () -> ()
    %cst_224 = arith.constant dense<0.000000e+00> : vector<2x4x4xf32>
    %314 = tpu.matmul %311, %312, %cst_224 {dimension_numbers = #tpu.dot_dimension_numbers<[2], [2], [1], [1], [0, 0, 0, 1, 1, 1], [0], [0]>} : vector<2x4x16xf32>, vector<2x4x16xf32>, vector<2x4x4xf32> -> vector<2x4x4xf32>
    "tpu.trace_stop"() : () -> ()
    %cst_225 = arith.constant dense<0xFF800000> : vector<2x4xf32>
    %315 = vector.multi_reduction <maximumf>, %314, %cst_225 [2] : vector<2x4x4xf32> to vector<2x4xf32>
    %316 = vector.shape_cast %315 : vector<2x4xf32> to vector<2x4x1xf32>
    %317 = vector.broadcast %316 : vector<2x4x1xf32> to vector<2x4x4xf32>
    %318 = arith.subf %314, %317 : vector<2x4x4xf32>
    %319 = math.exp %318 : vector<2x4x4xf32>
    %cst_226 = arith.constant dense<0.000000e+00> : vector<2x4xf32>
    %320 = vector.multi_reduction <add>, %319, %cst_226 [2] : vector<2x4x4xf32> to vector<2x4xf32>
    %321 = vector.shape_cast %320 : vector<2x4xf32> to vector<2x4x1xf32>
    %322 = tpu.reciprocal %321 {approx = true} : vector<2x4x1xf32> -> vector<2x4x1xf32>
    %323 = vector.broadcast %322 : vector<2x4x1xf32> to vector<2x4x4xf32>
    %324 = arith.mulf %319, %323 : vector<2x4x4xf32>
    "tpu.trace_start"() <{level = 10 : i32, message = "bqk,bkd->bqd"}> : () -> ()
    %cst_227 = arith.constant dense<0.000000e+00> : vector<2x4x16xf32>
    %325 = tpu.matmul %324, %313, %cst_227 {dimension_numbers = #tpu.dot_dimension_numbers<[2], [1], [1], [2], [0, 0, 0, 1, 1, 2], [0], [0]>} : vector<2x4x4xf32>, vector<2x4x16xf32>, vector<2x4x16xf32> -> vector<2x4x16xf32>
    "tpu.trace_stop"() : () -> ()
    %326 = vector.shape_cast %325 : vector<2x4x16xf32> to vector<8x16xf32>
    %c1_228 = arith.constant 1 : index
    %c1_229 = arith.constant 1 : index
    %c0_230 = arith.constant 0 : index
    %c0_231 = arith.constant 0 : index
    %327 = vector.load %arg19[%c1_228, %c1_229, %c0_230, %c0_231] : memref<2x2x16x32xf32, #tpu.memory_space<vmem>>, vector<1x1x16x32xf32>
    %328 = vector.shape_cast %327 : vector<1x1x16x32xf32> to vector<16x32xf32>
    %cst_232 = arith.constant dense<0.000000e+00> : vector<8x32xf32>
    %329 = tpu.matmul %326, %328, %cst_232 {dimension_numbers = #tpu.dot_dimension_numbers<[1], [0], [0], [1], [0, 0, 1, 1], [], []>} : vector<8x16xf32>, vector<16x32xf32>, vector<8x32xf32> -> vector<8x32xf32>
    %330 = arith.addf %287, %329 : vector<8x32xf32>
    %331 = vector.shape_cast %330 : vector<8x32xf32> to vector<2x4x32xf32>
    %332 = arith.addf %238, %331 : vector<2x4x32xf32>
    %c1_233 = arith.constant 1 : index
    %c0_234 = arith.constant 0 : index
    %c0_235 = arith.constant 0 : index
    %333 = vector.load %arg21[%c1_233, %c0_234, %c0_235] : memref<2x1x32xf32, #tpu.memory_space<vmem>>, vector<1x1x32xf32>
    %334 = vector.shape_cast %333 : vector<1x1x32xf32> to vector<1x32xf32>
    %c1_236 = arith.constant 1 : index
    %c0_237 = arith.constant 0 : index
    %c0_238 = arith.constant 0 : index
    %335 = vector.load %arg22[%c1_236, %c0_237, %c0_238] : memref<2x1x32xf32, #tpu.memory_space<vmem>>, vector<1x1x32xf32>
    %336 = vector.shape_cast %335 : vector<1x1x32xf32> to vector<1x32xf32>
    %cst_239 = arith.constant dense<0.000000e+00> : vector<2x4xf32>
    %337 = vector.multi_reduction <add>, %332, %cst_239 [2] : vector<2x4x32xf32> to vector<2x4xf32>
    %338 = vector.shape_cast %337 : vector<2x4xf32> to vector<2x4x1xf32>
    %cst_240 = arith.constant 3.200000e+01 : f32
    %339 = vector.broadcast %cst_240 : f32 to vector<2x4x1xf32>
    %340 = arith.divf %338, %339 : vector<2x4x1xf32>
    %341 = vector.broadcast %340 : vector<2x4x1xf32> to vector<2x4x32xf32>
    %342 = arith.subf %332, %341 : vector<2x4x32xf32>
    %343 = arith.mulf %342, %342 : vector<2x4x32xf32>
    %cst_241 = arith.constant dense<0.000000e+00> : vector<2x4xf32>
    %344 = vector.multi_reduction <add>, %343, %cst_241 [2] : vector<2x4x32xf32> to vector<2x4xf32>
    %345 = vector.shape_cast %344 : vector<2x4xf32> to vector<2x4x1xf32>
    %cst_242 = arith.constant 3.200000e+01 : f32
    %346 = vector.broadcast %cst_242 : f32 to vector<2x4x1xf32>
    %347 = arith.divf %345, %346 : vector<2x4x1xf32>
    %348 = vector.broadcast %340 : vector<2x4x1xf32> to vector<2x4x32xf32>
    %349 = arith.subf %332, %348 : vector<2x4x32xf32>
    %cst_243 = arith.constant 9.99999974E-6 : f32
    %350 = vector.broadcast %cst_243 : f32 to vector<2x4x1xf32>
    %351 = arith.addf %347, %350 : vector<2x4x1xf32>
    %352 = math.rsqrt %351 : vector<2x4x1xf32>
    %353 = vector.broadcast %352 : vector<2x4x1xf32> to vector<2x4x32xf32>
    %354 = arith.mulf %349, %353 : vector<2x4x32xf32>
    %355 = vector.shape_cast %334 : vector<1x32xf32> to vector<1x1x32xf32>
    %356 = vector.broadcast %355 : vector<1x1x32xf32> to vector<2x4x32xf32>
    %357 = arith.mulf %354, %356 : vector<2x4x32xf32>
    %358 = vector.shape_cast %336 : vector<1x32xf32> to vector<1x1x32xf32>
    %359 = vector.broadcast %358 : vector<1x1x32xf32> to vector<2x4x32xf32>
    %360 = arith.addf %357, %359 : vector<2x4x32xf32>
    %361 = vector.shape_cast %360 : vector<2x4x32xf32> to vector<8x32xf32>
    %c1_244 = arith.constant 1 : index
    %c0_245 = arith.constant 0 : index
    %c0_246 = arith.constant 0 : index
    %362 = vector.load %arg25[%c1_244, %c0_245, %c0_246] : memref<2x32x32xf32, #tpu.memory_space<vmem>>, vector<1x32x32xf32>
    %363 = vector.shape_cast %362 : vector<1x32x32xf32> to vector<32x32xf32>
    %cst_247 = arith.constant dense<0.000000e+00> : vector<8x32xf32>
    %364 = tpu.matmul %361, %363, %cst_247 {dimension_numbers = #tpu.dot_dimension_numbers<[1], [0], [0], [1], [0, 0, 1, 1], [], []>} : vector<8x32xf32>, vector<32x32xf32>, vector<8x32xf32> -> vector<8x32xf32>
    %c1_248 = arith.constant 1 : index
    %c0_249 = arith.constant 0 : index
    %c0_250 = arith.constant 0 : index
    %365 = vector.load %arg26[%c1_248, %c0_249, %c0_250] : memref<2x1x32xf32, #tpu.memory_space<vmem>>, vector<1x1x32xf32>
    %366 = vector.shape_cast %365 : vector<1x1x32xf32> to vector<1x32xf32>
    %367 = vector.broadcast %366 : vector<1x32xf32> to vector<8x32xf32>
    %368 = arith.addf %364, %367 : vector<8x32xf32>
    %cst_251 = arith.constant 5.000000e-01 : f32
    %369 = vector.broadcast %cst_251 : f32 to vector<8x32xf32>
    %370 = arith.mulf %369, %368 : vector<8x32xf32>
    %cst_252 = arith.constant 4.471500e-02 : f32
    %371 = vector.broadcast %cst_252 : f32 to vector<8x32xf32>
    %372 = arith.mulf %371, %368 : vector<8x32xf32>
    %373 = arith.mulf %372, %368 : vector<8x32xf32>
    %374 = arith.mulf %373, %368 : vector<8x32xf32>
    %375 = arith.addf %368, %374 : vector<8x32xf32>
    %cst_253 = arith.constant 0.797884583 : f32
    %376 = vector.broadcast %cst_253 : f32 to vector<8x32xf32>
    %377 = arith.mulf %376, %375 : vector<8x32xf32>
    %378 = math.tanh %377 : vector<8x32xf32>
    %cst_254 = arith.constant 1.000000e+00 : f32
    %379 = vector.broadcast %cst_254 : f32 to vector<8x32xf32>
    %380 = arith.addf %379, %378 : vector<8x32xf32>
    %381 = arith.mulf %370, %380 : vector<8x32xf32>
    %c1_255 = arith.constant 1 : index
    %c0_256 = arith.constant 0 : index
    %c0_257 = arith.constant 0 : index
    %382 = vector.load %arg27[%c1_255, %c0_256, %c0_257] : memref<2x32x32xf32, #tpu.memory_space<vmem>>, vector<1x32x32xf32>
    %383 = vector.shape_cast %382 : vector<1x32x32xf32> to vector<32x32xf32>
    %cst_258 = arith.constant dense<0.000000e+00> : vector<8x32xf32>
    %384 = tpu.matmul %381, %383, %cst_258 {dimension_numbers = #tpu.dot_dimension_numbers<[1], [0], [0], [1], [0, 0, 1, 1], [], []>} : vector<8x32xf32>, vector<32x32xf32>, vector<8x32xf32> -> vector<8x32xf32>
    %c1_259 = arith.constant 1 : index
    %c0_260 = arith.constant 0 : index
    %c0_261 = arith.constant 0 : index
    %385 = vector.load %arg28[%c1_259, %c0_260, %c0_261] : memref<2x1x32xf32, #tpu.memory_space<vmem>>, vector<1x1x32xf32>
    %386 = vector.shape_cast %385 : vector<1x1x32xf32> to vector<1x32xf32>
    %387 = vector.broadcast %386 : vector<1x32xf32> to vector<8x32xf32>
    %388 = arith.addf %384, %387 : vector<8x32xf32>
    %389 = vector.shape_cast %388 : vector<8x32xf32> to vector<2x4x32xf32>
    %390 = arith.addf %360, %389 : vector<2x4x32xf32>
    %c1_262 = arith.constant 1 : index
    %c0_263 = arith.constant 0 : index
    %c0_264 = arith.constant 0 : index
    %391 = vector.load %arg23[%c1_262, %c0_263, %c0_264] : memref<2x1x32xf32, #tpu.memory_space<vmem>>, vector<1x1x32xf32>
    %392 = vector.shape_cast %391 : vector<1x1x32xf32> to vector<1x32xf32>
    %c1_265 = arith.constant 1 : index
    %c0_266 = arith.constant 0 : index
    %c0_267 = arith.constant 0 : index
    %393 = vector.load %arg24[%c1_265, %c0_266, %c0_267] : memref<2x1x32xf32, #tpu.memory_space<vmem>>, vector<1x1x32xf32>
    %394 = vector.shape_cast %393 : vector<1x1x32xf32> to vector<1x32xf32>
    %cst_268 = arith.constant dense<0.000000e+00> : vector<2x4xf32>
    %395 = vector.multi_reduction <add>, %390, %cst_268 [2] : vector<2x4x32xf32> to vector<2x4xf32>
    %396 = vector.shape_cast %395 : vector<2x4xf32> to vector<2x4x1xf32>
    %cst_269 = arith.constant 3.200000e+01 : f32
    %397 = vector.broadcast %cst_269 : f32 to vector<2x4x1xf32>
    %398 = arith.divf %396, %397 : vector<2x4x1xf32>
    %399 = vector.broadcast %398 : vector<2x4x1xf32> to vector<2x4x32xf32>
    %400 = arith.subf %390, %399 : vector<2x4x32xf32>
    %401 = arith.mulf %400, %400 : vector<2x4x32xf32>
    %cst_270 = arith.constant dense<0.000000e+00> : vector<2x4xf32>
    %402 = vector.multi_reduction <add>, %401, %cst_270 [2] : vector<2x4x32xf32> to vector<2x4xf32>
    %403 = vector.shape_cast %402 : vector<2x4xf32> to vector<2x4x1xf32>
    %cst_271 = arith.constant 3.200000e+01 : f32
    %404 = vector.broadcast %cst_271 : f32 to vector<2x4x1xf32>
    %405 = arith.divf %403, %404 : vector<2x4x1xf32>
    %406 = vector.broadcast %398 : vector<2x4x1xf32> to vector<2x4x32xf32>
    %407 = arith.subf %390, %406 : vector<2x4x32xf32>
    %cst_272 = arith.constant 9.99999974E-6 : f32
    %408 = vector.broadcast %cst_272 : f32 to vector<2x4x1xf32>
    %409 = arith.addf %405, %408 : vector<2x4x1xf32>
    %410 = math.rsqrt %409 : vector<2x4x1xf32>
    %411 = vector.broadcast %410 : vector<2x4x1xf32> to vector<2x4x32xf32>
    %412 = arith.mulf %407, %411 : vector<2x4x32xf32>
    %413 = vector.shape_cast %392 : vector<1x32xf32> to vector<1x1x32xf32>
    %414 = vector.broadcast %413 : vector<1x1x32xf32> to vector<2x4x32xf32>
    %415 = arith.mulf %412, %414 : vector<2x4x32xf32>
    %416 = vector.shape_cast %394 : vector<1x32xf32> to vector<1x1x32xf32>
    %417 = vector.broadcast %416 : vector<1x1x32xf32> to vector<2x4x32xf32>
    %418 = arith.addf %415, %417 : vector<2x4x32xf32>
    %419 = vector.shape_cast %418 : vector<2x4x32xf32> to vector<2x2x2x32xf32>
    %420 = vector.extract_strided_slice %419 {offsets = [0, 0, 0, 0], sizes = [2, 2, 1, 32], strides = [1, 1, 1, 1]} : vector<2x2x2x32xf32> to vector<2x2x1x32xf32>
    %421 = vector.shape_cast %420 : vector<2x2x1x32xf32> to vector<2x2x32xf32>
    %c0_273 = arith.constant 0 : index
    %c0_274 = arith.constant 0 : index
    %c0_275 = arith.constant 0 : index
    %c0_276 = arith.constant 0 : index
    %422 = vector.load %arg29[%c0_273, %c0_274, %c0_275, %c0_276] : memref<2x2x2x32xf32, #tpu.memory_space<vmem>>, vector<1x2x2x32xf32>
    %423 = vector.shape_cast %422 : vector<1x2x2x32xf32> to vector<2x2x32xf32>
    %424 = vector.shape_cast %421 : vector<2x2x32xf32> to vector<1x2x2x32xf32>
    tpu.vector_store %arg29[%c0_273, %c0_274, %c0_275, %c0_276], %424 {strides = array<i32>} : memref<2x2x2x32xf32, #tpu.memory_space<vmem>>, vector<1x2x2x32xf32>,
    %425 = vector.shape_cast %421 : vector<2x2x32xf32> to vector<4x32xf32>
    %c1_277 = arith.constant 1 : index
    %c0_278 = arith.constant 0 : index
    %c0_279 = arith.constant 0 : index
    %c0_280 = arith.constant 0 : index
    %426 = vector.load %arg5[%c1_277, %c0_278, %c0_279, %c0_280] : memref<2x2x2x5xf32, #tpu.memory_space<vmem>>, vector<1x2x2x5xf32>
    %427 = vector.shape_cast %426 : vector<1x2x2x5xf32> to vector<2x2x5xf32>
    %428 = vector.shape_cast %427 : vector<2x2x5xf32> to vector<4x5xf32>
    %c1_281 = arith.constant 1 : index
    %c0_282 = arith.constant 0 : index
    %c0_283 = arith.constant 0 : index
    %c0_284 = arith.constant 0 : index
    %429 = vector.load %arg6[%c1_281, %c0_282, %c0_283, %c0_284] : memref<2x2x2x10xf32, #tpu.memory_space<vmem>>, vector<1x2x2x10xf32>
    %430 = vector.shape_cast %429 : vector<1x2x2x10xf32> to vector<2x2x10xf32>
    %431 = vector.shape_cast %430 : vector<2x2x10xf32> to vector<4x10xf32>
    %c0_285 = arith.constant 0 : index
    %c0_286 = arith.constant 0 : index
    %432 = vector.load %arg7[%c0_285, %c0_286] : memref<5x32xf32, #tpu.memory_space<vmem>>, vector<5x32xf32>
    %cst_287 = arith.constant dense<0.000000e+00> : vector<4x32xf32>
    %433 = tpu.matmul %428, %432, %cst_287 {dimension_numbers = #tpu.dot_dimension_numbers<[1], [0], [0], [1], [0, 0, 1, 1], [], []>} : vector<4x5xf32>, vector<5x32xf32>, vector<4x32xf32> -> vector<4x32xf32>
    %c0_288 = arith.constant 0 : index
    %c0_289 = arith.constant 0 : index
    %434 = vector.load %arg8[%c0_288, %c0_289] : memref<32x32xf32, #tpu.memory_space<vmem>>, vector<32x32xf32>
    %cst_290 = arith.constant dense<0.000000e+00> : vector<4x32xf32>
    %435 = tpu.matmul %425, %434, %cst_290 {dimension_numbers = #tpu.dot_dimension_numbers<[1], [0], [0], [1], [0, 0, 1, 1], [], []>} : vector<4x32xf32>, vector<32x32xf32>, vector<4x32xf32> -> vector<4x32xf32>
    %436 = arith.addf %433, %435 : vector<4x32xf32>
    %c0_291 = arith.constant 0 : index
    %c0_292 = arith.constant 0 : index
    %437 = vector.load %arg9[%c0_291, %c0_292] : memref<10x32xf32, #tpu.memory_space<vmem>>, vector<10x32xf32>
    %cst_293 = arith.constant dense<0.000000e+00> : vector<4x32xf32>
    %438 = tpu.matmul %431, %437, %cst_293 {dimension_numbers = #tpu.dot_dimension_numbers<[1], [0], [0], [1], [0, 0, 1, 1], [], []>} : vector<4x10xf32>, vector<10x32xf32>, vector<4x32xf32> -> vector<4x32xf32>
    %439 = arith.addf %436, %438 : vector<4x32xf32>
    %c0_294 = arith.constant 0 : index
    %c0_295 = arith.constant 0 : index
    %440 = vector.load %arg10[%c0_294, %c0_295] : memref<1x32xf32, #tpu.memory_space<vmem>>, vector<1x32xf32>
    %441 = vector.broadcast %440 : vector<1x32xf32> to vector<4x32xf32>
    %442 = arith.addf %439, %441 : vector<4x32xf32>
    %443 = vector.shape_cast %425 : vector<4x32xf32> to vector<2x2x32xf32>
    %444 = vector.shape_cast %442 : vector<4x32xf32> to vector<2x2x32xf32>
    %445 = vector.shape_cast %443 : vector<2x2x32xf32> to vector<2x2x1x32xf32>
    %446 = vector.shape_cast %444 : vector<2x2x32xf32> to vector<2x2x1x32xf32>
    %447 = tpu.concatenate %445, %446 in 2 : vector<2x2x1x32xf32>, vector<2x2x1x32xf32> -> vector<2x2x2x32xf32>
    %448 = vector.shape_cast %447 : vector<2x2x2x32xf32> to vector<2x4x32xf32>
    %c0_296 = arith.constant 0 : index
    %c0_297 = arith.constant 0 : index
    %449 = vector.load %arg11[%c0_296, %c0_297] : memref<1x32xf32, #tpu.memory_space<vmem>>, vector<1x32xf32>
    %c0_298 = arith.constant 0 : index
    %c0_299 = arith.constant 0 : index
    %450 = vector.load %arg12[%c0_298, %c0_299] : memref<1x32xf32, #tpu.memory_space<vmem>>, vector<1x32xf32>
    %cst_300 = arith.constant dense<0.000000e+00> : vector<2x4xf32>
    %451 = vector.multi_reduction <add>, %448, %cst_300 [2] : vector<2x4x32xf32> to vector<2x4xf32>
    %452 = vector.shape_cast %451 : vector<2x4xf32> to vector<2x4x1xf32>
    %cst_301 = arith.constant 3.200000e+01 : f32
    %453 = vector.broadcast %cst_301 : f32 to vector<2x4x1xf32>
    %454 = arith.divf %452, %453 : vector<2x4x1xf32>
    %455 = vector.broadcast %454 : vector<2x4x1xf32> to vector<2x4x32xf32>
    %456 = arith.subf %448, %455 : vector<2x4x32xf32>
    %457 = arith.mulf %456, %456 : vector<2x4x32xf32>
    %cst_302 = arith.constant dense<0.000000e+00> : vector<2x4xf32>
    %458 = vector.multi_reduction <add>, %457, %cst_302 [2] : vector<2x4x32xf32> to vector<2x4xf32>
    %459 = vector.shape_cast %458 : vector<2x4xf32> to vector<2x4x1xf32>
    %cst_303 = arith.constant 3.200000e+01 : f32
    %460 = vector.broadcast %cst_303 : f32 to vector<2x4x1xf32>
    %461 = arith.divf %459, %460 : vector<2x4x1xf32>
    %462 = vector.broadcast %454 : vector<2x4x1xf32> to vector<2x4x32xf32>
    %463 = arith.subf %448, %462 : vector<2x4x32xf32>
    %cst_304 = arith.constant 9.99999974E-6 : f32
    %464 = vector.broadcast %cst_304 : f32 to vector<2x4x1xf32>
    %465 = arith.addf %461, %464 : vector<2x4x1xf32>
    %466 = math.rsqrt %465 : vector<2x4x1xf32>
    %467 = vector.broadcast %466 : vector<2x4x1xf32> to vector<2x4x32xf32>
    %468 = arith.mulf %463, %467 : vector<2x4x32xf32>
    %469 = vector.shape_cast %449 : vector<1x32xf32> to vector<1x1x32xf32>
    %470 = vector.broadcast %469 : vector<1x1x32xf32> to vector<2x4x32xf32>
    %471 = arith.mulf %468, %470 : vector<2x4x32xf32>
    %472 = vector.shape_cast %450 : vector<1x32xf32> to vector<1x1x32xf32>
    %473 = vector.broadcast %472 : vector<1x1x32xf32> to vector<2x4x32xf32>
    %474 = arith.addf %471, %473 : vector<2x4x32xf32>
    %475 = vector.shape_cast %474 : vector<2x4x32xf32> to vector<8x32xf32>
    %cst_305 = arith.constant 0.000000e+00 : f32
    %476 = vector.broadcast %cst_305 : f32 to vector<8x32xf32>
    %c0_306 = arith.constant 0 : index
    %c0_307 = arith.constant 0 : index
    %c0_308 = arith.constant 0 : index
    %477 = vector.load %arg20[%c0_306, %c0_307, %c0_308] : memref<2x1x32xf32, #tpu.memory_space<vmem>>, vector<1x1x32xf32>
    %478 = vector.shape_cast %477 : vector<1x1x32xf32> to vector<1x32xf32>
    %479 = vector.broadcast %478 : vector<1x32xf32> to vector<8x32xf32>
    %480 = arith.addf %476, %479 : vector<8x32xf32>
    %c0_309 = arith.constant 0 : index
    %c0_310 = arith.constant 0 : index
    %c0_311 = arith.constant 0 : index
    %c0_312 = arith.constant 0 : index
    %481 = vector.load %arg13[%c0_309, %c0_310, %c0_311, %c0_312] : memref<2x2x32x16xf32, #tpu.memory_space<vmem>>, vector<1x1x32x16xf32>
    %482 = vector.shape_cast %481 : vector<1x1x32x16xf32> to vector<32x16xf32>
    %cst_313 = arith.constant dense<0.000000e+00> : vector<8x16xf32>
    %483 = tpu.matmul %475, %482, %cst_313 {dimension_numbers = #tpu.dot_dimension_numbers<[1], [0], [0], [1], [0, 0, 1, 1], [], []>} : vector<8x32xf32>, vector<32x16xf32>, vector<8x16xf32> -> vector<8x16xf32>
    %c0_314 = arith.constant 0 : index
    %c0_315 = arith.constant 0 : index
    %c0_316 = arith.constant 0 : index
    %c0_317 = arith.constant 0 : index
    %484 = vector.load %arg14[%c0_314, %c0_315, %c0_316, %c0_317] : memref<2x2x1x16xf32, #tpu.memory_space<vmem>>, vector<1x1x1x16xf32>
    %485 = vector.shape_cast %484 : vector<1x1x1x16xf32> to vector<1x16xf32>
    %486 = vector.broadcast %485 : vector<1x16xf32> to vector<8x16xf32>
    %487 = arith.addf %483, %486 : vector<8x16xf32>
    %cst_318 = arith.constant 2.500000e-01 : f32
    %488 = vector.broadcast %cst_318 : f32 to vector<8x16xf32>
    %489 = arith.mulf %487, %488 : vector<8x16xf32>
    %c0_319 = arith.constant 0 : index
    %c0_320 = arith.constant 0 : index
    %c0_321 = arith.constant 0 : index
    %c0_322 = arith.constant 0 : index
    %490 = vector.load %arg15[%c0_319, %c0_320, %c0_321, %c0_322] : memref<2x2x32x16xf32, #tpu.memory_space<vmem>>, vector<1x1x32x16xf32>
    %491 = vector.shape_cast %490 : vector<1x1x32x16xf32> to vector<32x16xf32>
    %cst_323 = arith.constant dense<0.000000e+00> : vector<8x16xf32>
    %492 = tpu.matmul %475, %491, %cst_323 {dimension_numbers = #tpu.dot_dimension_numbers<[1], [0], [0], [1], [0, 0, 1, 1], [], []>} : vector<8x32xf32>, vector<32x16xf32>, vector<8x16xf32> -> vector<8x16xf32>
    %c0_324 = arith.constant 0 : index
    %c0_325 = arith.constant 0 : index
    %c0_326 = arith.constant 0 : index
    %c0_327 = arith.constant 0 : index
    %493 = vector.load %arg16[%c0_324, %c0_325, %c0_326, %c0_327] : memref<2x2x1x16xf32, #tpu.memory_space<vmem>>, vector<1x1x1x16xf32>
    %494 = vector.shape_cast %493 : vector<1x1x1x16xf32> to vector<1x16xf32>
    %495 = vector.broadcast %494 : vector<1x16xf32> to vector<8x16xf32>
    %496 = arith.addf %492, %495 : vector<8x16xf32>
    %c0_328 = arith.constant 0 : index
    %c0_329 = arith.constant 0 : index
    %c0_330 = arith.constant 0 : index
    %c0_331 = arith.constant 0 : index
    %497 = vector.load %arg17[%c0_328, %c0_329, %c0_330, %c0_331] : memref<2x2x32x16xf32, #tpu.memory_space<vmem>>, vector<1x1x32x16xf32>
    %498 = vector.shape_cast %497 : vector<1x1x32x16xf32> to vector<32x16xf32>
    %cst_332 = arith.constant dense<0.000000e+00> : vector<8x16xf32>
    %499 = tpu.matmul %475, %498, %cst_332 {dimension_numbers = #tpu.dot_dimension_numbers<[1], [0], [0], [1], [0, 0, 1, 1], [], []>} : vector<8x32xf32>, vector<32x16xf32>, vector<8x16xf32> -> vector<8x16xf32>
    %c0_333 = arith.constant 0 : index
    %c0_334 = arith.constant 0 : index
    %c0_335 = arith.constant 0 : index
    %c0_336 = arith.constant 0 : index
    %500 = vector.load %arg18[%c0_333, %c0_334, %c0_335, %c0_336] : memref<2x2x1x16xf32, #tpu.memory_space<vmem>>, vector<1x1x1x16xf32>
    %501 = vector.shape_cast %500 : vector<1x1x1x16xf32> to vector<1x16xf32>
    %502 = vector.broadcast %501 : vector<1x16xf32> to vector<8x16xf32>
    %503 = arith.addf %499, %502 : vector<8x16xf32>
    %504 = vector.shape_cast %489 : vector<8x16xf32> to vector<2x4x16xf32>
    %505 = vector.shape_cast %496 : vector<8x16xf32> to vector<2x4x16xf32>
    %506 = vector.shape_cast %503 : vector<8x16xf32> to vector<2x4x16xf32>
    "tpu.trace_start"() <{level = 10 : i32, message = "bqd,bkd->bqk"}> : () -> ()
    %cst_337 = arith.constant dense<0.000000e+00> : vector<2x4x4xf32>
    %507 = tpu.matmul %504, %505, %cst_337 {dimension_numbers = #tpu.dot_dimension_numbers<[2], [2], [1], [1], [0, 0, 0, 1, 1, 1], [0], [0]>} : vector<2x4x16xf32>, vector<2x4x16xf32>, vector<2x4x4xf32> -> vector<2x4x4xf32>
    "tpu.trace_stop"() : () -> ()
    %cst_338 = arith.constant dense<0xFF800000> : vector<2x4xf32>
    %508 = vector.multi_reduction <maximumf>, %507, %cst_338 [2] : vector<2x4x4xf32> to vector<2x4xf32>
    %509 = vector.shape_cast %508 : vector<2x4xf32> to vector<2x4x1xf32>
    %510 = vector.broadcast %509 : vector<2x4x1xf32> to vector<2x4x4xf32>
    %511 = arith.subf %507, %510 : vector<2x4x4xf32>
    %512 = math.exp %511 : vector<2x4x4xf32>
    %cst_339 = arith.constant dense<0.000000e+00> : vector<2x4xf32>
    %513 = vector.multi_reduction <add>, %512, %cst_339 [2] : vector<2x4x4xf32> to vector<2x4xf32>
    %514 = vector.shape_cast %513 : vector<2x4xf32> to vector<2x4x1xf32>
    %515 = tpu.reciprocal %514 {approx = true} : vector<2x4x1xf32> -> vector<2x4x1xf32>
    %516 = vector.broadcast %515 : vector<2x4x1xf32> to vector<2x4x4xf32>
    %517 = arith.mulf %512, %516 : vector<2x4x4xf32>
    "tpu.trace_start"() <{level = 10 : i32, message = "bqk,bkd->bqd"}> : () -> ()
    %cst_340 = arith.constant dense<0.000000e+00> : vector<2x4x16xf32>
    %518 = tpu.matmul %517, %506, %cst_340 {dimension_numbers = #tpu.dot_dimension_numbers<[2], [1], [1], [2], [0, 0, 0, 1, 1, 2], [0], [0]>} : vector<2x4x4xf32>, vector<2x4x16xf32>, vector<2x4x16xf32> -> vector<2x4x16xf32>
    "tpu.trace_stop"() : () -> ()
    %519 = vector.shape_cast %518 : vector<2x4x16xf32> to vector<8x16xf32>
    %c0_341 = arith.constant 0 : index
    %c0_342 = arith.constant 0 : index
    %c0_343 = arith.constant 0 : index
    %c0_344 = arith.constant 0 : index
    %520 = vector.load %arg19[%c0_341, %c0_342, %c0_343, %c0_344] : memref<2x2x16x32xf32, #tpu.memory_space<vmem>>, vector<1x1x16x32xf32>
    %521 = vector.shape_cast %520 : vector<1x1x16x32xf32> to vector<16x32xf32>
    %cst_345 = arith.constant dense<0.000000e+00> : vector<8x32xf32>
    %522 = tpu.matmul %519, %521, %cst_345 {dimension_numbers = #tpu.dot_dimension_numbers<[1], [0], [0], [1], [0, 0, 1, 1], [], []>} : vector<8x16xf32>, vector<16x32xf32>, vector<8x32xf32> -> vector<8x32xf32>
    %523 = arith.addf %480, %522 : vector<8x32xf32>
    %c0_346 = arith.constant 0 : index
    %c1_347 = arith.constant 1 : index
    %c0_348 = arith.constant 0 : index
    %c0_349 = arith.constant 0 : index
    %524 = vector.load %arg13[%c0_346, %c1_347, %c0_348, %c0_349] : memref<2x2x32x16xf32, #tpu.memory_space<vmem>>, vector<1x1x32x16xf32>
    %525 = vector.shape_cast %524 : vector<1x1x32x16xf32> to vector<32x16xf32>
    %cst_350 = arith.constant dense<0.000000e+00> : vector<8x16xf32>
    %526 = tpu.matmul %475, %525, %cst_350 {dimension_numbers = #tpu.dot_dimension_numbers<[1], [0], [0], [1], [0, 0, 1, 1], [], []>} : vector<8x32xf32>, vector<32x16xf32>, vector<8x16xf32> -> vector<8x16xf32>
    %c0_351 = arith.constant 0 : index
    %c1_352 = arith.constant 1 : index
    %c0_353 = arith.constant 0 : index
    %c0_354 = arith.constant 0 : index
    %527 = vector.load %arg14[%c0_351, %c1_352, %c0_353, %c0_354] : memref<2x2x1x16xf32, #tpu.memory_space<vmem>>, vector<1x1x1x16xf32>
    %528 = vector.shape_cast %527 : vector<1x1x1x16xf32> to vector<1x16xf32>
    %529 = vector.broadcast %528 : vector<1x16xf32> to vector<8x16xf32>
    %530 = arith.addf %526, %529 : vector<8x16xf32>
    %cst_355 = arith.constant 2.500000e-01 : f32
    %531 = vector.broadcast %cst_355 : f32 to vector<8x16xf32>
    %532 = arith.mulf %530, %531 : vector<8x16xf32>
    %c0_356 = arith.constant 0 : index
    %c1_357 = arith.constant 1 : index
    %c0_358 = arith.constant 0 : index
    %c0_359 = arith.constant 0 : index
    %533 = vector.load %arg15[%c0_356, %c1_357, %c0_358, %c0_359] : memref<2x2x32x16xf32, #tpu.memory_space<vmem>>, vector<1x1x32x16xf32>
    %534 = vector.shape_cast %533 : vector<1x1x32x16xf32> to vector<32x16xf32>
    %cst_360 = arith.constant dense<0.000000e+00> : vector<8x16xf32>
    %535 = tpu.matmul %475, %534, %cst_360 {dimension_numbers = #tpu.dot_dimension_numbers<[1], [0], [0], [1], [0, 0, 1, 1], [], []>} : vector<8x32xf32>, vector<32x16xf32>, vector<8x16xf32> -> vector<8x16xf32>
    %c0_361 = arith.constant 0 : index
    %c1_362 = arith.constant 1 : index
    %c0_363 = arith.constant 0 : index
    %c0_364 = arith.constant 0 : index
    %536 = vector.load %arg16[%c0_361, %c1_362, %c0_363, %c0_364] : memref<2x2x1x16xf32, #tpu.memory_space<vmem>>, vector<1x1x1x16xf32>
    %537 = vector.shape_cast %536 : vector<1x1x1x16xf32> to vector<1x16xf32>
    %538 = vector.broadcast %537 : vector<1x16xf32> to vector<8x16xf32>
    %539 = arith.addf %535, %538 : vector<8x16xf32>
    %c0_365 = arith.constant 0 : index
    %c1_366 = arith.constant 1 : index
    %c0_367 = arith.constant 0 : index
    %c0_368 = arith.constant 0 : index
    %540 = vector.load %arg17[%c0_365, %c1_366, %c0_367, %c0_368] : memref<2x2x32x16xf32, #tpu.memory_space<vmem>>, vector<1x1x32x16xf32>
    %541 = vector.shape_cast %540 : vector<1x1x32x16xf32> to vector<32x16xf32>
    %cst_369 = arith.constant dense<0.000000e+00> : vector<8x16xf32>
    %542 = tpu.matmul %475, %541, %cst_369 {dimension_numbers = #tpu.dot_dimension_numbers<[1], [0], [0], [1], [0, 0, 1, 1], [], []>} : vector<8x32xf32>, vector<32x16xf32>, vector<8x16xf32> -> vector<8x16xf32>
    %c0_370 = arith.constant 0 : index
    %c1_371 = arith.constant 1 : index
    %c0_372 = arith.constant 0 : index
    %c0_373 = arith.constant 0 : index
    %543 = vector.load %arg18[%c0_370, %c1_371, %c0_372, %c0_373] : memref<2x2x1x16xf32, #tpu.memory_space<vmem>>, vector<1x1x1x16xf32>
    %544 = vector.shape_cast %543 : vector<1x1x1x16xf32> to vector<1x16xf32>
    %545 = vector.broadcast %544 : vector<1x16xf32> to vector<8x16xf32>
    %546 = arith.addf %542, %545 : vector<8x16xf32>
    %547 = vector.shape_cast %532 : vector<8x16xf32> to vector<2x4x16xf32>
    %548 = vector.shape_cast %539 : vector<8x16xf32> to vector<2x4x16xf32>
    %549 = vector.shape_cast %546 : vector<8x16xf32> to vector<2x4x16xf32>
    "tpu.trace_start"() <{level = 10 : i32, message = "bqd,bkd->bqk"}> : () -> ()
    %cst_374 = arith.constant dense<0.000000e+00> : vector<2x4x4xf32>
    %550 = tpu.matmul %547, %548, %cst_374 {dimension_numbers = #tpu.dot_dimension_numbers<[2], [2], [1], [1], [0, 0, 0, 1, 1, 1], [0], [0]>} : vector<2x4x16xf32>, vector<2x4x16xf32>, vector<2x4x4xf32> -> vector<2x4x4xf32>
    "tpu.trace_stop"() : () -> ()
    %cst_375 = arith.constant dense<0xFF800000> : vector<2x4xf32>
    %551 = vector.multi_reduction <maximumf>, %550, %cst_375 [2] : vector<2x4x4xf32> to vector<2x4xf32>
    %552 = vector.shape_cast %551 : vector<2x4xf32> to vector<2x4x1xf32>
    %553 = vector.broadcast %552 : vector<2x4x1xf32> to vector<2x4x4xf32>
    %554 = arith.subf %550, %553 : vector<2x4x4xf32>
    %555 = math.exp %554 : vector<2x4x4xf32>
    %cst_376 = arith.constant dense<0.000000e+00> : vector<2x4xf32>
    %556 = vector.multi_reduction <add>, %555, %cst_376 [2] : vector<2x4x4xf32> to vector<2x4xf32>
    %557 = vector.shape_cast %556 : vector<2x4xf32> to vector<2x4x1xf32>
    %558 = tpu.reciprocal %557 {approx = true} : vector<2x4x1xf32> -> vector<2x4x1xf32>
    %559 = vector.broadcast %558 : vector<2x4x1xf32> to vector<2x4x4xf32>
    %560 = arith.mulf %555, %559 : vector<2x4x4xf32>
    "tpu.trace_start"() <{level = 10 : i32, message = "bqk,bkd->bqd"}> : () -> ()
    %cst_377 = arith.constant dense<0.000000e+00> : vector<2x4x16xf32>
    %561 = tpu.matmul %560, %549, %cst_377 {dimension_numbers = #tpu.dot_dimension_numbers<[2], [1], [1], [2], [0, 0, 0, 1, 1, 2], [0], [0]>} : vector<2x4x4xf32>, vector<2x4x16xf32>, vector<2x4x16xf32> -> vector<2x4x16xf32>
    "tpu.trace_stop"() : () -> ()
    %562 = vector.shape_cast %561 : vector<2x4x16xf32> to vector<8x16xf32>
    %c0_378 = arith.constant 0 : index
    %c1_379 = arith.constant 1 : index
    %c0_380 = arith.constant 0 : index
    %c0_381 = arith.constant 0 : index
    %563 = vector.load %arg19[%c0_378, %c1_379, %c0_380, %c0_381] : memref<2x2x16x32xf32, #tpu.memory_space<vmem>>, vector<1x1x16x32xf32>
    %564 = vector.shape_cast %563 : vector<1x1x16x32xf32> to vector<16x32xf32>
    %cst_382 = arith.constant dense<0.000000e+00> : vector<8x32xf32>
    %565 = tpu.matmul %562, %564, %cst_382 {dimension_numbers = #tpu.dot_dimension_numbers<[1], [0], [0], [1], [0, 0, 1, 1], [], []>} : vector<8x16xf32>, vector<16x32xf32>, vector<8x32xf32> -> vector<8x32xf32>
    %566 = arith.addf %523, %565 : vector<8x32xf32>
    %567 = vector.shape_cast %566 : vector<8x32xf32> to vector<2x4x32xf32>
    %568 = arith.addf %474, %567 : vector<2x4x32xf32>
    %c0_383 = arith.constant 0 : index
    %c0_384 = arith.constant 0 : index
    %c0_385 = arith.constant 0 : index
    %569 = vector.load %arg21[%c0_383, %c0_384, %c0_385] : memref<2x1x32xf32, #tpu.memory_space<vmem>>, vector<1x1x32xf32>
    %570 = vector.shape_cast %569 : vector<1x1x32xf32> to vector<1x32xf32>
    %c0_386 = arith.constant 0 : index
    %c0_387 = arith.constant 0 : index
    %c0_388 = arith.constant 0 : index
    %571 = vector.load %arg22[%c0_386, %c0_387, %c0_388] : memref<2x1x32xf32, #tpu.memory_space<vmem>>, vector<1x1x32xf32>
    %572 = vector.shape_cast %571 : vector<1x1x32xf32> to vector<1x32xf32>
    %cst_389 = arith.constant dense<0.000000e+00> : vector<2x4xf32>
    %573 = vector.multi_reduction <add>, %568, %cst_389 [2] : vector<2x4x32xf32> to vector<2x4xf32>
    %574 = vector.shape_cast %573 : vector<2x4xf32> to vector<2x4x1xf32>
    %cst_390 = arith.constant 3.200000e+01 : f32
    %575 = vector.broadcast %cst_390 : f32 to vector<2x4x1xf32>
    %576 = arith.divf %574, %575 : vector<2x4x1xf32>
    %577 = vector.broadcast %576 : vector<2x4x1xf32> to vector<2x4x32xf32>
    %578 = arith.subf %568, %577 : vector<2x4x32xf32>
    %579 = arith.mulf %578, %578 : vector<2x4x32xf32>
    %cst_391 = arith.constant dense<0.000000e+00> : vector<2x4xf32>
    %580 = vector.multi_reduction <add>, %579, %cst_391 [2] : vector<2x4x32xf32> to vector<2x4xf32>
    %581 = vector.shape_cast %580 : vector<2x4xf32> to vector<2x4x1xf32>
    %cst_392 = arith.constant 3.200000e+01 : f32
    %582 = vector.broadcast %cst_392 : f32 to vector<2x4x1xf32>
    %583 = arith.divf %581, %582 : vector<2x4x1xf32>
    %584 = vector.broadcast %576 : vector<2x4x1xf32> to vector<2x4x32xf32>
    %585 = arith.subf %568, %584 : vector<2x4x32xf32>
    %cst_393 = arith.constant 9.99999974E-6 : f32
    %586 = vector.broadcast %cst_393 : f32 to vector<2x4x1xf32>
    %587 = arith.addf %583, %586 : vector<2x4x1xf32>
    %588 = math.rsqrt %587 : vector<2x4x1xf32>
    %589 = vector.broadcast %588 : vector<2x4x1xf32> to vector<2x4x32xf32>
    %590 = arith.mulf %585, %589 : vector<2x4x32xf32>
    %591 = vector.shape_cast %570 : vector<1x32xf32> to vector<1x1x32xf32>
    %592 = vector.broadcast %591 : vector<1x1x32xf32> to vector<2x4x32xf32>
    %593 = arith.mulf %590, %592 : vector<2x4x32xf32>
    %594 = vector.shape_cast %572 : vector<1x32xf32> to vector<1x1x32xf32>
    %595 = vector.broadcast %594 : vector<1x1x32xf32> to vector<2x4x32xf32>
    %596 = arith.addf %593, %595 : vector<2x4x32xf32>
    %597 = vector.shape_cast %596 : vector<2x4x32xf32> to vector<8x32xf32>
    %c0_394 = arith.constant 0 : index
    %c0_395 = arith.constant 0 : index
    %c0_396 = arith.constant 0 : index
    %598 = vector.load %arg25[%c0_394, %c0_395, %c0_396] : memref<2x32x32xf32, #tpu.memory_space<vmem>>, vector<1x32x32xf32>
    %599 = vector.shape_cast %598 : vector<1x32x32xf32> to vector<32x32xf32>
    %cst_397 = arith.constant dense<0.000000e+00> : vector<8x32xf32>
    %600 = tpu.matmul %597, %599, %cst_397 {dimension_numbers = #tpu.dot_dimension_numbers<[1], [0], [0], [1], [0, 0, 1, 1], [], []>} : vector<8x32xf32>, vector<32x32xf32>, vector<8x32xf32> -> vector<8x32xf32>
    %c0_398 = arith.constant 0 : index
    %c0_399 = arith.constant 0 : index
    %c0_400 = arith.constant 0 : index
    %601 = vector.load %arg26[%c0_398, %c0_399, %c0_400] : memref<2x1x32xf32, #tpu.memory_space<vmem>>, vector<1x1x32xf32>
    %602 = vector.shape_cast %601 : vector<1x1x32xf32> to vector<1x32xf32>
    %603 = vector.broadcast %602 : vector<1x32xf32> to vector<8x32xf32>
    %604 = arith.addf %600, %603 : vector<8x32xf32>
    %cst_401 = arith.constant 5.000000e-01 : f32
    %605 = vector.broadcast %cst_401 : f32 to vector<8x32xf32>
    %606 = arith.mulf %605, %604 : vector<8x32xf32>
    %cst_402 = arith.constant 4.471500e-02 : f32
    %607 = vector.broadcast %cst_402 : f32 to vector<8x32xf32>
    %608 = arith.mulf %607, %604 : vector<8x32xf32>
    %609 = arith.mulf %608, %604 : vector<8x32xf32>
    %610 = arith.mulf %609, %604 : vector<8x32xf32>
    %611 = arith.addf %604, %610 : vector<8x32xf32>
    %cst_403 = arith.constant 0.797884583 : f32
    %612 = vector.broadcast %cst_403 : f32 to vector<8x32xf32>
    %613 = arith.mulf %612, %611 : vector<8x32xf32>
    %614 = math.tanh %613 : vector<8x32xf32>
    %cst_404 = arith.constant 1.000000e+00 : f32
    %615 = vector.broadcast %cst_404 : f32 to vector<8x32xf32>
    %616 = arith.addf %615, %614 : vector<8x32xf32>
    %617 = arith.mulf %606, %616 : vector<8x32xf32>
    %c0_405 = arith.constant 0 : index
    %c0_406 = arith.constant 0 : index
    %c0_407 = arith.constant 0 : index
    %618 = vector.load %arg27[%c0_405, %c0_406, %c0_407] : memref<2x32x32xf32, #tpu.memory_space<vmem>>, vector<1x32x32xf32>
    %619 = vector.shape_cast %618 : vector<1x32x32xf32> to vector<32x32xf32>
    %cst_408 = arith.constant dense<0.000000e+00> : vector<8x32xf32>
    %620 = tpu.matmul %617, %619, %cst_408 {dimension_numbers = #tpu.dot_dimension_numbers<[1], [0], [0], [1], [0, 0, 1, 1], [], []>} : vector<8x32xf32>, vector<32x32xf32>, vector<8x32xf32> -> vector<8x32xf32>
    %c0_409 = arith.constant 0 : index
    %c0_410 = arith.constant 0 : index
    %c0_411 = arith.constant 0 : index
    %621 = vector.load %arg28[%c0_409, %c0_410, %c0_411] : memref<2x1x32xf32, #tpu.memory_space<vmem>>, vector<1x1x32xf32>
    %622 = vector.shape_cast %621 : vector<1x1x32xf32> to vector<1x32xf32>
    %623 = vector.broadcast %622 : vector<1x32xf32> to vector<8x32xf32>
    %624 = arith.addf %620, %623 : vector<8x32xf32>
    %625 = vector.shape_cast %624 : vector<8x32xf32> to vector<2x4x32xf32>
    %626 = arith.addf %596, %625 : vector<2x4x32xf32>
    %c0_412 = arith.constant 0 : index
    %c0_413 = arith.constant 0 : index
    %c0_414 = arith.constant 0 : index
    %627 = vector.load %arg23[%c0_412, %c0_413, %c0_414] : memref<2x1x32xf32, #tpu.memory_space<vmem>>, vector<1x1x32xf32>
    %628 = vector.shape_cast %627 : vector<1x1x32xf32> to vector<1x32xf32>
    %c0_415 = arith.constant 0 : index
    %c0_416 = arith.constant 0 : index
    %c0_417 = arith.constant 0 : index
    %629 = vector.load %arg24[%c0_415, %c0_416, %c0_417] : memref<2x1x32xf32, #tpu.memory_space<vmem>>, vector<1x1x32xf32>
    %630 = vector.shape_cast %629 : vector<1x1x32xf32> to vector<1x32xf32>
    %cst_418 = arith.constant dense<0.000000e+00> : vector<2x4xf32>
    %631 = vector.multi_reduction <add>, %626, %cst_418 [2] : vector<2x4x32xf32> to vector<2x4xf32>
    %632 = vector.shape_cast %631 : vector<2x4xf32> to vector<2x4x1xf32>
    %cst_419 = arith.constant 3.200000e+01 : f32
    %633 = vector.broadcast %cst_419 : f32 to vector<2x4x1xf32>
    %634 = arith.divf %632, %633 : vector<2x4x1xf32>
    %635 = vector.broadcast %634 : vector<2x4x1xf32> to vector<2x4x32xf32>
    %636 = arith.subf %626, %635 : vector<2x4x32xf32>
    %637 = arith.mulf %636, %636 : vector<2x4x32xf32>
    %cst_420 = arith.constant dense<0.000000e+00> : vector<2x4xf32>
    %638 = vector.multi_reduction <add>, %637, %cst_420 [2] : vector<2x4x32xf32> to vector<2x4xf32>
    %639 = vector.shape_cast %638 : vector<2x4xf32> to vector<2x4x1xf32>
    %cst_421 = arith.constant 3.200000e+01 : f32
    %640 = vector.broadcast %cst_421 : f32 to vector<2x4x1xf32>
    %641 = arith.divf %639, %640 : vector<2x4x1xf32>
    %642 = vector.broadcast %634 : vector<2x4x1xf32> to vector<2x4x32xf32>
    %643 = arith.subf %626, %642 : vector<2x4x32xf32>
    %cst_422 = arith.constant 9.99999974E-6 : f32
    %644 = vector.broadcast %cst_422 : f32 to vector<2x4x1xf32>
    %645 = arith.addf %641, %644 : vector<2x4x1xf32>
    %646 = math.rsqrt %645 : vector<2x4x1xf32>
    %647 = vector.broadcast %646 : vector<2x4x1xf32> to vector<2x4x32xf32>
    %648 = arith.mulf %643, %647 : vector<2x4x32xf32>
    %649 = vector.shape_cast %628 : vector<1x32xf32> to vector<1x1x32xf32>
    %650 = vector.broadcast %649 : vector<1x1x32xf32> to vector<2x4x32xf32>
    %651 = arith.mulf %648, %650 : vector<2x4x32xf32>
    %652 = vector.shape_cast %630 : vector<1x32xf32> to vector<1x1x32xf32>
    %653 = vector.broadcast %652 : vector<1x1x32xf32> to vector<2x4x32xf32>
    %654 = arith.addf %651, %653 : vector<2x4x32xf32>
    %655 = vector.shape_cast %654 : vector<2x4x32xf32> to vector<8x32xf32>
    %cst_423 = arith.constant 0.000000e+00 : f32
    %656 = vector.broadcast %cst_423 : f32 to vector<8x32xf32>
    %c1_424 = arith.constant 1 : index
    %c0_425 = arith.constant 0 : index
    %c0_426 = arith.constant 0 : index
    %657 = vector.load %arg20[%c1_424, %c0_425, %c0_426] : memref<2x1x32xf32, #tpu.memory_space<vmem>>, vector<1x1x32xf32>
    %658 = vector.shape_cast %657 : vector<1x1x32xf32> to vector<1x32xf32>
    %659 = vector.broadcast %658 : vector<1x32xf32> to vector<8x32xf32>
    %660 = arith.addf %656, %659 : vector<8x32xf32>
    %c1_427 = arith.constant 1 : index
    %c0_428 = arith.constant 0 : index
    %c0_429 = arith.constant 0 : index
    %c0_430 = arith.constant 0 : index
    %661 = vector.load %arg13[%c1_427, %c0_428, %c0_429, %c0_430] : memref<2x2x32x16xf32, #tpu.memory_space<vmem>>, vector<1x1x32x16xf32>
    %662 = vector.shape_cast %661 : vector<1x1x32x16xf32> to vector<32x16xf32>
    %cst_431 = arith.constant dense<0.000000e+00> : vector<8x16xf32>
    %663 = tpu.matmul %655, %662, %cst_431 {dimension_numbers = #tpu.dot_dimension_numbers<[1], [0], [0], [1], [0, 0, 1, 1], [], []>} : vector<8x32xf32>, vector<32x16xf32>, vector<8x16xf32> -> vector<8x16xf32>
    %c1_432 = arith.constant 1 : index
    %c0_433 = arith.constant 0 : index
    %c0_434 = arith.constant 0 : index
    %c0_435 = arith.constant 0 : index
    %664 = vector.load %arg14[%c1_432, %c0_433, %c0_434, %c0_435] : memref<2x2x1x16xf32, #tpu.memory_space<vmem>>, vector<1x1x1x16xf32>
    %665 = vector.shape_cast %664 : vector<1x1x1x16xf32> to vector<1x16xf32>
    %666 = vector.broadcast %665 : vector<1x16xf32> to vector<8x16xf32>
    %667 = arith.addf %663, %666 : vector<8x16xf32>
    %cst_436 = arith.constant 2.500000e-01 : f32
    %668 = vector.broadcast %cst_436 : f32 to vector<8x16xf32>
    %669 = arith.mulf %667, %668 : vector<8x16xf32>
    %c1_437 = arith.constant 1 : index
    %c0_438 = arith.constant 0 : index
    %c0_439 = arith.constant 0 : index
    %c0_440 = arith.constant 0 : index
    %670 = vector.load %arg15[%c1_437, %c0_438, %c0_439, %c0_440] : memref<2x2x32x16xf32, #tpu.memory_space<vmem>>, vector<1x1x32x16xf32>
    %671 = vector.shape_cast %670 : vector<1x1x32x16xf32> to vector<32x16xf32>
    %cst_441 = arith.constant dense<0.000000e+00> : vector<8x16xf32>
    %672 = tpu.matmul %655, %671, %cst_441 {dimension_numbers = #tpu.dot_dimension_numbers<[1], [0], [0], [1], [0, 0, 1, 1], [], []>} : vector<8x32xf32>, vector<32x16xf32>, vector<8x16xf32> -> vector<8x16xf32>
    %c1_442 = arith.constant 1 : index
    %c0_443 = arith.constant 0 : index
    %c0_444 = arith.constant 0 : index
    %c0_445 = arith.constant 0 : index
    %673 = vector.load %arg16[%c1_442, %c0_443, %c0_444, %c0_445] : memref<2x2x1x16xf32, #tpu.memory_space<vmem>>, vector<1x1x1x16xf32>
    %674 = vector.shape_cast %673 : vector<1x1x1x16xf32> to vector<1x16xf32>
    %675 = vector.broadcast %674 : vector<1x16xf32> to vector<8x16xf32>
    %676 = arith.addf %672, %675 : vector<8x16xf32>
    %c1_446 = arith.constant 1 : index
    %c0_447 = arith.constant 0 : index
    %c0_448 = arith.constant 0 : index
    %c0_449 = arith.constant 0 : index
    %677 = vector.load %arg17[%c1_446, %c0_447, %c0_448, %c0_449] : memref<2x2x32x16xf32, #tpu.memory_space<vmem>>, vector<1x1x32x16xf32>
    %678 = vector.shape_cast %677 : vector<1x1x32x16xf32> to vector<32x16xf32>
    %cst_450 = arith.constant dense<0.000000e+00> : vector<8x16xf32>
    %679 = tpu.matmul %655, %678, %cst_450 {dimension_numbers = #tpu.dot_dimension_numbers<[1], [0], [0], [1], [0, 0, 1, 1], [], []>} : vector<8x32xf32>, vector<32x16xf32>, vector<8x16xf32> -> vector<8x16xf32>
    %c1_451 = arith.constant 1 : index
    %c0_452 = arith.constant 0 : index
    %c0_453 = arith.constant 0 : index
    %c0_454 = arith.constant 0 : index
    %680 = vector.load %arg18[%c1_451, %c0_452, %c0_453, %c0_454] : memref<2x2x1x16xf32, #tpu.memory_space<vmem>>, vector<1x1x1x16xf32>
    %681 = vector.shape_cast %680 : vector<1x1x1x16xf32> to vector<1x16xf32>
    %682 = vector.broadcast %681 : vector<1x16xf32> to vector<8x16xf32>
    %683 = arith.addf %679, %682 : vector<8x16xf32>
    %684 = vector.shape_cast %669 : vector<8x16xf32> to vector<2x4x16xf32>
    %685 = vector.shape_cast %676 : vector<8x16xf32> to vector<2x4x16xf32>
    %686 = vector.shape_cast %683 : vector<8x16xf32> to vector<2x4x16xf32>
    "tpu.trace_start"() <{level = 10 : i32, message = "bqd,bkd->bqk"}> : () -> ()
    %cst_455 = arith.constant dense<0.000000e+00> : vector<2x4x4xf32>
    %687 = tpu.matmul %684, %685, %cst_455 {dimension_numbers = #tpu.dot_dimension_numbers<[2], [2], [1], [1], [0, 0, 0, 1, 1, 1], [0], [0]>} : vector<2x4x16xf32>, vector<2x4x16xf32>, vector<2x4x4xf32> -> vector<2x4x4xf32>
    "tpu.trace_stop"() : () -> ()
    %cst_456 = arith.constant dense<0xFF800000> : vector<2x4xf32>
    %688 = vector.multi_reduction <maximumf>, %687, %cst_456 [2] : vector<2x4x4xf32> to vector<2x4xf32>
    %689 = vector.shape_cast %688 : vector<2x4xf32> to vector<2x4x1xf32>
    %690 = vector.broadcast %689 : vector<2x4x1xf32> to vector<2x4x4xf32>
    %691 = arith.subf %687, %690 : vector<2x4x4xf32>
    %692 = math.exp %691 : vector<2x4x4xf32>
    %cst_457 = arith.constant dense<0.000000e+00> : vector<2x4xf32>
    %693 = vector.multi_reduction <add>, %692, %cst_457 [2] : vector<2x4x4xf32> to vector<2x4xf32>
    %694 = vector.shape_cast %693 : vector<2x4xf32> to vector<2x4x1xf32>
    %695 = tpu.reciprocal %694 {approx = true} : vector<2x4x1xf32> -> vector<2x4x1xf32>
    %696 = vector.broadcast %695 : vector<2x4x1xf32> to vector<2x4x4xf32>
    %697 = arith.mulf %692, %696 : vector<2x4x4xf32>
    "tpu.trace_start"() <{level = 10 : i32, message = "bqk,bkd->bqd"}> : () -> ()
    %cst_458 = arith.constant dense<0.000000e+00> : vector<2x4x16xf32>
    %698 = tpu.matmul %697, %686, %cst_458 {dimension_numbers = #tpu.dot_dimension_numbers<[2], [1], [1], [2], [0, 0, 0, 1, 1, 2], [0], [0]>} : vector<2x4x4xf32>, vector<2x4x16xf32>, vector<2x4x16xf32> -> vector<2x4x16xf32>
    "tpu.trace_stop"() : () -> ()
    %699 = vector.shape_cast %698 : vector<2x4x16xf32> to vector<8x16xf32>
    %c1_459 = arith.constant 1 : index
    %c0_460 = arith.constant 0 : index
    %c0_461 = arith.constant 0 : index
    %c0_462 = arith.constant 0 : index
    %700 = vector.load %arg19[%c1_459, %c0_460, %c0_461, %c0_462] : memref<2x2x16x32xf32, #tpu.memory_space<vmem>>, vector<1x1x16x32xf32>
    %701 = vector.shape_cast %700 : vector<1x1x16x32xf32> to vector<16x32xf32>
    %cst_463 = arith.constant dense<0.000000e+00> : vector<8x32xf32>
    %702 = tpu.matmul %699, %701, %cst_463 {dimension_numbers = #tpu.dot_dimension_numbers<[1], [0], [0], [1], [0, 0, 1, 1], [], []>} : vector<8x16xf32>, vector<16x32xf32>, vector<8x32xf32> -> vector<8x32xf32>
    %703 = arith.addf %660, %702 : vector<8x32xf32>
    %c1_464 = arith.constant 1 : index
    %c1_465 = arith.constant 1 : index
    %c0_466 = arith.constant 0 : index
    %c0_467 = arith.constant 0 : index
    %704 = vector.load %arg13[%c1_464, %c1_465, %c0_466, %c0_467] : memref<2x2x32x16xf32, #tpu.memory_space<vmem>>, vector<1x1x32x16xf32>
    %705 = vector.shape_cast %704 : vector<1x1x32x16xf32> to vector<32x16xf32>
    %cst_468 = arith.constant dense<0.000000e+00> : vector<8x16xf32>
    %706 = tpu.matmul %655, %705, %cst_468 {dimension_numbers = #tpu.dot_dimension_numbers<[1], [0], [0], [1], [0, 0, 1, 1], [], []>} : vector<8x32xf32>, vector<32x16xf32>, vector<8x16xf32> -> vector<8x16xf32>
    %c1_469 = arith.constant 1 : index
    %c1_470 = arith.constant 1 : index
    %c0_471 = arith.constant 0 : index
    %c0_472 = arith.constant 0 : index
    %707 = vector.load %arg14[%c1_469, %c1_470, %c0_471, %c0_472] : memref<2x2x1x16xf32, #tpu.memory_space<vmem>>, vector<1x1x1x16xf32>
    %708 = vector.shape_cast %707 : vector<1x1x1x16xf32> to vector<1x16xf32>
    %709 = vector.broadcast %708 : vector<1x16xf32> to vector<8x16xf32>
    %710 = arith.addf %706, %709 : vector<8x16xf32>
    %cst_473 = arith.constant 2.500000e-01 : f32
    %711 = vector.broadcast %cst_473 : f32 to vector<8x16xf32>
    %712 = arith.mulf %710, %711 : vector<8x16xf32>
    %c1_474 = arith.constant 1 : index
    %c1_475 = arith.constant 1 : index
    %c0_476 = arith.constant 0 : index
    %c0_477 = arith.constant 0 : index
    %713 = vector.load %arg15[%c1_474, %c1_475, %c0_476, %c0_477] : memref<2x2x32x16xf32, #tpu.memory_space<vmem>>, vector<1x1x32x16xf32>
    %714 = vector.shape_cast %713 : vector<1x1x32x16xf32> to vector<32x16xf32>
    %cst_478 = arith.constant dense<0.000000e+00> : vector<8x16xf32>
    %715 = tpu.matmul %655, %714, %cst_478 {dimension_numbers = #tpu.dot_dimension_numbers<[1], [0], [0], [1], [0, 0, 1, 1], [], []>} : vector<8x32xf32>, vector<32x16xf32>, vector<8x16xf32> -> vector<8x16xf32>
    %c1_479 = arith.constant 1 : index
    %c1_480 = arith.constant 1 : index
    %c0_481 = arith.constant 0 : index
    %c0_482 = arith.constant 0 : index
    %716 = vector.load %arg16[%c1_479, %c1_480, %c0_481, %c0_482] : memref<2x2x1x16xf32, #tpu.memory_space<vmem>>, vector<1x1x1x16xf32>
    %717 = vector.shape_cast %716 : vector<1x1x1x16xf32> to vector<1x16xf32>
    %718 = vector.broadcast %717 : vector<1x16xf32> to vector<8x16xf32>
    %719 = arith.addf %715, %718 : vector<8x16xf32>
    %c1_483 = arith.constant 1 : index
    %c1_484 = arith.constant 1 : index
    %c0_485 = arith.constant 0 : index
    %c0_486 = arith.constant 0 : index
    %720 = vector.load %arg17[%c1_483, %c1_484, %c0_485, %c0_486] : memref<2x2x32x16xf32, #tpu.memory_space<vmem>>, vector<1x1x32x16xf32>
    %721 = vector.shape_cast %720 : vector<1x1x32x16xf32> to vector<32x16xf32>
    %cst_487 = arith.constant dense<0.000000e+00> : vector<8x16xf32>
    %722 = tpu.matmul %655, %721, %cst_487 {dimension_numbers = #tpu.dot_dimension_numbers<[1], [0], [0], [1], [0, 0, 1, 1], [], []>} : vector<8x32xf32>, vector<32x16xf32>, vector<8x16xf32> -> vector<8x16xf32>
    %c1_488 = arith.constant 1 : index
    %c1_489 = arith.constant 1 : index
    %c0_490 = arith.constant 0 : index
    %c0_491 = arith.constant 0 : index
    %723 = vector.load %arg18[%c1_488, %c1_489, %c0_490, %c0_491] : memref<2x2x1x16xf32, #tpu.memory_space<vmem>>, vector<1x1x1x16xf32>
    %724 = vector.shape_cast %723 : vector<1x1x1x16xf32> to vector<1x16xf32>
    %725 = vector.broadcast %724 : vector<1x16xf32> to vector<8x16xf32>
    %726 = arith.addf %722, %725 : vector<8x16xf32>
    %727 = vector.shape_cast %712 : vector<8x16xf32> to vector<2x4x16xf32>
    %728 = vector.shape_cast %719 : vector<8x16xf32> to vector<2x4x16xf32>
    %729 = vector.shape_cast %726 : vector<8x16xf32> to vector<2x4x16xf32>
    "tpu.trace_start"() <{level = 10 : i32, message = "bqd,bkd->bqk"}> : () -> ()
    %cst_492 = arith.constant dense<0.000000e+00> : vector<2x4x4xf32>
    %730 = tpu.matmul %727, %728, %cst_492 {dimension_numbers = #tpu.dot_dimension_numbers<[2], [2], [1], [1], [0, 0, 0, 1, 1, 1], [0], [0]>} : vector<2x4x16xf32>, vector<2x4x16xf32>, vector<2x4x4xf32> -> vector<2x4x4xf32>
    "tpu.trace_stop"() : () -> ()
    %cst_493 = arith.constant dense<0xFF800000> : vector<2x4xf32>
    %731 = vector.multi_reduction <maximumf>, %730, %cst_493 [2] : vector<2x4x4xf32> to vector<2x4xf32>
    %732 = vector.shape_cast %731 : vector<2x4xf32> to vector<2x4x1xf32>
    %733 = vector.broadcast %732 : vector<2x4x1xf32> to vector<2x4x4xf32>
    %734 = arith.subf %730, %733 : vector<2x4x4xf32>
    %735 = math.exp %734 : vector<2x4x4xf32>
    %cst_494 = arith.constant dense<0.000000e+00> : vector<2x4xf32>
    %736 = vector.multi_reduction <add>, %735, %cst_494 [2] : vector<2x4x4xf32> to vector<2x4xf32>
    %737 = vector.shape_cast %736 : vector<2x4xf32> to vector<2x4x1xf32>
    %738 = tpu.reciprocal %737 {approx = true} : vector<2x4x1xf32> -> vector<2x4x1xf32>
    %739 = vector.broadcast %738 : vector<2x4x1xf32> to vector<2x4x4xf32>
    %740 = arith.mulf %735, %739 : vector<2x4x4xf32>
    "tpu.trace_start"() <{level = 10 : i32, message = "bqk,bkd->bqd"}> : () -> ()
    %cst_495 = arith.constant dense<0.000000e+00> : vector<2x4x16xf32>
    %741 = tpu.matmul %740, %729, %cst_495 {dimension_numbers = #tpu.dot_dimension_numbers<[2], [1], [1], [2], [0, 0, 0, 1, 1, 2], [0], [0]>} : vector<2x4x4xf32>, vector<2x4x16xf32>, vector<2x4x16xf32> -> vector<2x4x16xf32>
    "tpu.trace_stop"() : () -> ()
    %742 = vector.shape_cast %741 : vector<2x4x16xf32> to vector<8x16xf32>
    %c1_496 = arith.constant 1 : index
    %c1_497 = arith.constant 1 : index
    %c0_498 = arith.constant 0 : index
    %c0_499 = arith.constant 0 : index
    %743 = vector.load %arg19[%c1_496, %c1_497, %c0_498, %c0_499] : memref<2x2x16x32xf32, #tpu.memory_space<vmem>>, vector<1x1x16x32xf32>
    %744 = vector.shape_cast %743 : vector<1x1x16x32xf32> to vector<16x32xf32>
    %cst_500 = arith.constant dense<0.000000e+00> : vector<8x32xf32>
    %745 = tpu.matmul %742, %744, %cst_500 {dimension_numbers = #tpu.dot_dimension_numbers<[1], [0], [0], [1], [0, 0, 1, 1], [], []>} : vector<8x16xf32>, vector<16x32xf32>, vector<8x32xf32> -> vector<8x32xf32>
    %746 = arith.addf %703, %745 : vector<8x32xf32>
    %747 = vector.shape_cast %746 : vector<8x32xf32> to vector<2x4x32xf32>
    %748 = arith.addf %654, %747 : vector<2x4x32xf32>
    %c1_501 = arith.constant 1 : index
    %c0_502 = arith.constant 0 : index
    %c0_503 = arith.constant 0 : index
    %749 = vector.load %arg21[%c1_501, %c0_502, %c0_503] : memref<2x1x32xf32, #tpu.memory_space<vmem>>, vector<1x1x32xf32>
    %750 = vector.shape_cast %749 : vector<1x1x32xf32> to vector<1x32xf32>
    %c1_504 = arith.constant 1 : index
    %c0_505 = arith.constant 0 : index
    %c0_506 = arith.constant 0 : index
    %751 = vector.load %arg22[%c1_504, %c0_505, %c0_506] : memref<2x1x32xf32, #tpu.memory_space<vmem>>, vector<1x1x32xf32>
    %752 = vector.shape_cast %751 : vector<1x1x32xf32> to vector<1x32xf32>
    %cst_507 = arith.constant dense<0.000000e+00> : vector<2x4xf32>
    %753 = vector.multi_reduction <add>, %748, %cst_507 [2] : vector<2x4x32xf32> to vector<2x4xf32>
    %754 = vector.shape_cast %753 : vector<2x4xf32> to vector<2x4x1xf32>
    %cst_508 = arith.constant 3.200000e+01 : f32
    %755 = vector.broadcast %cst_508 : f32 to vector<2x4x1xf32>
    %756 = arith.divf %754, %755 : vector<2x4x1xf32>
    %757 = vector.broadcast %756 : vector<2x4x1xf32> to vector<2x4x32xf32>
    %758 = arith.subf %748, %757 : vector<2x4x32xf32>
    %759 = arith.mulf %758, %758 : vector<2x4x32xf32>
    %cst_509 = arith.constant dense<0.000000e+00> : vector<2x4xf32>
    %760 = vector.multi_reduction <add>, %759, %cst_509 [2] : vector<2x4x32xf32> to vector<2x4xf32>
    %761 = vector.shape_cast %760 : vector<2x4xf32> to vector<2x4x1xf32>
    %cst_510 = arith.constant 3.200000e+01 : f32
    %762 = vector.broadcast %cst_510 : f32 to vector<2x4x1xf32>
    %763 = arith.divf %761, %762 : vector<2x4x1xf32>
    %764 = vector.broadcast %756 : vector<2x4x1xf32> to vector<2x4x32xf32>
    %765 = arith.subf %748, %764 : vector<2x4x32xf32>
    %cst_511 = arith.constant 9.99999974E-6 : f32
    %766 = vector.broadcast %cst_511 : f32 to vector<2x4x1xf32>
    %767 = arith.addf %763, %766 : vector<2x4x1xf32>
    %768 = math.rsqrt %767 : vector<2x4x1xf32>
    %769 = vector.broadcast %768 : vector<2x4x1xf32> to vector<2x4x32xf32>
    %770 = arith.mulf %765, %769 : vector<2x4x32xf32>
    %771 = vector.shape_cast %750 : vector<1x32xf32> to vector<1x1x32xf32>
    %772 = vector.broadcast %771 : vector<1x1x32xf32> to vector<2x4x32xf32>
    %773 = arith.mulf %770, %772 : vector<2x4x32xf32>
    %774 = vector.shape_cast %752 : vector<1x32xf32> to vector<1x1x32xf32>
    %775 = vector.broadcast %774 : vector<1x1x32xf32> to vector<2x4x32xf32>
    %776 = arith.addf %773, %775 : vector<2x4x32xf32>
    %777 = vector.shape_cast %776 : vector<2x4x32xf32> to vector<8x32xf32>
    %c1_512 = arith.constant 1 : index
    %c0_513 = arith.constant 0 : index
    %c0_514 = arith.constant 0 : index
    %778 = vector.load %arg25[%c1_512, %c0_513, %c0_514] : memref<2x32x32xf32, #tpu.memory_space<vmem>>, vector<1x32x32xf32>
    %779 = vector.shape_cast %778 : vector<1x32x32xf32> to vector<32x32xf32>
    %cst_515 = arith.constant dense<0.000000e+00> : vector<8x32xf32>
    %780 = tpu.matmul %777, %779, %cst_515 {dimension_numbers = #tpu.dot_dimension_numbers<[1], [0], [0], [1], [0, 0, 1, 1], [], []>} : vector<8x32xf32>, vector<32x32xf32>, vector<8x32xf32> -> vector<8x32xf32>
    %c1_516 = arith.constant 1 : index
    %c0_517 = arith.constant 0 : index
    %c0_518 = arith.constant 0 : index
    %781 = vector.load %arg26[%c1_516, %c0_517, %c0_518] : memref<2x1x32xf32, #tpu.memory_space<vmem>>, vector<1x1x32xf32>
    %782 = vector.shape_cast %781 : vector<1x1x32xf32> to vector<1x32xf32>
    %783 = vector.broadcast %782 : vector<1x32xf32> to vector<8x32xf32>
    %784 = arith.addf %780, %783 : vector<8x32xf32>
    %cst_519 = arith.constant 5.000000e-01 : f32
    %785 = vector.broadcast %cst_519 : f32 to vector<8x32xf32>
    %786 = arith.mulf %785, %784 : vector<8x32xf32>
    %cst_520 = arith.constant 4.471500e-02 : f32
    %787 = vector.broadcast %cst_520 : f32 to vector<8x32xf32>
    %788 = arith.mulf %787, %784 : vector<8x32xf32>
    %789 = arith.mulf %788, %784 : vector<8x32xf32>
    %790 = arith.mulf %789, %784 : vector<8x32xf32>
    %791 = arith.addf %784, %790 : vector<8x32xf32>
    %cst_521 = arith.constant 0.797884583 : f32
    %792 = vector.broadcast %cst_521 : f32 to vector<8x32xf32>
    %793 = arith.mulf %792, %791 : vector<8x32xf32>
    %794 = math.tanh %793 : vector<8x32xf32>
    %cst_522 = arith.constant 1.000000e+00 : f32
    %795 = vector.broadcast %cst_522 : f32 to vector<8x32xf32>
    %796 = arith.addf %795, %794 : vector<8x32xf32>
    %797 = arith.mulf %786, %796 : vector<8x32xf32>
    %c1_523 = arith.constant 1 : index
    %c0_524 = arith.constant 0 : index
    %c0_525 = arith.constant 0 : index
    %798 = vector.load %arg27[%c1_523, %c0_524, %c0_525] : memref<2x32x32xf32, #tpu.memory_space<vmem>>, vector<1x32x32xf32>
    %799 = vector.shape_cast %798 : vector<1x32x32xf32> to vector<32x32xf32>
    %cst_526 = arith.constant dense<0.000000e+00> : vector<8x32xf32>
    %800 = tpu.matmul %797, %799, %cst_526 {dimension_numbers = #tpu.dot_dimension_numbers<[1], [0], [0], [1], [0, 0, 1, 1], [], []>} : vector<8x32xf32>, vector<32x32xf32>, vector<8x32xf32> -> vector<8x32xf32>
    %c1_527 = arith.constant 1 : index
    %c0_528 = arith.constant 0 : index
    %c0_529 = arith.constant 0 : index
    %801 = vector.load %arg28[%c1_527, %c0_528, %c0_529] : memref<2x1x32xf32, #tpu.memory_space<vmem>>, vector<1x1x32xf32>
    %802 = vector.shape_cast %801 : vector<1x1x32xf32> to vector<1x32xf32>
    %803 = vector.broadcast %802 : vector<1x32xf32> to vector<8x32xf32>
    %804 = arith.addf %800, %803 : vector<8x32xf32>
    %805 = vector.shape_cast %804 : vector<8x32xf32> to vector<2x4x32xf32>
    %806 = arith.addf %776, %805 : vector<2x4x32xf32>
    %c1_530 = arith.constant 1 : index
    %c0_531 = arith.constant 0 : index
    %c0_532 = arith.constant 0 : index
    %807 = vector.load %arg23[%c1_530, %c0_531, %c0_532] : memref<2x1x32xf32, #tpu.memory_space<vmem>>, vector<1x1x32xf32>
    %808 = vector.shape_cast %807 : vector<1x1x32xf32> to vector<1x32xf32>
    %c1_533 = arith.constant 1 : index
    %c0_534 = arith.constant 0 : index
    %c0_535 = arith.constant 0 : index
    %809 = vector.load %arg24[%c1_533, %c0_534, %c0_535] : memref<2x1x32xf32, #tpu.memory_space<vmem>>, vector<1x1x32xf32>
    %810 = vector.shape_cast %809 : vector<1x1x32xf32> to vector<1x32xf32>
    %cst_536 = arith.constant dense<0.000000e+00> : vector<2x4xf32>
    %811 = vector.multi_reduction <add>, %806, %cst_536 [2] : vector<2x4x32xf32> to vector<2x4xf32>
    %812 = vector.shape_cast %811 : vector<2x4xf32> to vector<2x4x1xf32>
    %cst_537 = arith.constant 3.200000e+01 : f32
    %813 = vector.broadcast %cst_537 : f32 to vector<2x4x1xf32>
    %814 = arith.divf %812, %813 : vector<2x4x1xf32>
    %815 = vector.broadcast %814 : vector<2x4x1xf32> to vector<2x4x32xf32>
    %816 = arith.subf %806, %815 : vector<2x4x32xf32>
    %817 = arith.mulf %816, %816 : vector<2x4x32xf32>
    %cst_538 = arith.constant dense<0.000000e+00> : vector<2x4xf32>
    %818 = vector.multi_reduction <add>, %817, %cst_538 [2] : vector<2x4x32xf32> to vector<2x4xf32>
    %819 = vector.shape_cast %818 : vector<2x4xf32> to vector<2x4x1xf32>
    %cst_539 = arith.constant 3.200000e+01 : f32
    %820 = vector.broadcast %cst_539 : f32 to vector<2x4x1xf32>
    %821 = arith.divf %819, %820 : vector<2x4x1xf32>
    %822 = vector.broadcast %814 : vector<2x4x1xf32> to vector<2x4x32xf32>
    %823 = arith.subf %806, %822 : vector<2x4x32xf32>
    %cst_540 = arith.constant 9.99999974E-6 : f32
    %824 = vector.broadcast %cst_540 : f32 to vector<2x4x1xf32>
    %825 = arith.addf %821, %824 : vector<2x4x1xf32>
    %826 = math.rsqrt %825 : vector<2x4x1xf32>
    %827 = vector.broadcast %826 : vector<2x4x1xf32> to vector<2x4x32xf32>
    %828 = arith.mulf %823, %827 : vector<2x4x32xf32>
    %829 = vector.shape_cast %808 : vector<1x32xf32> to vector<1x1x32xf32>
    %830 = vector.broadcast %829 : vector<1x1x32xf32> to vector<2x4x32xf32>
    %831 = arith.mulf %828, %830 : vector<2x4x32xf32>
    %832 = vector.shape_cast %810 : vector<1x32xf32> to vector<1x1x32xf32>
    %833 = vector.broadcast %832 : vector<1x1x32xf32> to vector<2x4x32xf32>
    %834 = arith.addf %831, %833 : vector<2x4x32xf32>
    %835 = vector.shape_cast %834 : vector<2x4x32xf32> to vector<2x2x2x32xf32>
    %836 = vector.extract_strided_slice %835 {offsets = [0, 0, 0, 0], sizes = [2, 2, 1, 32], strides = [1, 1, 1, 1]} : vector<2x2x2x32xf32> to vector<2x2x1x32xf32>
    %837 = vector.shape_cast %836 : vector<2x2x1x32xf32> to vector<2x2x32xf32>
    %c1_541 = arith.constant 1 : index
    %c0_542 = arith.constant 0 : index
    %c0_543 = arith.constant 0 : index
    %c0_544 = arith.constant 0 : index
    %838 = vector.load %arg29[%c1_541, %c0_542, %c0_543, %c0_544] : memref<2x2x2x32xf32, #tpu.memory_space<vmem>>, vector<1x2x2x32xf32>
    %839 = vector.shape_cast %838 : vector<1x2x2x32xf32> to vector<2x2x32xf32>
    %840 = vector.shape_cast %837 : vector<2x2x32xf32> to vector<1x2x2x32xf32>
    tpu.vector_store %arg29[%c1_541, %c0_542, %c0_543, %c0_544], %840 {strides = array<i32>} : memref<2x2x2x32xf32, #tpu.memory_space<vmem>>, vector<1x2x2x32xf32>,
    return
  }
}

</mosaic_0001>

<bundles_post_ra>
// kernel: jpr_forward.3
= control target key start
LH: loop header
LB: loop body
LE: loop exit
PB: predicated region body
PF: predicated region fallthrough
CT: control target
= control target key end

     0   :  { %vm31_vm0 = vcmask 1041408   ;;  %v269_v2 = vmov 0.0|0.0   ;;  %vm270_vm1 = vmmov 1   ;;  %vm109_vm3 = vcmask 1043456   ;;  %s337_s0 = inlined_call_operand.vmem [shape: f32[8,12], index: 0, kind: input, shape index: {}]   ;;  %s338_s1 = inlined_call_operand.vmem [shape: f32[8,10], index: 1, kind: input, shape index: {}]   ;;  %s339_s2 = inlined_call_operand.vmem [shape: f32[12,32], index: 2, kind: input, shape index: {}]   ;;  %s340_s3 = inlined_call_operand.vmem [shape: f32[10,32], index: 3, kind: input, shape index: {}]   ;;  %s341_s4 = inlined_call_operand.vmem [shape: f32[1,32], index: 4, kind: input, shape index: {}]   ;;  %s342_s5 = inlined_call_operand.hbm [shape: f32[8,32], index: 5, kind: output, shape index: {}]  }
   0x1   :  { %v25_v0 = vld [vmem:[%s340_s3] sm:$0xff]  ;;  %v26_v1 = vld [vmem:[%s340_s3 + $0x8] sm:$0x3]  ;;  %232 = vmatprep.subr.bf16.mxu0 %v269_v2  ;;  %236 = vmatprep.subr.bf16.mxu1 %v269_v2  ;;  %vm234_vm2 = vmpackc.low %vm31_vm0, %vm270_vm1  ;;  %vm271_vm5 = vmmov 0   ;;  %v272_v7 = vmov 0.0   ;;  %vm27_vm6 = vcmask 80896  }
   0x2   :  { %v233_v3 = vpack.c.bf16 %v26_v1, %v25_v0  ;;  %v22_v4 = vld [vmem:[%s339_s2] sm:$0xff]  ;;  %v23_v5 = vld [vmem:[%s339_s2 + $0x8] sm:$0xf]  ;;  %vm238_vm4 = vmpackc.low %vm109_vm3, %vm270_vm1  ;;  %222 = vmatprep.mubr.msk.f32.mxu0 %vm271_vm5, %v272_v7  ;;  %229 = vmatprep.mubr.msk.f32.mxu1 %vm271_vm5, %v272_v7 }
   0x3   :  { %v237_v6 = vpack.c.bf16 %v23_v5, %v22_v4  ;;  %v24_v8 = vld [vmem:[%s338_s1] sm:$0xff] }
   0x4   :  { %235 = vmatpush3.bf16.msk.msra.mxu0 %vm234_vm2, %v233_v3 }
   0x5   :  { %10 = vsyncpa [#allocation3], 0  ;;  %239 = vmatpush3.bf16.msk.msra.mxu1 %vm238_vm4, %v237_v6  ;;  %v21_v9 = vld [vmem:[%s337_s0] sm:$0xff]  ;;  %vm105_vm7 = vcmask 97280   ;;  %s273_s30 = smov [#allocation2]   ;;  %vm191_vm8 = vcmask 261120  }
   0x6   :  { %v211_v12 = vld [vmem:[%s341_s4] ss:$0 sm:$0xff]  ;;  %s199_s6 = sshll.u32 %s273_s30, 4  ;;  %s200_s6 = int_to_ptr.vmem [resolvable:$true] %s199_s6 }
   0x7   :  { %223 = vmatmul.mubr.msk.f32.vlgmr.msra.gmra.mrb[0].mxu0 %vm27_vm6, %v24_v8  ;;  %s245_s1 = scalar_lea.vmem %s200_s6, 128  ;;  %p250_p1 = scmp.lt.s32.totalorder %s200_s6, %s200_s6 }
   0x8   :  { %230 = vmatmul.mubr.msk.f32.vlgmr.msra.gmra.mrb[0].mxu1 %vm105_vm7, %v21_v9  ;;  %p246_p0 = scmp.ne.s32.totalorder %s200_s6, %s245_s1  ;;  %p251_p2 = scmp.lt.s32.totalorder %s245_s1, %s245_s1 }
   0xa   :  { %p252_p3 = por %p251_p2, %p250_p1 }
   0xc   :  { %p253_p4 = pnand %p252_p3, %p246_p0 }
  0xda   :  { %v101_v10 = vpop.f32.mrb[0].mxu0 }
  0xdb   :  { %v179_v11 = vpop.f32.mrb[0].mxu1  ;;  %v224_v13 = vpop.f32.mrb[1].mxu0 }
  0xdc   :  { %v180_v14 = vadd.f32 %v179_v11, %v101_v10  ;;  %v231_v15 = vpop.f32.mrb[1].mxu1 }
  0xde   :  { %v190_v16 = vadd.f32 %v211_v12, %v180_v14 }
  0xe0   :  { %192 = vst.msk [vmem:[#allocation2] sm:$0xff] %vm191_vm8, %v190_v16 }
  0xe1   :  { %256 = shalt.err (!%p253_p4)
}
  0xe2   :  { %s257_s4 = scalar_lea.hbm %s342_s5, 128 }
  0xe3   :  { %p258_p5 = scmp.ne.s32.totalorder %s342_s5, %s257_s4  ;;  %p261_p6 = scmp.lt.u32.totalorder %s257_s4, %s342_s5 }
  0xe5   :  { %p263_p7 = pnand %p261_p6, %p258_p5 }
  0xe7   :  { %266 = shalt.err (!%p263_p7)
}
  0xe8   :  { %202 = dma.vmem_to_hbm [thread:$0]  %s200_s6, 128, %s342_s5, [#allocation3]  }
  0xe9   :  { %267 = dma.done.wait [#allocation3], 128  }
  0xea   :  { %268 = vsyncadd [#allocation3], 4294967168 }
  0xeb   :  { %206 = vsyncpa [#allocation3], 1 }

// kernel: jpr_forward.2
= control target key start
LH: loop header
LB: loop body
LE: loop exit
PB: predicated region body
PF: predicated region fallthrough
CT: control target
= control target key end

     0   :  { %v10842_v0 = vmov 0.0|0.0   ;;  %s10843_s3 = smov 3   ;;  %vm10844_vm0 = vmmov 0   ;;  %v10845_v1 = vmov 0.0   ;;  %s10846_s7 = smov 1   ;;  %vm132_vm1 = vcmask 1041408   ;;  %s12072_s0 = inlined_call_operand.smem [shape: u32[30], index: -1, kind: input, shape index: {}] }
   0x1   :  { %10437 = vmatprep.subr.bf16.mxu1 %v10842_v0  ;;  %s9193_s6 = sld [smem:[%s12072_s0 + %s10843_s3]]   ;;  %10445 = vmatprep.subr.bf16.mxu0 %v10842_v0  ;;  %s10847_s11 = smov 2   ;;  %vm10848_vm2 = vmmov 1   ;;  %vm210_vm4 = vcmask 1043456   ;;  %vm128_vm5 = vcmask 80896   ;;  %vm206_vm7 = vcmask 97280  }
   0x2   :  { %9813 = vmatprep.mubr.msk.f32.mxu1 %vm10844_vm0, %v10845_v1  ;;  %s9191_s10 = sld [smem:[%s12072_s0 + %s10846_s7]]   ;;  %9831 = vmatprep.mubr.msk.f32.mxu0 %vm10844_vm0, %v10845_v1  ;;  %vm10902_vm3 = vmpackc.low %vm132_vm1, %vm10848_vm2  ;;  %s10849_s18 = smov 8   ;;  %v10851_v11 = vmov 1983009808   ;;  %v381_v13 = vlaneseq  ;;  %vm388_vm8 = vcmask 1044480   ;;  %vm385_vm9 = vcmask 39936  }
   0x3   :  { %s9192_s14 = sld [smem:[%s12072_s0 + %s10847_s11]]   ;;  %vm10443_vm6 = vmpackc.low %vm210_vm4, %vm10848_vm2  ;;  %s10850_s22 = smov 5   ;;  %v379_v12 = vunpack.c.l.s4 %v10851_v11  ;;  %vm301_vm10 = vcmask 261120   ;;  %v10856_v46 = vmov 1966171168   ;;  %vm631_vm11 = vcmask 1040384  }
   0x4   :  { %s1_s17 = sld [smem:[%s12072_s0]]   ;;  %s10852_s26 = smov 7   ;;  %v10938_v18 = vshrl.u32 %v381_v13, 7  ;;  %v559_v47 = vunpack.c.l.s4 %v10856_v46  ;;  %vm660_vm12 = vcmask 257024   ;;  %vm1103_vm13 = vcmask 130048  }
   0x5   :  { %s10919_s21 = sld [smem:[%s12072_s0 + %s10849_s18]]   ;;  %s10853_s30 = smov 9   ;;  %v380_v17 = vunpack.c.0.s8 %v379_v12  ;;  %vm1252_vm14 = vcmask 27648   ;;  %vm1275_vm15 = vcmask 31744   ;;  %vm4763_vm1 = vcmask 1041409  }
   0x6   :  { %s10924_s25 = sld [smem:[%s12072_s0 + %s10850_s22]]   ;;  %s10854_s4 = smov 6   ;;  %v560_v48 = vunpack.c.0.s8 %v559_v47  ;;  %v10989_v58 = vsub.s32 0, %v10938_v18  ;;  %vm4768_vm2 = vcmask 254976  }
   0x7   :  { %v126_v2 = vld [vmem:[%s9193_s6] sm:$0xff]  ;;  %v127_v3 = vld [vmem:[%s9193_s6 + $0x8] sm:$0x3]  ;;  %s10929_s29 = sld [smem:[%s12072_s0 + %s10852_s26]]   ;;  %v10948_v21 = vsub.s32 %v380_v17, %v10938_v18  ;;  %s10855_s8 = smov 4  }
   0x8   :  { %v10438_v5 = vpack.c.bf16 %v127_v3, %v126_v2  ;;  %v125_v8 = vld [vmem:[%s9191_s10] sm:$0xf]  ;;  %s10934_s3 = sld [smem:[%s12072_s0 + %s10853_s30]]   ;;  %s10857_s12 = smov 10   ;;  %v10984_v49 = vsub.s32 %v560_v48, %v10938_v18 }
   0x9   :  { %v123_v6 = vld [vmem:[%s9192_s14] sm:$0xff]  ;;  %v124_v7 = vld [vmem:[%s9192_s14 + $0x8] sm:$0xf]  ;;  %s10943_s7 = sld [smem:[%s12072_s0 + %s10854_s4]]   ;;  %s10860_s16 = smov 13  }
   0xa   :  { %10440 = vmatpush3.bf16.msk.msra.mxu1 %vm10902_vm3, %v10438_v5  ;;  %v10442_v9 = vpack.c.bf16 %v124_v7, %v123_v6  ;;  %v122_v10 = vld [vmem:[%s1_s17] sm:$0xf]  ;;  %s9194_s11 = sld [smem:[%s12072_s0 + %s10855_s8]]   ;;  %s10861_s20 = smov 15  }
   0xb   :  { %10441 = vmatprep.subr.bf16.mxu1 %v10842_v0  ;;  %v297_v14 = vld [vmem:[%s10919_s21] sm:$0xff]  ;;  %v298_v15 = vld [vmem:[%s10919_s21 + $0x8] sm:$0xff]  ;;  %v299_v23 = vld [vmem:[%s10919_s21 + $0x10] sm:$0xff]  ;;  %s10981_s15 = sld [smem:[%s12072_s0 + %s10857_s12]]   ;;  %s10862_s26 = smov 11  }
   0xc   :  { %v10446_v16 = vpack.c.bf16 %v298_v15, %v297_v14  ;;  %v292_v19 = vld [vmem:[%s10924_s25] sm:$0x3]  ;;  %v293_v20 = vld [vmem:[%s10924_s25 + $0x2] sm:$0x3]  ;;  %v300_v24 = vld [vmem:[%s10919_s21 + $0x18] sm:$0xff]  ;;  %s11041_s19 = sld [smem:[%s12072_s0 + %s10860_s16]]   ;;  %s10863_s1 = smov 12  }
   0xd   :  { %9814 = vmatmul.mubr.msk.f32.vlgmr.msra.gmra.mrb[0].mxu1 %vm128_vm5, %v125_v8  ;;  %v377_v22 = vcombine.low %v292_v19, %v293_v20  ;;  %v296_v25 = vld [vmem:[%s10929_s29] sm:$0x1f]  ;;  %v10449_v26 = vpack.c.bf16 %v300_v24, %v299_v23  ;;  %v10858_v24 = vmov 269488144   ;;  %s11046_s24 = sld [smem:[%s12072_s0 + %s10861_s20]]   ;;  %s10864_s6 = smov 17  }
   0xe   :  { %10444 = vmatpush3.bf16.msk.msra.mxu1 %vm10443_vm6, %v10442_v9  ;;  %9820 = vmatprep.mubr.msk.f32.mxu1 %vm10844_vm0, %v10845_v1  ;;  %v462_v28 = vld [vmem:[%s10934_s3] sm:$0xff]  ;;  %v463_v29 = vld [vmem:[%s10934_s3 + $0x8] sm:$0x3]  ;;  %s11063_s30 = sld [smem:[%s12072_s0 + %s10862_s26]]   ;;  %s10866_s16 = smov 16   ;;  %vm4782_vm6 = vcmask 1042434  }
   0xf   :  { %9834 = vmatprep.subr.mxu1 %v10845_v1  ;;  %10447 = vmatpush3.bf16.msra.mxu0 %v10446_v16  ;;  %v384_v27 = vrot.slane %v377_v22, %v10948_v21  ;;  %v10452_v30 = vpack.c.bf16 %v463_v29, %v462_v28  ;;  %v294_v31 = vld [vmem:[%s10943_s7] sm:$0x3]  ;;  %v295_v32 = vld [vmem:[%s10943_s7 + $0x2] sm:$0x3]  ;;  %s11068_s5 = sld [smem:[%s12072_s0 + %s10863_s1]]   ;;  %s10867_s22 = smov 18  }
  0x10   :  { %10448 = vmatprep.subr.bf16.mxu0 %v10842_v0  ;;  %v466_v33 = vcombine.low %v294_v31, %v295_v32  ;;  %v9224_v38 = vld [vmem:[%s9194_s11] ss:$0 sm:$0xff]  ;;  %s11083_s10 = sld [smem:[%s12072_s0 + %s10864_s6]]   ;;  %s10865_s11 = smov 14  }
  0x11   :  { %9821 = vmatmul.mubr.msk.f32.vlgmr.msra.gmra.mrb[2].mxu1 %vm206_vm7, %v122_v10  ;;  %v9230_v53 = vld [vmem:[%s10981_s15] ss:$0 sm:$0xff]  ;;  %s11124_s14 = sld [smem:[%s12072_s0 + %s10865_s11]]   ;;  %s10868_s28 = smov 19   ;;  %vm4784_vm7 = vcmask 1043459  }
  0x12   :  { %9836 = vmatprep.mubr.msk.f32.mxu1 %vm10844_vm0, %v10845_v1  ;;  %9835 = vmatpush3.msk.msra.mxu1 %vm388_vm8, %v296_v25  ;;  %v473_v34 = vrot.slane %v466_v33, %v10948_v21  ;;  %v673_v25 = vunpack.c.l.s4 %v10858_v24  ;;  %s11129_s20 = sld [smem:[%s12072_s0 + %s10866_s16]]   ;;  %s10869_s6 = smov 20  }
  0x13   :  { %10450 = vmatpush3.bf16.msra.mxu0 %v10449_v26  ;;  %10451 = vmatprep.subr.bf16.mxu1 %v10842_v0  ;;  %v10859_v26 = vmov 842150450   ;;  %s11136_s27 = sld [smem:[%s12072_s0 + %s10867_s22]]   ;;  %s10870_s12 = smov 25  }
  0x14   :  { %10455 = vmatprep.subr.bf16.mxu0 %v10842_v0  ;;  %v674_v28 = vunpack.c.0.s8 %v673_v25  ;;  %s11186_s4 = sld [smem:[%s12072_s0 + %s10868_s28]]   ;;  %s10871_s18 = smov 21  }
  0x15   :  { %9837 = vmatmul.mubr.msk.f32.vlgmr.msra.gmra.mrb[4].mxu1 %vm385_vm9, %v384_v27  ;;  %v680_v27 = vunpack.c.l.s4 %v10859_v26  ;;  %s11240_s11 = sld [smem:[%s12072_s0 + %s10869_s6]]   ;;  %s10872_s28 = smov 22  }
  0x16   :  { %9843 = vmatprep.mubr.msk.f32.mxu1 %vm10844_vm0, %v10845_v1  ;;  %10454 = vmatpush3.bf16.msk.msra.mxu1 %vm10902_vm3, %v10452_v30  ;;  %v11009_v30 = vsub.s32 %v674_v28, %v10938_v18  ;;  %s11264_s17 = sld [smem:[%s12072_s0 + %s10870_s12]]   ;;  %s10873_s8 = smov 27  }
  0x17   :  { %10461 = vmatprep.subr.bf16.mxu1 %v10842_v0  ;;  %v681_v29 = vunpack.c.0.s8 %v680_v27  ;;  %s11275_s26 = sld [smem:[%s12072_s0 + %s10871_s18]]   ;;  %s10874_s16 = smov 26  }
  0x18   :  { %s11280_s6 = sld [smem:[%s12072_s0 + %s10872_s28]]   ;;  %s10875_s28 = smov 28  }
  0x19   :  { %9844 = vmatmul.mubr.msk.f32.vlgmr.msra.gmra.mrb[6].mxu1 %vm128_vm5, %v473_v34  ;;  %v11012_v31 = vsub.s32 %v681_v29, %v10938_v18  ;;  %s11298_s13 = sld [smem:[%s12072_s0 + %s10873_s8]]   ;;  %s10876_s9 = smov 23  }
  0x1a   :  { %9865 = vmatprep.mubr.msk.f32.mxu1 %vm10844_vm0, %v10845_v1  ;;  %s11309_s23 = sld [smem:[%s12072_s0 + %s10874_s16]]   ;;  %s10877_s22 = smov 24  }
  0x1b   :  { %s11318_s8 = sld [smem:[%s12072_s0 + %s10875_s28]]  }
  0x1c   :  { %s11350_s18 = sld [smem:[%s12072_s0 + %s10876_s9]]  }
  0x1d   :  { %s11355_s2 = sld [smem:[%s12072_s0 + %s10877_s22]]  }
  0xe0   :  { %v202_v35 = vpop.f32.mrb[0].mxu1 }
  0xe1   :  { %v9815_v36 = vpop.f32.mrb[1].mxu1 }
  0xe4   :  { %v280_v37 = vpop.f32.mrb[2].mxu1 }
  0xe5   :  { %v281_v39 = vadd.f32 %v280_v37, %v202_v35  ;;  %v9822_v40 = vpop.f32.mrb[3].mxu1 }
  0xe7   :  { %v291_v41 = vadd.f32 %v9224_v38, %v281_v39 }
  0xe8   :  { %v458_v42 = vpop.f32.mrb[4].mxu1 }
  0xe9   :  { %9832 = vmatmul.mubr.msk.f32.vlgmr.msra.gmra.mrb[0].mxu0 %vm301_vm10, %v291_v41  ;;  %v9838_v43 = vpop.f32.mrb[5].mxu1  ;;  %v564_v54 = vrot.slane %v291_v41, %v10984_v49 }
  0xea   :  { %9854 = vmatprep.mubr.msk.f32.mxu0 %vm10844_vm0, %v10845_v1 }
  0xeb   :  { %v565_v57 = vcombine.high %v564_v54, %v564_v54  ;;  %v572_v60 = vrot.slane %v564_v54, %v10984_v49  ;;  %v830_v54 = vld [vmem:[%s11041_s19] sm:$0xff] }
  0xec   :  { %v545_v44 = vpop.f32.mrb[6].mxu1 }
  0xed   :  { %v9845_v45 = vpop.f32.mrb[7].mxu1  ;;  %v579_v63 = vrot.slane %v565_v57, %v10984_v49  ;;  %v580_v6 = vcombine.high %v572_v60, %v572_v60  ;;  %v935_v57 = vld [vmem:[%s11046_s24] sm:$0xff] }
  0xef   :  { %v581_v12 = vcombine.high %v579_v63, %v579_v63 }
 0x1bc   :  { %v371_v50 = vpop.f32.mrb[0].mxu0 }
 0x1bd   :  { %v459_v51 = vadd.f32 %v458_v42, %v371_v50  ;;  %v9833_v52 = vpop.f32.mrb[1].mxu0 }
 0x1bf   :  { %v549_v55 = vadd.f32 %v545_v44, %v459_v51 }
 0x1c1   :  { %v557_v56 = vadd.f32 %v9230_v53, %v549_v55  ;;  %v831_v55 = vld [vmem:[%s11041_s19 + $0x8] sm:$0xff] }
 0x1c3   :  { %v593_v59 = vrot.slane %v557_v56, %v10984_v49  ;;  %v10456_v56 = vpack.c.bf16 %v831_v55, %v830_v54 }
 0x1c5   :  { %v594_v61 = vcombine.high %v593_v59, %v593_v59  ;;  %v601_v62 = vrot.slane %v593_v59, %v10984_v49  ;;  %v936_v59 = vld [vmem:[%s11046_s24 + $0x8] sm:$0xff]  ;;  %10457 = vmatpush3.bf16.msra.mxu0 %v10456_v56 }
 0x1c6   :  { %10458 = vmatprep.subr.bf16.mxu0 %v10842_v0 }
 0x1c7   :  { %v608_v2 = vrot.slane %v594_v61, %v10984_v49  ;;  %v609_v3 = vcombine.high %v601_v62, %v601_v62  ;;  %v614_v5 = vrot.slane %v601_v62, %v10989_v58  ;;  %v832_v61 = vld [vmem:[%s11041_s19 + $0x10] sm:$0xff]  ;;  %v833_v62 = vld [vmem:[%s11041_s19 + $0x18] sm:$0xff] }
 0x1c9   :  { %v610_v7 = vcombine.high %v608_v2, %v608_v2  ;;  %v618_v8 = vrot.slane %v608_v2, %v10989_v58  ;;  %v632_v9 = vsel %vm631_vm11, %v572_v60, %v614_v5  ;;  %v622_v10 = vrot.slane %v609_v3, %v10989_v58  ;;  %v937_v2 = vld [vmem:[%s11046_s24 + $0x10] sm:$0xff]  ;;  %v938_v3 = vld [vmem:[%s11046_s24 + $0x18] sm:$0xff] }
 0x1ca   :  { %v10462_v60 = vpack.c.bf16 %v936_v59, %v935_v57  ;;  %v10465_v5 = vpack.c.bf16 %v938_v3, %v937_v2 }
 0x1cb   :  { %v633_v11 = vsel %vm631_vm11, %v579_v63, %v618_v8  ;;  %v626_v13 = vrot.slane %v610_v7, %v10989_v58  ;;  %v634_v14 = vsel %vm631_vm11, %v580_v6, %v622_v10  ;;  %v10459_v63 = vpack.c.bf16 %v833_v62, %v832_v61  ;;  %v9238_v62 = vld [vmem:[%s11136_s27] ss:$0 sm:$0xff] }
 0x1cc   :  { %v642_v15 = vcombine.low %v632_v9, %v633_v11  ;;  %10463 = vmatpush3.bf16.msra.mxu1 %v10462_v60 }
 0x1cd   :  { %v635_v16 = vsel %vm631_vm11, %v581_v12, %v626_v13  ;;  %10464 = vmatprep.subr.bf16.mxu1 %v10842_v0  ;;  %10460 = vmatpush3.bf16.msra.mxu0 %v10459_v63  ;;  %v9231_v12 = vld [vmem:[%s11063_s30] ss:$0 sm:$0xff] }
 0x1ce   :  { %v649_v17 = vrot.slane %v642_v15, %v10948_v21  ;;  %v650_v19 = vcombine.low %v634_v14, %v635_v16  ;;  %10467 = vmatprep.subr.bf16.mxu0 %v10842_v0  ;;  %v9232_v13 = vld [vmem:[%s11068_s5] ss:$0 sm:$0xff] }
 0x1cf   :  { %v814_v15 = vrot.slane %v9232_v13, %v10948_v21 }
 0x1d0   :  { %v661_v20 = vsel %vm660_vm12, %v649_v17, 0.0  ;;  %v657_v22 = vrot.slane %v650_v19, %v10948_v21  ;;  %10466 = vmatpush3.bf16.msra.mxu1 %v10465_v5 }
 0x1d1   :  { %662 = vadd.xlane.f32.xlu0 %v661_v20  ;;  %9879 = vmatprep.subr.mxu1 %v10845_v1 }
 0x1d2   :  { %v664_v23 = vsel %vm660_vm12, %v657_v22, 0.0  ;;  %v815_v22 = vcombine.high %v814_v15, %v814_v15 }
 0x1d5   :  { %665 = vadd.xlane.f32.xlu0 %v664_v23 }
 0x25e   :  { %v663_v32 = vpop.xlane.xlu0 %662 }
 0x25f   :  { %v668_v33 = vmul.f32 0.03125, %v663_v32 }
 0x261   :  { %v678_v34 = vrot.slane %v668_v33, %v11009_v30  ;;  %v685_v35 = vrot.slane %v668_v33, %v11012_v31 }
 0x262   :  { %v666_v36 = vpop.xlane.xlu0 %665 }
 0x263   :  { %v11016_v37 = vsub.f32 %v632_v9, %v678_v34  ;;  %v11018_v38 = vsub.f32 %v633_v11, %v685_v35  ;;  %v669_v39 = vmul.f32 0.03125, %v666_v36 }
 0x265   :  { %v692_v40 = vrot.slane %v669_v39, %v11009_v30  ;;  %v699_v41 = vrot.slane %v669_v39, %v11012_v31  ;;  %v708_v18 = vmul.f32 %v11016_v37, %v11016_v37  ;;  %v709_v42 = vmul.f32 %v11018_v38, %v11018_v38 }
 0x267   :  { %v11026_v43 = vsub.f32 %v634_v14, %v692_v40  ;;  %v11028_v44 = vsub.f32 %v635_v16, %v699_v41  ;;  %v716_v45 = vcombine.low %v708_v18, %v709_v42  ;;  %v795_v14 = vrot.slane %v9231_v12, %v10948_v21  ;;  %v1016_v18 = vld [vmem:[%s11083_s10] sm:$0xff]  ;;  %v1017_v42 = vld [vmem:[%s11083_s10 + $0x8] sm:$0xff] }
 0x269   :  { %v723_v46 = vrot.slane %v716_v45, %v10948_v21  ;;  %v710_v47 = vmul.f32 %v11026_v43, %v11026_v43  ;;  %v711_v48 = vmul.f32 %v11028_v44, %v11028_v44  ;;  %v796_v17 = vcombine.high %v795_v14, %v795_v14 }
 0x26b   :  { %v734_v50 = vsel %vm660_vm12, %v723_v46, 0.0  ;;  %v724_v51 = vcombine.low %v710_v47, %v711_v48  ;;  %v10468_v46 = vpack.c.bf16 %v1017_v42, %v1016_v18  ;;  %v1018_v47 = vld [vmem:[%s11083_s10 + $0x10] sm:$0xff]  ;;  %v1019_v48 = vld [vmem:[%s11083_s10 + $0x18] sm:$0xff]  ;;  %v9263_v42 = vld [vmem:[%s11083_s10 + $0x20] sm:$0xff] }
 0x26c   :  { %735 = vadd.xlane.f32.xlu1 %v734_v50  ;;  %v10471_v50 = vpack.c.bf16 %v1019_v48, %v1018_v47  ;;  %v9266_v47 = vld [vmem:[%s11083_s10 + $0x38] sm:$0xff] }
 0x26d   :  { %v731_v52 = vrot.slane %v724_v51, %v10948_v21  ;;  %v9234_v51 = vld [vmem:[%s11124_s14] ss:$0 sm:$0xff] }
 0x26f   :  { %v737_v53 = vsel %vm660_vm12, %v731_v52, 0.0  ;;  %v9236_v52 = vld [vmem:[%s11129_s20] ss:$0 sm:$0xff] }
 0x270   :  { %738 = vadd.xlane.f32.xlu1 %v737_v53 }
 0x2f9   :  { %v736_v6 = vpop.xlane.xlu1 %735 }
 0x2fa   :  { %v740_v7 = vmul.f32 0.03125, %v736_v6 }
 0x2fc   :  { %v742_v8 = vadd.f32 1e-05, %v740_v7 }
 0x2fd   :  { %v739_v9 = vpop.xlane.xlu1 %738 }
 0x2fe   :  { %10730 = vrsqrt.f32 %v742_v8  ;;  %v741_v10 = vmul.f32 0.03125, %v739_v9 }
 0x300   :  { %v743_v11 = vadd.f32 1e-05, %v741_v10 }
 0x302   :  { %10732 = vrsqrt.f32 %v743_v11 }
 0x308   :  { %v10731_v16 = vpop.eup %10730 }
 0x309   :  { %v754_v19 = vrot.slane %v10731_v16, %v11009_v30  ;;  %v761_v20 = vrot.slane %v10731_v16, %v11012_v31 }
 0x30b   :  { %v780_v23 = vmul.f32 %v754_v19, %v11016_v37  ;;  %v781_v24 = vmul.f32 %v761_v20, %v11018_v38 }
 0x30c   :  { %v10733_v25 = vpop.eup %10732 }
 0x30d   :  { %v799_v26 = vmul.f32 %v795_v14, %v780_v23  ;;  %v800_v27 = vmul.f32 %v796_v17, %v781_v24  ;;  %v768_v28 = vrot.slane %v10733_v25, %v11009_v30  ;;  %v775_v29 = vrot.slane %v10733_v25, %v11012_v31 }
 0x30f   :  { %v11085_v32 = vadd.f32 %v814_v15, %v799_v26  ;;  %v11087_v33 = vadd.f32 %v815_v22, %v800_v27  ;;  %v782_v34 = vmul.f32 %v768_v28, %v11026_v43  ;;  %v783_v35 = vmul.f32 %v775_v29, %v11028_v44  ;;  %v9249_v29 = vld [vmem:[%s11041_s19 + $0x20] sm:$0xff] }
 0x311   :  { %v801_v36 = vmul.f32 %v795_v14, %v782_v34  ;;  %v802_v37 = vmul.f32 %v796_v17, %v783_v35  ;;  %v845_v38 = vcombine.low %v11085_v32, %v11087_v33  ;;  %v9250_v34 = vld [vmem:[%s11041_s19 + $0x28] sm:$0xff] }
 0x313   :  { %v11093_v39 = vadd.f32 %v814_v15, %v801_v36  ;;  %v11095_v40 = vadd.f32 %v815_v22, %v802_v37  ;;  %v853_v45 = vrot.slane %v845_v38, %v10948_v21  ;;  %v10477_v36 = vpack.c.bf16 %v9250_v34, %v9249_v29  ;;  %v9251_v38 = vld [vmem:[%s11041_s19 + $0x30] sm:$0xff] }
 0x315   :  { %v846_v41 = vcombine.low %v11093_v39, %v11095_v40 }
 0x317   :  { %v860_v43 = vrot.slane %v846_v41, %v10948_v21  ;;  %v9252_v41 = vld [vmem:[%s11041_s19 + $0x38] sm:$0xff] }
 0x318   :  { %v10480_v18 = vpack.c.bf16 %v9252_v41, %v9251_v38 }
 0x319   :  { %v11103_v44 = vcombine.low %v853_v45, %v860_v43  ;;  %v9264_v45 = vld [vmem:[%s11083_s10 + $0x28] sm:$0xff] }
 0x31a   :  { %v10489_v43 = vpack.c.bf16 %v9264_v45, %v9263_v42 }
 0x31b   :  { %9855 = vmatmul.mubr.msk.f32.vlgmr.msra.gmra.mrb[2].mxu0 %vm301_vm10, %v11103_v44  ;;  %9866 = vmatmul.mubr.msk.f32.vlgmr.msra.gmra.mrb[8].mxu1 %vm301_vm10, %v11103_v44 }
 0x31c   :  { %10469 = vmatpush3.bf16.msra.mxu0 %v10468_v46  ;;  %9876 = vmatprep.mubr.msk.f32.mxu0 %vm10844_vm0, %v10845_v1  ;;  %v9265_v46 = vld [vmem:[%s11083_s10 + $0x30] sm:$0xff] }
 0x31d   :  { %10470 = vmatprep.subr.bf16.mxu0 %v10842_v0  ;;  %9881 = vmatprep.mubr.msk.f32.mxu1 %vm10844_vm0, %v10845_v1  ;;  %v10492_v48 = vpack.c.bf16 %v9266_v47, %v9265_v46 }
 0x320   :  { %10472 = vmatpush3.bf16.msra.mxu0 %v10471_v50  ;;  %v1426_v50 = vld [vmem:[%s11186_s4] sm:$0xff] }
 0x321   :  { %9889 = vmatprep.subr.mxu0 %v10845_v1 }
 0x323   :  { %9877 = vmatmul.mubr.msk.f32.vlgmr.msra.gmra.mrb[4].mxu0 %vm301_vm10, %v11103_v44 }
 0x324   :  { %9891 = vmatprep.mubr.msk.f32.mxu0 %vm10844_vm0, %v10845_v1 }
 0x3ee   :  { %v930_v53 = vpop.f32.mrb[2].mxu0  ;;  %v1012_v54 = vpop.f32.mrb[8].mxu1 }
 0x3ef   :  { %v931_v55 = vadd.f32 %v9234_v51, %v930_v53  ;;  %v1013_v56 = vadd.f32 %v9236_v52, %v1012_v54  ;;  %v9856_v57 = vpop.f32.mrb[3].mxu0  ;;  %v9867_v59 = vpop.f32.mrb[9].mxu1  ;;  %v1427_v51 = vld [vmem:[%s11186_s4 + $0x8] sm:$0xff] }
 0x3f0   :  { %v10474_v52 = vpack.c.bf16 %v1427_v51, %v1426_v50  ;;  %v9278_v50 = vld [vmem:[%s11186_s4 + $0x10] sm:$0xff]  ;;  %v9279_v51 = vld [vmem:[%s11186_s4 + $0x18] sm:$0xff] }
 0x3f1   :  { %v934_v60 = vmul.f32 0.25, %v931_v55  ;;  %9880 = vmatpush3.xpose.msk.msra.mxu1 %vm1103_vm13, %v1013_v56  ;;  %v1100_v61 = vcombine.high %v1013_v56, %v1013_v56  ;;  %v9256_v55 = vld [vmem:[%s11046_s24 + $0x20] sm:$0xff]  ;;  %v9257_v56 = vld [vmem:[%s11046_s24 + $0x28] sm:$0xff] }
 0x3f2   :  { %9884 = vmatprep.subr.mxu1 %v10845_v1  ;;  %v10483_v59 = vpack.c.bf16 %v9257_v56, %v9256_v55 }
 0x3f3   :  { %v1098_v63 = vcombine.high %v934_v60, %v934_v60 }
 0x3f4   :  { %9882 = vmatmul.mubr.msk.f32.vlgmr.msra.gmra.mrb[10].mxu1 %vm1103_vm13, %v934_v60 }
 0x3f5   :  { %9885 = vmatpush3.xpose.msk.msra.mxu1 %vm1103_vm13, %v1100_v61  ;;  %9886 = vmatprep.mubr.msk.f32.mxu1 %vm10844_vm0, %v10845_v1 }
 0x3f6   :  { %v1093_v2 = vpop.f32.mrb[4].mxu0  ;;  %9894 = vmatprep.subr.mxu1 %v10845_v1 }
 0x3f7   :  { %v1094_v3 = vadd.f32 %v9238_v62, %v1093_v2  ;;  %v9878_v5 = vpop.f32.mrb[5].mxu0  ;;  %v9258_v62 = vld [vmem:[%s11046_s24 + $0x30] sm:$0xff] }
 0x3f8   :  { %9887 = vmatmul.mubr.msk.f32.vlgmr.msra.gmra.mrb[12].mxu1 %vm1103_vm13, %v1098_v63  ;;  %v9259_v63 = vld [vmem:[%s11046_s24 + $0x38] sm:$0xff] }
 0x3f9   :  { %v1102_v6 = vcombine.high %v1094_v3, %v1094_v3  ;;  %9890 = vmatpush3.msk.msra.mxu0 %vm210_vm4, %v1094_v3  ;;  %9896 = vmatprep.mubr.msk.f32.mxu1 %vm10844_vm0, %v10845_v1  ;;  %v10486_v2 = vpack.c.bf16 %v9259_v63, %v9258_v62 }
 0x3fa   :  { %10473 = vmatprep.subr.bf16.mxu0 %v10842_v0 }
 0x3fb   :  { %9895 = vmatpush3.msk.msra.mxu1 %vm210_vm4, %v1102_v6  ;;  %v9268_v6 = vld [vmem:[%s11136_s27 + $0x1] ss:$0 sm:$0xff] }
 0x3fc   :  { %10476 = vmatprep.subr.bf16.mxu1 %v10842_v0 }
 0x4c7   :  { %v1174_v7 = vpop.f32.mrb[10].mxu1 }
 0x4c8   :  { %v9883_v8 = vpop.f32.mrb[11].mxu1  ;;  %v1253_v9 = vsel %vm1252_vm14, %v1174_v7, -inf }
 0x4c9   :  { %1254 = vmax.xlane.f32.xlu0 %v1253_v9 }
 0x4cb   :  { %v1248_v10 = vpop.f32.mrb[12].mxu1 }
 0x4cc   :  { %v9888_v11 = vpop.f32.mrb[13].mxu1  ;;  %v1256_v12 = vsel %vm1252_vm14, %v1248_v10, -inf }
 0x4cd   :  { %1257 = vmax.xlane.f32.xlu1 %v1256_v12  ;;  %v9261_v11 = vld [vmem:[%s11129_s20 + $0x1] ss:$0 sm:$0xff] }
 0x556   :  { %v1255_v13 = vpop.xlane.xlu0 %1254 }
 0x557   :  { %v1259_v14 = vsub.f32 %v1174_v7, %v1255_v13 }
 0x559   :  { %v1261_v15 = vmul.f32 1.442695, %v1259_v14 }
 0x55a   :  { %v1258_v16 = vpop.xlane.xlu1 %1257 }
 0x55b   :  { %10734 = vpow2.f32 %v1261_v15  ;;  %v1260_v17 = vsub.f32 %v1248_v10, %v1258_v16  ;;  %v9254_v10 = vld [vmem:[%s11124_s14 + $0x1] ss:$0 sm:$0xff] }
 0x55d   :  { %v1263_v19 = vmul.f32 1.442695, %v1260_v17 }
 0x55f   :  { %10736 = vpow2.f32 %v1263_v19 }
 0x565   :  { %v10735_v20 = vpop.eup %10734 }
 0x566   :  { %v1265_v22 = vsel %vm1252_vm14, %v10735_v20, 0.0 }
 0x567   :  { %1266 = vadd.xlane.f32.xlu0 %v1265_v22 }
 0x569   :  { %v10737_v23 = vpop.eup %10736 }
 0x56a   :  { %v1268_v24 = vsel %vm1252_vm14, %v10737_v23, 0.0 }
 0x56b   :  { %1269 = vadd.xlane.f32.xlu1 %v1268_v24 }
 0x5f4   :  { %v1267_v25 = vpop.xlane.xlu0 %1266 }
 0x5f5   :  { %10738 = vrcp.f32 %v1267_v25 }
 0x5f8   :  { %v1270_v26 = vpop.xlane.xlu1 %1269 }
 0x5f9   :  { %10740 = vrcp.f32 %v1270_v26 }
 0x5ff   :  { %v10739_v27 = vpop.eup %10738 }
 0x600   :  { %v1273_v28 = vmul.f32 %v10739_v27, %v10735_v20 }
 0x602   :  { %9892 = vmatmul.mubr.msk.f32.vlgmr.msra.gmra.mrb[6].mxu0 %vm1275_vm15, %v1273_v28 }
 0x603   :  { %v10741_v35 = vpop.eup %10740  ;;  %9903 = vmatprep.mubr.msk.f32.mxu0 %vm10844_vm0, %v10845_v1  ;;  %10475 = vmatpush3.bf16.msra.mxu0 %v10474_v52  ;;  %v10495_v52 = vpack.c.bf16 %v9279_v51, %v9278_v50 }
 0x604   :  { %v1274_v37 = vmul.f32 %v10741_v35, %v10737_v23  ;;  %10482 = vmatprep.subr.bf16.mxu0 %v10842_v0 }
 0x606   :  { %9897 = vmatmul.mubr.msk.f32.vlgmr.msra.gmra.mrb[14].mxu1 %vm1275_vm15, %v1274_v37 }
 0x607   :  { %10478 = vmatpush3.bf16.msra.mxu1 %v10477_v36  ;;  %9914 = vmatprep.mubr.msk.f32.mxu1 %vm10844_vm0, %v10845_v1 }
 0x608   :  { %10479 = vmatprep.subr.bf16.mxu1 %v10842_v0 }
 0x60b   :  { %10481 = vmatpush3.bf16.msra.mxu1 %v10480_v18 }
 0x60c   :  { %10488 = vmatprep.subr.bf16.mxu1 %v10842_v0 }
 0x60e   :  { %9915 = vmatmul.mubr.msk.f32.vlgmr.msra.gmra.mrb[16].mxu1 %vm301_vm10, %v11103_v44 }
 0x60f   :  { %10490 = vmatpush3.bf16.msra.mxu1 %v10489_v43  ;;  %9936 = vmatprep.mubr.msk.f32.mxu1 %vm10844_vm0, %v10845_v1 }
 0x610   :  { %10491 = vmatprep.subr.bf16.mxu1 %v10842_v0 }
 0x613   :  { %10493 = vmatpush3.bf16.msra.mxu1 %v10492_v48 }
 0x614   :  { %9949 = vmatprep.subr.mxu1 %v10845_v1 }
 0x616   :  { %9937 = vmatmul.mubr.msk.f32.vlgmr.msra.gmra.mrb[18].mxu1 %vm301_vm10, %v11103_v44 }
 0x617   :  { %9951 = vmatprep.mubr.msk.f32.mxu1 %vm10844_vm0, %v10845_v1 }
 0x6d5   :  { %v1347_v53 = vpop.f32.mrb[6].mxu0 }
 0x6d6   :  { %v9893_v54 = vpop.f32.mrb[7].mxu0 }
 0x6d9   :  { %v1422_v57 = vpop.f32.mrb[14].mxu1 }
 0x6da   :  { %v1430_v60 = vcombine.low %v1347_v53, %v1422_v57  ;;  %v9898_v61 = vpop.f32.mrb[15].mxu1 }
 0x6dc   :  { %9904 = vmatmul.mubr.msk.f32.vlgmr.msra.gmra.mrb[8].mxu0 %vm1103_vm13, %v1430_v60 }
 0x6dd   :  { %10484 = vmatpush3.bf16.msra.mxu0 %v10483_v59  ;;  %9925 = vmatprep.mubr.msk.f32.mxu0 %vm10844_vm0, %v10845_v1  ;;  %v9233_v59 = vld [vmem:[%s11240_s11] ss:$0 sm:$0xff] }
 0x6de   :  { %10485 = vmatprep.subr.bf16.mxu0 %v10842_v0 }
 0x6e1   :  { %v1583_v3 = vpop.f32.mrb[16].mxu1  ;;  %10487 = vmatpush3.bf16.msra.mxu0 %v10486_v2 }
 0x6e2   :  { %v9916_v5 = vpop.f32.mrb[17].mxu1  ;;  %9939 = vmatprep.subr.mxu0 %v10845_v1  ;;  %v1584_v12 = vadd.f32 %v9254_v10, %v1583_v3 }
 0x6e4   :  { %9926 = vmatmul.mubr.msk.f32.vlgmr.msra.gmra.mrb[10].mxu0 %vm301_vm10, %v11103_v44  ;;  %v1587_v44 = vmul.f32 0.25, %v1584_v12 }
 0x6e5   :  { %9941 = vmatprep.mubr.msk.f32.mxu0 %vm10844_vm0, %v10845_v1 }
 0x6e6   :  { %v1755_v17 = vcombine.high %v1587_v44, %v1587_v44 }
 0x6e9   :  { %v1750_v7 = vpop.f32.mrb[18].mxu1 }
 0x6ea   :  { %v1751_v8 = vadd.f32 %v9268_v6, %v1750_v7  ;;  %v9938_v9 = vpop.f32.mrb[19].mxu1 }
 0x6ec   :  { %9950 = vmatpush3.msk.msra.mxu1 %vm210_vm4, %v1751_v8  ;;  %v1759_v19 = vcombine.high %v1751_v8, %v1751_v8 }
 0x6ed   :  { %10497 = vmatprep.subr.bf16.mxu1 %v10842_v0 }
 0x7b7   :  { %v1667_v13 = vpop.f32.mrb[10].mxu0 }
 0x7b8   :  { %v1668_v14 = vadd.f32 %v9261_v11, %v1667_v13  ;;  %v9927_v15 = vpop.f32.mrb[11].mxu0 }
 0x7ba   :  { %9940 = vmatpush3.xpose.msk.msra.mxu0 %vm1103_vm13, %v1668_v14  ;;  %v1757_v16 = vcombine.high %v1668_v14, %v1668_v14 }
 0x7bb   :  { %9944 = vmatprep.subr.mxu0 %v10845_v1 }
 0x7bd   :  { %9942 = vmatmul.mubr.msk.f32.vlgmr.msra.gmra.mrb[12].mxu0 %vm1103_vm13, %v1587_v44 }
 0x7be   :  { %9945 = vmatpush3.xpose.msk.msra.mxu0 %vm1103_vm13, %v1757_v16  ;;  %9946 = vmatprep.mubr.msk.f32.mxu0 %vm10844_vm0, %v10845_v1 }
 0x7bf   :  { %9954 = vmatprep.subr.mxu0 %v10845_v1 }
 0x7c1   :  { %9947 = vmatmul.mubr.msk.f32.vlgmr.msra.gmra.mrb[14].mxu0 %vm1103_vm13, %v1755_v17 }
 0x7c2   :  { %9955 = vmatpush3.msk.msra.mxu0 %vm210_vm4, %v1759_v19  ;;  %9956 = vmatprep.mubr.msk.f32.mxu0 %vm10844_vm0, %v10845_v1 }
 0x7c3   :  { %10494 = vmatprep.subr.bf16.mxu0 %v10842_v0 }
 0x890   :  { %v1830_v20 = vpop.f32.mrb[12].mxu0 }
 0x891   :  { %v9943_v22 = vpop.f32.mrb[13].mxu0  ;;  %v1908_v23 = vsel %vm1252_vm14, %v1830_v20, -inf }
 0x892   :  { %1909 = vmax.xlane.f32.xlu0 %v1908_v23 }
 0x894   :  { %v1904_v24 = vpop.f32.mrb[14].mxu0 }
 0x895   :  { %v9948_v25 = vpop.f32.mrb[15].mxu0  ;;  %v1911_v26 = vsel %vm1252_vm14, %v1904_v24, -inf }
 0x896   :  { %1912 = vmax.xlane.f32.xlu1 %v1911_v26 }
 0x91f   :  { %v1910_v27 = vpop.xlane.xlu0 %1909 }
 0x920   :  { %v1914_v28 = vsub.f32 %v1830_v20, %v1910_v27 }
 0x922   :  { %v1916_v29 = vmul.f32 1.442695, %v1914_v28 }
 0x923   :  { %v1913_v34 = vpop.xlane.xlu1 %1912 }
 0x924   :  { %10742 = vpow2.f32 %v1916_v29  ;;  %v1915_v35 = vsub.f32 %v1904_v24, %v1913_v34 }
 0x926   :  { %v1918_v36 = vmul.f32 1.442695, %v1915_v35 }
 0x928   :  { %10744 = vpow2.f32 %v1918_v36 }
 0x92e   :  { %v10743_v37 = vpop.eup %10742 }
 0x92f   :  { %v1920_v38 = vsel %vm1252_vm14, %v10743_v37, 0.0 }
 0x930   :  { %1921 = vadd.xlane.f32.xlu0 %v1920_v38 }
 0x932   :  { %v10745_v41 = vpop.eup %10744 }
 0x933   :  { %v1923_v18 = vsel %vm1252_vm14, %v10745_v41, 0.0 }
 0x934   :  { %1924 = vadd.xlane.f32.xlu1 %v1923_v18  ;;  %v2369_v18 = vld [vmem:[%s11264_s17] sm:$0xff] }
 0x9bd   :  { %v1922_v42 = vpop.xlane.xlu0 %1921 }
 0x9be   :  { %10746 = vrcp.f32 %v1922_v42  ;;  %v2370_v42 = vld [vmem:[%s11264_s17 + $0x8] sm:$0xff] }
 0x9c1   :  { %v1925_v45 = vpop.xlane.xlu1 %1924 }
 0x9c2   :  { %10748 = vrcp.f32 %v1925_v45  ;;  %v2371_v45 = vld [vmem:[%s11264_s17 + $0x10] sm:$0xff] }
 0x9c8   :  { %v10747_v43 = vpop.eup %10746 }
 0x9c9   :  { %v1928_v46 = vmul.f32 %v10747_v43, %v10743_v37  ;;  %v10498_v43 = vpack.c.bf16 %v2370_v42, %v2369_v18 }
 0x9cb   :  { %9952 = vmatmul.mubr.msk.f32.vlgmr.msra.gmra.mrb[20].mxu1 %vm1275_vm15, %v1928_v46  ;;  %v2372_v46 = vld [vmem:[%s11264_s17 + $0x18] sm:$0xff] }
 0x9cc   :  { %v10749_v47 = vpop.eup %10748  ;;  %9974 = vmatprep.mubr.msk.f32.mxu1 %vm10844_vm0, %v10845_v1  ;;  %10499 = vmatpush3.bf16.msra.mxu1 %v10498_v43 }
 0x9cd   :  { %v1929_v48 = vmul.f32 %v10749_v47, %v10745_v41  ;;  %v10501_v47 = vpack.c.bf16 %v2372_v46, %v2371_v45  ;;  %10500 = vmatprep.subr.bf16.mxu1 %v10842_v0  ;;  %v9285_v46 = vld [vmem:[%s11318_s8] ss:$0 sm:$0xff] }
 0x9cf   :  { %9957 = vmatmul.mubr.msk.f32.vlgmr.msra.gmra.mrb[16].mxu0 %vm1275_vm15, %v1929_v48 }
 0x9d0   :  { %9963 = vmatprep.mubr.msk.f32.mxu0 %vm10844_vm0, %v10845_v1  ;;  %10496 = vmatpush3.bf16.msra.mxu0 %v10495_v52 }
 0x9d1   :  { %10503 = vmatprep.subr.bf16.mxu0 %v10842_v0  ;;  %10502 = vmatpush3.bf16.msra.mxu1 %v10501_v47 }
 0x9d2   :  { %10509 = vmatprep.subr.bf16.mxu1 %v10842_v0 }
 0xa9e   :  { %v2001_v53 = vpop.f32.mrb[20].mxu1 }
 0xa9f   :  { %v9953_v54 = vpop.f32.mrb[21].mxu1 }
 0xaa2   :  { %v2076_v55 = vpop.f32.mrb[16].mxu0 }
 0xaa3   :  { %v2085_v56 = vcombine.low %v2001_v53, %v2076_v55  ;;  %v9958_v57 = vpop.f32.mrb[17].mxu0  ;;  %v9281_v55 = vld [vmem:[%s11275_s26] ss:$0 sm:$0xff] }
 0xaa4   :  { %v2342_v57 = vrot.slane %v9281_v55, %v10948_v21 }
 0xaa5   :  { %9964 = vmatmul.mubr.msk.f32.vlgmr.msra.gmra.mrb[8].mxu0 %vm1103_vm13, %v2085_v56  ;;  %v9282_v56 = vld [vmem:[%s11280_s6] ss:$0 sm:$0xff] }
 0xaa6   :  { %9985 = vmatprep.mubr.msk.f32.mxu0 %vm10844_vm0, %v10845_v1 }
 0xb78   :  { %v2154_v60 = vpop.f32.mrb[8].mxu0 }
 0xb79   :  { %v10681_v61 = vadd.f32 %v9233_v59, %v2154_v60  ;;  %v9965_v62 = vpop.f32.mrb[9].mxu0  ;;  %v2361_v59 = vrot.slane %v9282_v56, %v10948_v21 }
 0xb7b   :  { %v2160_v63 = vcombine.high %v10681_v61, %v10681_v61  ;;  %v2167_v2 = vrot.slane %v10681_v61, %v10948_v21  ;;  %v2343_v61 = vcombine.high %v2342_v57, %v2342_v57 }
 0xb7d   :  { %v2168_v3 = vcombine.high %v2167_v2, %v2167_v2  ;;  %v2175_v5 = vrot.slane %v2160_v63, %v10948_v21  ;;  %v2181_v7 = vadd.f32 %v2167_v2, %v11085_v32 }
 0xb7f   :  { %v2176_v6 = vcombine.high %v2175_v5, %v2175_v5  ;;  %v2182_v8 = vadd.f32 %v2168_v3, %v11087_v33  ;;  %v2183_v10 = vadd.f32 %v2175_v5, %v11093_v39  ;;  %v2362_v3 = vcombine.high %v2361_v59, %v2361_v59 }
 0xb81   :  { %v2191_v9 = vcombine.low %v2181_v7, %v2182_v8  ;;  %v2184_v11 = vadd.f32 %v2176_v6, %v11095_v40 }
 0xb83   :  { %v2198_v12 = vrot.slane %v2191_v9, %v10948_v21  ;;  %v2199_v13 = vcombine.low %v2183_v10, %v2184_v11 }
 0xb85   :  { %v2209_v14 = vsel %vm660_vm12, %v2198_v12, 0.0  ;;  %v2206_v15 = vrot.slane %v2199_v13, %v10948_v21 }
 0xb86   :  { %2210 = vadd.xlane.f32.xlu0 %v2209_v14 }
 0xb87   :  { %v2212_v44 = vsel %vm660_vm12, %v2206_v15, 0.0 }
 0xb88   :  { %2213 = vadd.xlane.f32.xlu1 %v2212_v44 }
 0xc13   :  { %v2211_v16 = vpop.xlane.xlu0 %2210 }
 0xc14   :  { %v2215_v32 = vmul.f32 0.03125, %v2211_v16 }
 0xc15   :  { %v2214_v17 = vpop.xlane.xlu1 %2213 }
 0xc16   :  { %v2225_v33 = vrot.slane %v2215_v32, %v11009_v30  ;;  %v2232_v39 = vrot.slane %v2215_v32, %v11012_v31  ;;  %v2216_v19 = vmul.f32 0.03125, %v2214_v17 }
 0xc18   :  { %v2251_v40 = vsub.f32 %v2181_v7, %v2225_v33  ;;  %v2252_v20 = vsub.f32 %v2182_v8, %v2232_v39  ;;  %v2239_v22 = vrot.slane %v2216_v19, %v11009_v30  ;;  %v2246_v23 = vrot.slane %v2216_v19, %v11012_v31 }
 0xc1a   :  { %v2253_v24 = vsub.f32 %v2183_v10, %v2239_v22  ;;  %v2254_v25 = vsub.f32 %v2184_v11, %v2246_v23  ;;  %v2255_v26 = vmul.f32 %v2251_v40, %v2251_v40  ;;  %v2256_v27 = vmul.f32 %v2252_v20, %v2252_v20  ;;  %v2483_v22 = vld [vmem:[%s11298_s13 + $0x8] sm:$0xff]  ;;  %v2484_v23 = vld [vmem:[%s11298_s13 + $0x10] sm:$0xff] }
 0xc1c   :  { %v2263_v28 = vcombine.low %v2255_v26, %v2256_v27  ;;  %v2257_v29 = vmul.f32 %v2253_v24, %v2253_v24  ;;  %v2258_v34 = vmul.f32 %v2254_v25, %v2254_v25  ;;  %v9283_v27 = vld [vmem:[%s11309_s23] ss:$0 sm:$0xff] }
 0xc1e   :  { %v2270_v35 = vrot.slane %v2263_v28, %v10948_v21  ;;  %v2271_v36 = vcombine.low %v2257_v29, %v2258_v34 }
 0xc20   :  { %v2281_v37 = vsel %vm660_vm12, %v2270_v35, 0.0  ;;  %v2278_v38 = vrot.slane %v2271_v36, %v10948_v21 }
 0xc21   :  { %2282 = vadd.xlane.f32.xlu0 %v2281_v37 }
 0xc22   :  { %v2284_v41 = vsel %vm660_vm12, %v2278_v38, 0.0 }
 0xc23   :  { %2285 = vadd.xlane.f32.xlu1 %v2284_v41 }
 0xcae   :  { %v2283_v48 = vpop.xlane.xlu0 %2282 }
 0xcaf   :  { %v2287_v50 = vmul.f32 0.03125, %v2283_v48 }
 0xcb0   :  { %v2286_v51 = vpop.xlane.xlu1 %2285 }
 0xcb1   :  { %v2289_v52 = vadd.f32 1e-05, %v2287_v50  ;;  %v2288_v53 = vmul.f32 0.03125, %v2286_v51 }
 0xcb3   :  { %10750 = vrsqrt.f32 %v2289_v52  ;;  %v2290_v54 = vadd.f32 1e-05, %v2288_v53 }
 0xcb5   :  { %10752 = vrsqrt.f32 %v2290_v54 }
 0xcbd   :  { %v10751_v60 = vpop.eup %10750 }
 0xcbe   :  { %v2301_v62 = vrot.slane %v10751_v60, %v11009_v30  ;;  %v2308_v63 = vrot.slane %v10751_v60, %v11012_v31 }
 0xcbf   :  { %v10753_v2 = vpop.eup %10752 }
 0xcc0   :  { %v2327_v5 = vmul.f32 %v2301_v62, %v2251_v40  ;;  %v2328_v6 = vmul.f32 %v2308_v63, %v2252_v20  ;;  %v2315_v7 = vrot.slane %v10753_v2, %v11009_v30  ;;  %v2322_v8 = vrot.slane %v10753_v2, %v11012_v31  ;;  %v2482_v20 = vld [vmem:[%s11298_s13] sm:$0xff] }
 0xcc2   :  { %v2346_v9 = vmul.f32 %v2342_v57, %v2327_v5  ;;  %v2347_v10 = vmul.f32 %v2343_v61, %v2328_v6  ;;  %v2329_v11 = vmul.f32 %v2315_v7, %v2253_v24  ;;  %v2330_v12 = vmul.f32 %v2322_v8, %v2254_v25  ;;  %v2485_v25 = vld [vmem:[%s11298_s13 + $0x18] sm:$0xff] }
 0xcc3   :  { %v10504_v24 = vpack.c.bf16 %v2483_v22, %v2482_v20  ;;  %v10507_v26 = vpack.c.bf16 %v2485_v25, %v2484_v23  ;;  %v9291_v25 = vld [vmem:[%s11041_s19 + $0x40] sm:$0xff] }
 0xcc4   :  { %v2348_v13 = vmul.f32 %v2342_v57, %v2329_v11  ;;  %v2349_v14 = vmul.f32 %v2343_v61, %v2330_v12  ;;  %v2365_v15 = vadd.f32 %v2361_v59, %v2346_v9  ;;  %v2366_v44 = vadd.f32 %v2362_v3, %v2347_v10 }
 0xcc5   :  { %10505 = vmatpush3.bf16.msra.mxu0 %v10504_v24 }
 0xcc6   :  { %v2367_v16 = vadd.f32 %v2361_v59, %v2348_v13  ;;  %v2368_v32 = vadd.f32 %v2362_v3, %v2349_v14  ;;  %v2384_v17 = vcombine.low %v2365_v15, %v2366_v44  ;;  %10506 = vmatprep.subr.bf16.mxu0 %v10842_v0 }
 0xcc8   :  { %v2385_v33 = vcombine.low %v2367_v16, %v2368_v32  ;;  %v2392_v39 = vrot.slane %v2384_v17, %v10948_v21 }
 0xcc9   :  { %10508 = vmatpush3.bf16.msra.mxu0 %v10507_v26  ;;  %v9292_v26 = vld [vmem:[%s11041_s19 + $0x48] sm:$0xff] }
 0xcca   :  { %v2399_v19 = vrot.slane %v2385_v33, %v10948_v21  ;;  %10515 = vmatprep.subr.bf16.mxu0 %v10842_v0 }
 0xccc   :  { %v2400_v40 = vcombine.low %v2392_v39, %v2399_v19 }
 0xcce   :  { %9975 = vmatmul.mubr.msk.f32.vlgmr.msra.gmra.mrb[22].mxu1 %vm301_vm10, %v2400_v40 }
 0xccf   :  { %9996 = vmatprep.mubr.msk.f32.mxu1 %vm10844_vm0, %v10845_v1 }
 0xda1   :  { %v2469_v28 = vpop.f32.mrb[22].mxu1 }
 0xda2   :  { %v2470_v29 = vadd.f32 %v9283_v27, %v2469_v28  ;;  %v9976_v34 = vpop.f32.mrb[23].mxu1  ;;  %v10510_v27 = vpack.c.bf16 %v9292_v26, %v9291_v25  ;;  %v9298_v28 = vld [vmem:[%s11046_s24 + $0x40] sm:$0xff] }
 0xda4   :  { %v2474_v35 = vmul.f32 0.044715, %v2470_v29  ;;  %v2473_v42 = vmul.f32 0.5, %v2470_v29  ;;  %10511 = vmatpush3.bf16.msra.mxu1 %v10510_v27 }
 0xda5   :  { %10512 = vmatprep.subr.bf16.mxu1 %v10842_v0 }
 0xda6   :  { %v2475_v36 = vmul.f32 %v2474_v35, %v2470_v29  ;;  %v9293_v35 = vld [vmem:[%s11041_s19 + $0x50] sm:$0xff] }
 0xda8   :  { %v2476_v37 = vmul.f32 %v2475_v36, %v2470_v29  ;;  %v9294_v36 = vld [vmem:[%s11041_s19 + $0x58] sm:$0xff] }
 0xdaa   :  { %v2477_v38 = vadd.f32 %v2476_v37, %v2470_v29  ;;  %v9299_v29 = vld [vmem:[%s11046_s24 + $0x48] sm:$0xff]  ;;  %v10513_v37 = vpack.c.bf16 %v9294_v36, %v9293_v35 }
 0xdab   :  { %v10516_v34 = vpack.c.bf16 %v9299_v29, %v9298_v28 }
 0xdac   :  { %v2478_v41 = vmul.f32 0.7978846, %v2477_v38  ;;  %v9300_v38 = vld [vmem:[%s11046_s24 + $0x50] sm:$0xff]  ;;  %10514 = vmatpush3.bf16.msra.mxu1 %v10513_v37  ;;  %v9310_v37 = vld [vmem:[%s11136_s27 + $0x2] ss:$0 sm:$0xff] }
 0xdad   :  { %10521 = vmatprep.subr.bf16.mxu1 %v10842_v0 }
 0xdae   :  { %10754 = vtanh.f32 %v2478_v41  ;;  %v9301_v41 = vld [vmem:[%s11046_s24 + $0x58] sm:$0xff] }
 0xdb8   :  { %v10755_v18 = vpop.eup %10754 }
 0xdb9   :  { %v2480_v45 = vadd.f32 1.0, %v10755_v18  ;;  %v10519_v18 = vpack.c.bf16 %v9301_v41, %v9300_v38 }
 0xdbb   :  { %v2481_v43 = vmul.f32 %v2480_v45, %v2473_v42 }
 0xdbd   :  { %9986 = vmatmul.mubr.msk.f32.vlgmr.msra.gmra.mrb[18].mxu0 %vm301_vm10, %v2481_v43 }
 0xdbe   :  { %10007 = vmatprep.mubr.msk.f32.mxu0 %vm10844_vm0, %v10845_v1  ;;  %10517 = vmatpush3.bf16.msra.mxu0 %v10516_v34 }
 0xdbf   :  { %10518 = vmatprep.subr.bf16.mxu0 %v10842_v0 }
 0xdc2   :  { %10520 = vmatpush3.bf16.msra.mxu0 %v10519_v18 }
 0xdc3   :  { %10021 = vmatprep.subr.mxu0 %v10845_v1 }
 0xe90   :  { %v2562_v47 = vpop.f32.mrb[18].mxu0 }
 0xe91   :  { %v2563_v48 = vadd.f32 %v9285_v46, %v2562_v47  ;;  %v9987_v50 = vpop.f32.mrb[19].mxu0 }
 0xe92   :  { %v9287_v50 = vld [vmem:[%s11350_s18] ss:$0 sm:$0xff] }
 0xe93   :  { %v2567_v51 = vcombine.high %v2563_v48, %v2563_v48  ;;  %v2574_v52 = vrot.slane %v2563_v48, %v10948_v21 }
 0xe95   :  { %v2575_v53 = vcombine.high %v2574_v52, %v2574_v52  ;;  %v2582_v54 = vrot.slane %v2567_v51, %v10948_v21  ;;  %v2588_v56 = vadd.f32 %v2574_v52, %v2365_v15  ;;  %v9288_v51 = vld [vmem:[%s11355_s2] ss:$0 sm:$0xff]  ;;  %v2749_v52 = vrot.slane %v9287_v50, %v10948_v21 }
 0xe97   :  { %v2583_v55 = vcombine.high %v2582_v54, %v2582_v54  ;;  %v2589_v57 = vadd.f32 %v2575_v53, %v2366_v44  ;;  %v2590_v60 = vadd.f32 %v2582_v54, %v2367_v16  ;;  %v2768_v53 = vrot.slane %v9288_v51, %v10948_v21 }
 0xe99   :  { %v2598_v59 = vcombine.low %v2588_v56, %v2589_v57  ;;  %v2591_v61 = vadd.f32 %v2583_v55, %v2368_v32  ;;  %v2750_v55 = vcombine.high %v2749_v52, %v2749_v52 }
 0xe9b   :  { %v2605_v62 = vrot.slane %v2598_v59, %v10948_v21  ;;  %v2606_v63 = vcombine.low %v2590_v60, %v2591_v61 }
 0xe9d   :  { %v2616_v2 = vsel %vm660_vm12, %v2605_v62, 0.0  ;;  %v2613_v3 = vrot.slane %v2606_v63, %v10948_v21 }
 0xe9e   :  { %2617 = vadd.xlane.f32.xlu0 %v2616_v2 }
 0xe9f   :  { %v2619_v5 = vsel %vm660_vm12, %v2613_v3, 0.0 }
 0xea0   :  { %2620 = vadd.xlane.f32.xlu1 %v2619_v5 }
 0xf2b   :  { %v2618_v6 = vpop.xlane.xlu0 %2617 }
 0xf2c   :  { %v2622_v7 = vmul.f32 0.03125, %v2618_v6 }
 0xf2d   :  { %v2621_v8 = vpop.xlane.xlu1 %2620 }
 0xf2e   :  { %v2632_v9 = vrot.slane %v2622_v7, %v11009_v30  ;;  %v2639_v10 = vrot.slane %v2622_v7, %v11012_v31  ;;  %v2623_v11 = vmul.f32 0.03125, %v2621_v8 }
 0xf30   :  { %v2658_v12 = vsub.f32 %v2588_v56, %v2632_v9  ;;  %v2659_v13 = vsub.f32 %v2589_v57, %v2639_v10  ;;  %v2646_v14 = vrot.slane %v2623_v11, %v11009_v30  ;;  %v2653_v15 = vrot.slane %v2623_v11, %v11012_v31 }
 0xf32   :  { %v2660_v44 = vsub.f32 %v2590_v60, %v2646_v14  ;;  %v2661_v16 = vsub.f32 %v2591_v61, %v2653_v15  ;;  %v2662_v32 = vmul.f32 %v2658_v12, %v2658_v12  ;;  %v2663_v17 = vmul.f32 %v2659_v13, %v2659_v13 }
 0xf33   :  { %v2769_v60 = vcombine.high %v2768_v53, %v2768_v53 }
 0xf34   :  { %v2670_v33 = vcombine.low %v2662_v32, %v2663_v17  ;;  %v2664_v39 = vmul.f32 %v2660_v44, %v2660_v44  ;;  %v2665_v19 = vmul.f32 %v2661_v16, %v2661_v16  ;;  %v9306_v32 = vld [vmem:[%s11083_s10 + $0x48] sm:$0xff] }
 0xf36   :  { %v2677_v40 = vrot.slane %v2670_v33, %v10948_v21  ;;  %v2678_v20 = vcombine.low %v2664_v39, %v2665_v19  ;;  %v9307_v19 = vld [vmem:[%s11083_s10 + $0x50] sm:$0xff] }
 0xf38   :  { %v2688_v22 = vsel %vm660_vm12, %v2677_v40, 0.0  ;;  %v2685_v23 = vrot.slane %v2678_v20, %v10948_v21  ;;  %v9308_v40 = vld [vmem:[%s11083_s10 + $0x58] sm:$0xff] }
 0xf39   :  { %2689 = vadd.xlane.f32.xlu0 %v2688_v22  ;;  %v10525_v20 = vpack.c.bf16 %v9308_v40, %v9307_v19  ;;  %v9296_v22 = vld [vmem:[%s11124_s14 + $0x2] ss:$0 sm:$0xff]  ;;  %v9340_v19 = vld [vmem:[%s11083_s10 + $0x78] sm:$0xff] }
 0xf3a   :  { %v2691_v24 = vsel %vm660_vm12, %v2685_v23, 0.0  ;;  %v9303_v23 = vld [vmem:[%s11129_s20 + $0x2] ss:$0 sm:$0xff] }
 0xf3b   :  { %2692 = vadd.xlane.f32.xlu1 %v2691_v24 }
 0xfc6   :  { %v2690_v42 = vpop.xlane.xlu0 %2689 }
 0xfc7   :  { %v2694_v45 = vmul.f32 0.03125, %v2690_v42 }
 0xfc8   :  { %v2693_v43 = vpop.xlane.xlu1 %2692 }
 0xfc9   :  { %v2696_v46 = vadd.f32 1e-05, %v2694_v45  ;;  %v2695_v47 = vmul.f32 0.03125, %v2693_v43 }
 0xfcb   :  { %10756 = vrsqrt.f32 %v2696_v46  ;;  %v2697_v48 = vadd.f32 1e-05, %v2695_v47 }
 0xfcd   :  { %10758 = vrsqrt.f32 %v2697_v48 }
 0xfd5   :  { %v10757_v54 = vpop.eup %10756 }
 0xfd6   :  { %v2708_v56 = vrot.slane %v10757_v54, %v11009_v30  ;;  %v2715_v57 = vrot.slane %v10757_v54, %v11012_v31 }
 0xfd7   :  { %v10759_v59 = vpop.eup %10758 }
 0xfd8   :  { %v2734_v61 = vmul.f32 %v2708_v56, %v2658_v12  ;;  %v2735_v62 = vmul.f32 %v2715_v57, %v2659_v13  ;;  %v2722_v63 = vrot.slane %v10759_v59, %v11009_v30  ;;  %v2729_v2 = vrot.slane %v10759_v59, %v11012_v31 }
 0xfda   :  { %v2753_v3 = vmul.f32 %v2749_v52, %v2734_v61  ;;  %v2754_v5 = vmul.f32 %v2750_v55, %v2735_v62  ;;  %v2736_v6 = vmul.f32 %v2722_v63, %v2660_v44  ;;  %v2737_v7 = vmul.f32 %v2729_v2, %v2661_v16  ;;  %v9305_v44 = vld [vmem:[%s11083_s10 + $0x40] sm:$0xff] }
 0xfdb   :  { %v10522_v33 = vpack.c.bf16 %v9306_v32, %v9305_v44  ;;  %v9323_v2 = vld [vmem:[%s11041_s19 + $0x60] sm:$0xff] }
 0xfdc   :  { %v11365_v8 = vadd.f32 %v2768_v53, %v2753_v3  ;;  %v11367_v9 = vadd.f32 %v2769_v60, %v2754_v5  ;;  %v2755_v10 = vmul.f32 %v2749_v52, %v2736_v6  ;;  %v2756_v11 = vmul.f32 %v2750_v55, %v2737_v7  ;;  %v9324_v3 = vld [vmem:[%s11041_s19 + $0x68] sm:$0xff]  ;;  %v9337_v32 = vld [vmem:[%s11083_s10 + $0x60] sm:$0xff] }
 0xfde   :  { %v2802_v12 = vcombine.low %v11365_v8, %v11367_v9  ;;  %v11371_v13 = vadd.f32 %v2768_v53, %v2755_v10  ;;  %v11373_v14 = vadd.f32 %v2769_v60, %v2756_v11  ;;  %v10531_v10 = vpack.c.bf16 %v9324_v3, %v9323_v2 }
 0xfe0   :  { %v2803_v15 = vcombine.low %v11371_v13, %v11373_v14  ;;  %v2810_v16 = vrot.slane %v2802_v12, %v10948_v21  ;;  %v9325_v12 = vld [vmem:[%s11041_s19 + $0x70] sm:$0xff] }
 0xfe2   :  { %v2817_v17 = vrot.slane %v2803_v15, %v10948_v21  ;;  %v9326_v15 = vld [vmem:[%s11041_s19 + $0x78] sm:$0xff] }
 0xfe3   :  { %v10534_v44 = vpack.c.bf16 %v9326_v15, %v9325_v12 }
 0xfe4   :  { %v11381_v39 = vcombine.low %v2810_v16, %v2817_v17  ;;  %v9338_v16 = vld [vmem:[%s11083_s10 + $0x68] sm:$0xff] }
 0xfe5   :  { %v10543_v17 = vpack.c.bf16 %v9338_v16, %v9337_v32 }
 0xfe6   :  { %9997 = vmatmul.mubr.msk.f32.vlgmr.msra.gmra.mrb[24].mxu1 %vm301_vm10, %v11381_v39  ;;  %10008 = vmatmul.mubr.msk.f32.vlgmr.msra.gmra.mrb[20].mxu0 %vm301_vm10, %v11381_v39 }
 0xfe7   :  { %10523 = vmatpush3.bf16.msra.mxu1 %v10522_v33  ;;  %10018 = vmatprep.mubr.msk.f32.mxu1 %vm10844_vm0, %v10845_v1  ;;  %v9339_v33 = vld [vmem:[%s11083_s10 + $0x70] sm:$0xff] }
 0xfe8   :  { %10524 = vmatprep.subr.bf16.mxu1 %v10842_v0  ;;  %10023 = vmatprep.mubr.msk.f32.mxu0 %vm10844_vm0, %v10845_v1  ;;  %v10546_v40 = vpack.c.bf16 %v9340_v19, %v9339_v33 }
 0xfeb   :  { %10526 = vmatpush3.bf16.msra.mxu1 %v10525_v20  ;;  %v9320_v20 = vld [vmem:[%s11186_s4 + $0x20] sm:$0xff] }
 0xfec   :  { %10026 = vmatprep.subr.mxu1 %v10845_v1 }
 0xfee   :  { %10019 = vmatmul.mubr.msk.f32.vlgmr.msra.gmra.mrb[26].mxu1 %vm301_vm10, %v11381_v39 }
 0xfef   :  { %10028 = vmatprep.mubr.msk.f32.mxu1 %vm10844_vm0, %v10845_v1 }
0x10b9   :  { %v2887_v24 = vpop.f32.mrb[24].mxu1  ;;  %v2971_v25 = vpop.f32.mrb[20].mxu0 }
0x10ba   :  { %v2888_v26 = vadd.f32 %v9296_v22, %v2887_v24  ;;  %v2972_v27 = vadd.f32 %v9303_v23, %v2971_v25  ;;  %v9998_v28 = vpop.f32.mrb[25].mxu1  ;;  %v10009_v29 = vpop.f32.mrb[21].mxu0  ;;  %v9321_v22 = vld [vmem:[%s11186_s4 + $0x28] sm:$0xff]  ;;  %v9330_v24 = vld [vmem:[%s11046_s24 + $0x60] sm:$0xff] }
0x10bb   :  { %v10528_v23 = vpack.c.bf16 %v9321_v22, %v9320_v20  ;;  %v9331_v25 = vld [vmem:[%s11046_s24 + $0x68] sm:$0xff]  ;;  %v9352_v20 = vld [vmem:[%s11186_s4 + $0x30] sm:$0xff]  ;;  %v9353_v22 = vld [vmem:[%s11186_s4 + $0x38] sm:$0xff] }
0x10bc   :  { %v2891_v34 = vmul.f32 0.25, %v2888_v26  ;;  %v3061_v35 = vcombine.high %v2972_v27, %v2972_v27  ;;  %10022 = vmatpush3.xpose.msk.msra.mxu0 %vm1103_vm13, %v2972_v27  ;;  %v10537_v29 = vpack.c.bf16 %v9331_v25, %v9330_v24 }
0x10bd   :  { %10031 = vmatprep.subr.mxu0 %v10845_v1 }
0x10be   :  { %v3059_v36 = vcombine.high %v2891_v34, %v2891_v34  ;;  %10027 = vmatpush3.xpose.msk.msra.mxu1 %vm1103_vm13, %v3061_v35 }
0x10bf   :  { %10024 = vmatmul.mubr.msk.f32.vlgmr.msra.gmra.mrb[22].mxu0 %vm1103_vm13, %v2891_v34  ;;  %10036 = vmatprep.subr.mxu1 %v10845_v1 }
0x10c0   :  { %10033 = vmatprep.mubr.msk.f32.mxu0 %vm10844_vm0, %v10845_v1 }
0x10c1   :  { %v3054_v38 = vpop.f32.mrb[26].mxu1  ;;  %10029 = vmatmul.mubr.msk.f32.vlgmr.msra.gmra.mrb[28].mxu1 %vm1103_vm13, %v3059_v36  ;;  %v9332_v36 = vld [vmem:[%s11046_s24 + $0x70] sm:$0xff] }
0x10c2   :  { %v3055_v41 = vadd.f32 %v9310_v37, %v3054_v38  ;;  %v10020_v18 = vpop.f32.mrb[27].mxu1  ;;  %10038 = vmatprep.mubr.msk.f32.mxu1 %vm10844_vm0, %v10845_v1  ;;  %v9333_v37 = vld [vmem:[%s11046_s24 + $0x78] sm:$0xff] }
0x10c3   :  { %v10540_v38 = vpack.c.bf16 %v9333_v37, %v9332_v36 }
0x10c4   :  { %v3063_v42 = vcombine.high %v3055_v41, %v3055_v41  ;;  %10032 = vmatpush3.msk.msra.mxu0 %vm210_vm4, %v3055_v41 }
0x10c5   :  { %10527 = vmatprep.subr.bf16.mxu0 %v10842_v0 }
0x10c6   :  { %10037 = vmatpush3.msk.msra.mxu1 %vm210_vm4, %v3063_v42  ;;  %v9342_v42 = vld [vmem:[%s11136_s27 + $0x3] ss:$0 sm:$0xff] }
0x10c7   :  { %10530 = vmatprep.subr.bf16.mxu1 %v10842_v0 }
0x1192   :  { %v3134_v45 = vpop.f32.mrb[22].mxu0 }
0x1193   :  { %v10025_v43 = vpop.f32.mrb[23].mxu0  ;;  %v3212_v46 = vsel %vm1252_vm14, %v3134_v45, -inf }
0x1194   :  { %3213 = vmax.xlane.f32.xlu0 %v3212_v46  ;;  %v3208_v47 = vpop.f32.mrb[28].mxu1 }
0x1195   :  { %v10030_v48 = vpop.f32.mrb[29].mxu1  ;;  %v3215_v50 = vsel %vm1252_vm14, %v3208_v47, -inf }
0x1196   :  { %3216 = vmax.xlane.f32.xlu1 %v3215_v50  ;;  %v9335_v48 = vld [vmem:[%s11129_s20 + $0x3] ss:$0 sm:$0xff] }
0x1221   :  { %v3214_v51 = vpop.xlane.xlu0 %3213 }
0x1222   :  { %v3218_v52 = vsub.f32 %v3134_v45, %v3214_v51 }
0x1223   :  { %v3217_v53 = vpop.xlane.xlu1 %3216 }
0x1224   :  { %v3220_v54 = vmul.f32 1.442695, %v3218_v52  ;;  %v3219_v55 = vsub.f32 %v3208_v47, %v3217_v53  ;;  %v9328_v47 = vld [vmem:[%s11124_s14 + $0x3] ss:$0 sm:$0xff] }
0x1226   :  { %10760 = vpow2.f32 %v3220_v54  ;;  %v3222_v56 = vmul.f32 1.442695, %v3219_v55 }
0x1228   :  { %10762 = vpow2.f32 %v3222_v56 }
0x1230   :  { %v10761_v57 = vpop.eup %10760 }
0x1231   :  { %v3224_v59 = vsel %vm1252_vm14, %v10761_v57, 0.0 }
0x1232   :  { %v10763_v60 = vpop.eup %10762  ;;  %3225 = vadd.xlane.f32.xlu0 %v3224_v59 }
0x1233   :  { %v3227_v61 = vsel %vm1252_vm14, %v10763_v60, 0.0 }
0x1234   :  { %3228 = vadd.xlane.f32.xlu1 %v3227_v61 }
0x12bf   :  { %v3226_v62 = vpop.xlane.xlu0 %3225 }
0x12c0   :  { %10764 = vrcp.f32 %v3226_v62 }
0x12c1   :  { %v3229_v63 = vpop.xlane.xlu1 %3228 }
0x12c2   :  { %10766 = vrcp.f32 %v3229_v63 }
0x12ca   :  { %v10765_v5 = vpop.eup %10764 }
0x12cb   :  { %v3232_v6 = vmul.f32 %v10765_v5, %v10761_v57 }
0x12cc   :  { %v10767_v7 = vpop.eup %10766 }
0x12cd   :  { %v3233_v11 = vmul.f32 %v10767_v7, %v10763_v60  ;;  %10034 = vmatmul.mubr.msk.f32.vlgmr.msra.gmra.mrb[24].mxu0 %vm1275_vm15, %v3232_v6 }
0x12ce   :  { %10045 = vmatprep.mubr.msk.f32.mxu0 %vm10844_vm0, %v10845_v1  ;;  %10529 = vmatpush3.bf16.msra.mxu0 %v10528_v23  ;;  %v10549_v23 = vpack.c.bf16 %v9353_v22, %v9352_v20 }
0x12cf   :  { %10039 = vmatmul.mubr.msk.f32.vlgmr.msra.gmra.mrb[30].mxu1 %vm1275_vm15, %v3233_v11  ;;  %10536 = vmatprep.subr.bf16.mxu0 %v10842_v0 }
0x12d0   :  { %10532 = vmatpush3.bf16.msra.mxu1 %v10531_v10  ;;  %10056 = vmatprep.mubr.msk.f32.mxu1 %vm10844_vm0, %v10845_v1 }
0x12d1   :  { %10533 = vmatprep.subr.bf16.mxu1 %v10842_v0 }
0x12d4   :  { %10535 = vmatpush3.bf16.msra.mxu1 %v10534_v44 }
0x12d5   :  { %10542 = vmatprep.subr.bf16.mxu1 %v10842_v0 }
0x12d7   :  { %10057 = vmatmul.mubr.msk.f32.vlgmr.msra.gmra.mrb[32].mxu1 %vm301_vm10, %v11381_v39 }
0x12d8   :  { %10544 = vmatpush3.bf16.msra.mxu1 %v10543_v17  ;;  %10078 = vmatprep.mubr.msk.f32.mxu1 %vm10844_vm0, %v10845_v1 }
0x12d9   :  { %10545 = vmatprep.subr.bf16.mxu1 %v10842_v0 }
0x12dc   :  { %10547 = vmatpush3.bf16.msra.mxu1 %v10546_v40 }
0x12dd   :  { %10091 = vmatprep.subr.mxu1 %v10845_v1 }
0x12df   :  { %10079 = vmatmul.mubr.msk.f32.vlgmr.msra.gmra.mrb[34].mxu1 %vm301_vm10, %v11381_v39 }
0x12e0   :  { %10093 = vmatprep.mubr.msk.f32.mxu1 %vm10844_vm0, %v10845_v1 }
0x13a0   :  { %v3305_v26 = vpop.f32.mrb[24].mxu0 }
0x13a1   :  { %v10035_v27 = vpop.f32.mrb[25].mxu0 }
0x13a2   :  { %v3380_v28 = vpop.f32.mrb[30].mxu1 }
0x13a3   :  { %v3389_v34 = vcombine.low %v3305_v26, %v3380_v28  ;;  %v10040_v35 = vpop.f32.mrb[31].mxu1 }
0x13a5   :  { %10046 = vmatmul.mubr.msk.f32.vlgmr.msra.gmra.mrb[26].mxu0 %vm1103_vm13, %v3389_v34 }
0x13a6   :  { %10538 = vmatpush3.bf16.msra.mxu0 %v10537_v29  ;;  %10067 = vmatprep.mubr.msk.f32.mxu0 %vm10844_vm0, %v10845_v1  ;;  %v9290_v29 = vld [vmem:[%s11240_s11 + $0x1] ss:$0 sm:$0xff] }
0x13a7   :  { %10539 = vmatprep.subr.bf16.mxu0 %v10842_v0 }
0x13aa   :  { %v3542_v41 = vpop.f32.mrb[32].mxu1  ;;  %10541 = vmatpush3.bf16.msra.mxu0 %v10540_v38 }
0x13ab   :  { %v10058_v18 = vpop.f32.mrb[33].mxu1  ;;  %10081 = vmatprep.subr.mxu0 %v10845_v1  ;;  %v3543_v50 = vadd.f32 %v9328_v47, %v3542_v41 }
0x13ad   :  { %10068 = vmatmul.mubr.msk.f32.vlgmr.msra.gmra.mrb[28].mxu0 %vm301_vm10, %v11381_v39  ;;  %v3546_v39 = vmul.f32 0.25, %v3543_v50 }
0x13ae   :  { %10083 = vmatprep.mubr.msk.f32.mxu0 %vm10844_vm0, %v10845_v1 }
0x13af   :  { %v3714_v55 = vcombine.high %v3546_v39, %v3546_v39 }
0x13b2   :  { %v3709_v45 = vpop.f32.mrb[34].mxu1 }
0x13b3   :  { %v3710_v43 = vadd.f32 %v9342_v42, %v3709_v45  ;;  %v10080_v46 = vpop.f32.mrb[35].mxu1 }
0x13b5   :  { %10092 = vmatpush3.msk.msra.mxu1 %vm210_vm4, %v3710_v43  ;;  %v3718_v56 = vcombine.high %v3710_v43, %v3710_v43 }
0x13b6   :  { %10551 = vmatprep.subr.bf16.mxu1 %v10842_v0 }
0x1480   :  { %v3626_v51 = vpop.f32.mrb[28].mxu0 }
0x1481   :  { %v3627_v52 = vadd.f32 %v9335_v48, %v3626_v51  ;;  %v10069_v53 = vpop.f32.mrb[29].mxu0 }
0x1483   :  { %10082 = vmatpush3.xpose.msk.msra.mxu0 %vm1103_vm13, %v3627_v52  ;;  %v3716_v54 = vcombine.high %v3627_v52, %v3627_v52 }
0x1484   :  { %10086 = vmatprep.subr.mxu0 %v10845_v1 }
0x1486   :  { %10084 = vmatmul.mubr.msk.f32.vlgmr.msra.gmra.mrb[30].mxu0 %vm1103_vm13, %v3546_v39 }
0x1487   :  { %10087 = vmatpush3.xpose.msk.msra.mxu0 %vm1103_vm13, %v3716_v54  ;;  %10088 = vmatprep.mubr.msk.f32.mxu0 %vm10844_vm0, %v10845_v1 }
0x1488   :  { %10096 = vmatprep.subr.mxu0 %v10845_v1 }
0x148a   :  { %10089 = vmatmul.mubr.msk.f32.vlgmr.msra.gmra.mrb[32].mxu0 %vm1103_vm13, %v3714_v55 }
0x148b   :  { %10097 = vmatpush3.msk.msra.mxu0 %vm210_vm4, %v3718_v56  ;;  %10098 = vmatprep.mubr.msk.f32.mxu0 %vm10844_vm0, %v10845_v1 }
0x148c   :  { %10548 = vmatprep.subr.bf16.mxu0 %v10842_v0 }
0x1559   :  { %v3789_v57 = vpop.f32.mrb[30].mxu0 }
0x155a   :  { %v10085_v59 = vpop.f32.mrb[31].mxu0  ;;  %v3867_v60 = vsel %vm1252_vm14, %v3789_v57, -inf }
0x155b   :  { %3868 = vmax.xlane.f32.xlu0 %v3867_v60 }
0x155d   :  { %v3863_v61 = vpop.f32.mrb[32].mxu0 }
0x155e   :  { %v10090_v62 = vpop.f32.mrb[33].mxu0  ;;  %v3870_v63 = vsel %vm1252_vm14, %v3863_v61, -inf }
0x155f   :  { %3871 = vmax.xlane.f32.xlu1 %v3870_v63 }
0x15e8   :  { %v3869_v2 = vpop.xlane.xlu0 %3868 }
0x15e9   :  { %v3873_v3 = vsub.f32 %v3789_v57, %v3869_v2 }
0x15eb   :  { %v3875_v5 = vmul.f32 1.442695, %v3873_v3 }
0x15ec   :  { %v3872_v6 = vpop.xlane.xlu1 %3871 }
0x15ed   :  { %10768 = vpow2.f32 %v3875_v5  ;;  %v3874_v7 = vsub.f32 %v3863_v61, %v3872_v6 }
0x15ef   :  { %v3877_v10 = vmul.f32 1.442695, %v3874_v7 }
0x15f1   :  { %10770 = vpow2.f32 %v3877_v10 }
0x15f7   :  { %v10769_v11 = vpop.eup %10768 }
0x15f8   :  { %v3879_v12 = vsel %vm1252_vm14, %v10769_v11, 0.0 }
0x15f9   :  { %3880 = vadd.xlane.f32.xlu0 %v3879_v12 }
0x15fb   :  { %v10771_v15 = vpop.eup %10770 }
0x15fc   :  { %v3882_v44 = vsel %vm1252_vm14, %v10771_v15, 0.0 }
0x15fd   :  { %3883 = vadd.xlane.f32.xlu1 %v3882_v44  ;;  %v9359_v44 = vld [vmem:[%s11264_s17 + $0x20] sm:$0xff] }
0x1686   :  { %v3881_v32 = vpop.xlane.xlu0 %3880 }
0x1687   :  { %10772 = vrcp.f32 %v3881_v32  ;;  %v9360_v32 = vld [vmem:[%s11264_s17 + $0x28] sm:$0xff] }
0x168a   :  { %v3884_v16 = vpop.xlane.xlu1 %3883 }
0x168b   :  { %10774 = vrcp.f32 %v3884_v16  ;;  %v9361_v16 = vld [vmem:[%s11264_s17 + $0x30] sm:$0xff] }
0x1691   :  { %v10773_v17 = vpop.eup %10772 }
0x1692   :  { %v3887_v33 = vmul.f32 %v10773_v17, %v10769_v11  ;;  %v10552_v17 = vpack.c.bf16 %v9360_v32, %v9359_v44 }
0x1694   :  { %10094 = vmatmul.mubr.msk.f32.vlgmr.msra.gmra.mrb[36].mxu1 %vm1275_vm15, %v3887_v33  ;;  %v9362_v33 = vld [vmem:[%s11264_s17 + $0x38] sm:$0xff] }
0x1695   :  { %v10775_v19 = vpop.eup %10774  ;;  %10116 = vmatprep.mubr.msk.f32.mxu1 %vm10844_vm0, %v10845_v1  ;;  %10553 = vmatpush3.bf16.msra.mxu1 %v10552_v17 }
0x1696   :  { %v3888_v40 = vmul.f32 %v10775_v19, %v10771_v15  ;;  %v10555_v19 = vpack.c.bf16 %v9362_v33, %v9361_v16  ;;  %10554 = vmatprep.subr.bf16.mxu1 %v10842_v0  ;;  %v9371_v33 = vld [vmem:[%s11318_s8 + $0x1] ss:$0 sm:$0xff] }
0x1698   :  { %10099 = vmatmul.mubr.msk.f32.vlgmr.msra.gmra.mrb[34].mxu0 %vm1275_vm15, %v3888_v40 }
0x1699   :  { %10105 = vmatprep.mubr.msk.f32.mxu0 %vm10844_vm0, %v10845_v1  ;;  %10550 = vmatpush3.bf16.msra.mxu0 %v10549_v23 }
0x169a   :  { %10557 = vmatprep.subr.bf16.mxu0 %v10842_v0  ;;  %10556 = vmatpush3.bf16.msra.mxu1 %v10555_v19 }
0x169b   :  { %10563 = vmatprep.subr.bf16.mxu1 %v10842_v0 }
0x1767   :  { %v3960_v24 = vpop.f32.mrb[36].mxu1 }
0x1768   :  { %v10095_v25 = vpop.f32.mrb[37].mxu1 }
0x176b   :  { %v4035_v26 = vpop.f32.mrb[34].mxu0 }
0x176c   :  { %v4044_v27 = vcombine.low %v3960_v24, %v4035_v26  ;;  %v10100_v28 = vpop.f32.mrb[35].mxu0  ;;  %v9357_v26 = vld [vmem:[%s11275_s26 + $0x1] ss:$0 sm:$0xff] }
0x176d   :  { %v4303_v28 = vrot.slane %v9357_v26, %v10948_v21 }
0x176e   :  { %10106 = vmatmul.mubr.msk.f32.vlgmr.msra.gmra.mrb[26].mxu0 %vm1103_vm13, %v4044_v27  ;;  %v9358_v27 = vld [vmem:[%s11280_s6 + $0x1] ss:$0 sm:$0xff] }
0x176f   :  { %10127 = vmatprep.mubr.msk.f32.mxu0 %vm10844_vm0, %v10845_v1 }
0x1841   :  { %v4113_v34 = vpop.f32.mrb[26].mxu0 }
0x1842   :  { %v10682_v35 = vadd.f32 %v9290_v29, %v4113_v34  ;;  %v10107_v36 = vpop.f32.mrb[27].mxu0  ;;  %v4322_v29 = vrot.slane %v9358_v27, %v10948_v21 }
0x1844   :  { %v4119_v37 = vcombine.high %v10682_v35, %v10682_v35  ;;  %v4126_v38 = vrot.slane %v10682_v35, %v10948_v21  ;;  %v4304_v35 = vcombine.high %v4303_v28, %v4303_v28 }
0x1846   :  { %v4127_v41 = vcombine.high %v4126_v38, %v4126_v38  ;;  %v4134_v18 = vrot.slane %v4119_v37, %v10948_v21  ;;  %v4140_v45 = vadd.f32 %v4126_v38, %v11365_v8 }
0x1848   :  { %v4135_v42 = vcombine.high %v4134_v18, %v4134_v18  ;;  %v4141_v43 = vadd.f32 %v4127_v41, %v11367_v9  ;;  %v4142_v47 = vadd.f32 %v4134_v18, %v11371_v13  ;;  %v4323_v41 = vcombine.high %v4322_v29, %v4322_v29 }
0x184a   :  { %v4152_v46 = vcombine.low %v4140_v45, %v4141_v43  ;;  %v4143_v48 = vadd.f32 %v4135_v42, %v11373_v14 }
0x184c   :  { %v4159_v50 = vrot.slane %v4152_v46, %v10948_v21  ;;  %v4160_v51 = vcombine.low %v4142_v47, %v4143_v48 }
0x184e   :  { %v4170_v52 = vsel %vm660_vm12, %v4159_v50, 0.0  ;;  %v4167_v53 = vrot.slane %v4160_v51, %v10948_v21 }
0x184f   :  { %4171 = vadd.xlane.f32.xlu0 %v4170_v52 }
0x1850   :  { %v4173_v39 = vsel %vm660_vm12, %v4167_v53, 0.0 }
0x1851   :  { %4174 = vadd.xlane.f32.xlu1 %v4173_v39 }
0x18dc   :  { %v4172_v54 = vpop.xlane.xlu0 %4171 }
0x18dd   :  { %v4176_v8 = vmul.f32 0.03125, %v4172_v54 }
0x18de   :  { %v4175_v55 = vpop.xlane.xlu1 %4174 }
0x18df   :  { %v4186_v9 = vrot.slane %v4176_v8, %v11009_v30  ;;  %v4193_v13 = vrot.slane %v4176_v8, %v11012_v31  ;;  %v4177_v56 = vmul.f32 0.03125, %v4175_v55 }
0x18e1   :  { %v4212_v14 = vsub.f32 %v4140_v45, %v4186_v9  ;;  %v4213_v57 = vsub.f32 %v4141_v43, %v4193_v13  ;;  %v4200_v59 = vrot.slane %v4177_v56, %v11009_v30  ;;  %v4207_v60 = vrot.slane %v4177_v56, %v11012_v31 }
0x18e3   :  { %v4214_v61 = vsub.f32 %v4142_v47, %v4200_v59  ;;  %v4215_v62 = vsub.f32 %v4143_v48, %v4207_v60  ;;  %v4216_v63 = vmul.f32 %v4212_v14, %v4212_v14  ;;  %v4217_v2 = vmul.f32 %v4213_v57, %v4213_v57  ;;  %v9367_v59 = vld [vmem:[%s11298_s13 + $0x28] sm:$0xff]  ;;  %v9368_v60 = vld [vmem:[%s11298_s13 + $0x30] sm:$0xff] }
0x18e5   :  { %v4224_v3 = vcombine.low %v4216_v63, %v4217_v2  ;;  %v4218_v5 = vmul.f32 %v4214_v61, %v4214_v61  ;;  %v4219_v6 = vmul.f32 %v4215_v62, %v4215_v62  ;;  %v9364_v2 = vld [vmem:[%s11309_s23 + $0x1] ss:$0 sm:$0xff] }
0x18e7   :  { %v4231_v7 = vrot.slane %v4224_v3, %v10948_v21  ;;  %v4232_v10 = vcombine.low %v4218_v5, %v4219_v6 }
0x18e9   :  { %v4242_v11 = vsel %vm660_vm12, %v4231_v7, 0.0  ;;  %v4239_v12 = vrot.slane %v4232_v10, %v10948_v21 }
0x18ea   :  { %4243 = vadd.xlane.f32.xlu0 %v4242_v11 }
0x18eb   :  { %v4245_v15 = vsel %vm660_vm12, %v4239_v12, 0.0 }
0x18ec   :  { %4246 = vadd.xlane.f32.xlu1 %v4245_v15 }
0x1977   :  { %v4244_v40 = vpop.xlane.xlu0 %4243 }
0x1978   :  { %v4248_v20 = vmul.f32 0.03125, %v4244_v40 }
0x1979   :  { %v4247_v22 = vpop.xlane.xlu1 %4246 }
0x197a   :  { %v4250_v23 = vadd.f32 1e-05, %v4248_v20  ;;  %v4249_v24 = vmul.f32 0.03125, %v4247_v22 }
0x197c   :  { %10776 = vrsqrt.f32 %v4250_v23  ;;  %v4251_v25 = vadd.f32 1e-05, %v4249_v24 }
0x197e   :  { %10778 = vrsqrt.f32 %v4251_v25 }
0x1986   :  { %v10777_v34 = vpop.eup %10776 }
0x1987   :  { %v4262_v36 = vrot.slane %v10777_v34, %v11009_v30  ;;  %v4269_v37 = vrot.slane %v10777_v34, %v11012_v31 }
0x1988   :  { %v10779_v38 = vpop.eup %10778 }
0x1989   :  { %v4288_v18 = vmul.f32 %v4262_v36, %v4212_v14  ;;  %v4289_v42 = vmul.f32 %v4269_v37, %v4213_v57  ;;  %v4276_v45 = vrot.slane %v10779_v38, %v11009_v30  ;;  %v4283_v43 = vrot.slane %v10779_v38, %v11012_v31  ;;  %v9366_v57 = vld [vmem:[%s11298_s13 + $0x20] sm:$0xff] }
0x198b   :  { %v4307_v46 = vmul.f32 %v4303_v28, %v4288_v18  ;;  %v4308_v47 = vmul.f32 %v4304_v35, %v4289_v42  ;;  %v4290_v48 = vmul.f32 %v4276_v45, %v4214_v61  ;;  %v4291_v50 = vmul.f32 %v4283_v43, %v4215_v62  ;;  %v9369_v62 = vld [vmem:[%s11298_s13 + $0x38] sm:$0xff] }
0x198c   :  { %v10558_v61 = vpack.c.bf16 %v9367_v59, %v9366_v57  ;;  %v10561_v63 = vpack.c.bf16 %v9369_v62, %v9368_v60  ;;  %v4778_v62 = vld [vmem:[%s10919_s21] sm:$0xff] }
0x198d   :  { %v4309_v51 = vmul.f32 %v4303_v28, %v4290_v48  ;;  %v4310_v52 = vmul.f32 %v4304_v35, %v4291_v50  ;;  %v4326_v53 = vadd.f32 %v4322_v29, %v4307_v46  ;;  %v4327_v39 = vadd.f32 %v4323_v41, %v4308_v47 }
0x198e   :  { %10559 = vmatpush3.bf16.msra.mxu0 %v10558_v61 }
0x198f   :  { %v4328_v54 = vadd.f32 %v4322_v29, %v4309_v51  ;;  %v4329_v8 = vadd.f32 %v4323_v41, %v4310_v52  ;;  %v4347_v55 = vcombine.low %v4326_v53, %v4327_v39  ;;  %10560 = vmatprep.subr.bf16.mxu0 %v10842_v0 }
0x1991   :  { %v4348_v9 = vcombine.low %v4328_v54, %v4329_v8  ;;  %v4355_v13 = vrot.slane %v4347_v55, %v10948_v21 }
0x1992   :  { %10562 = vmatpush3.bf16.msra.mxu0 %v10561_v63  ;;  %v4779_v63 = vld [vmem:[%s10919_s21 + $0x8] sm:$0xff] }
0x1993   :  { %v4362_v56 = vrot.slane %v4348_v9, %v10948_v21  ;;  %10141 = vmatprep.subr.mxu0 %v10845_v1 }
0x1995   :  { %v4363_v14 = vcombine.low %v4355_v13, %v4362_v56 }
0x1997   :  { %10117 = vmatmul.mubr.msk.f32.vlgmr.msra.gmra.mrb[38].mxu1 %vm301_vm10, %v4363_v14 }
0x1998   :  { %10138 = vmatprep.mubr.msk.f32.mxu1 %vm10844_vm0, %v10845_v1 }
0x1a6a   :  { %v4432_v3 = vpop.f32.mrb[38].mxu1 }
0x1a6b   :  { %v4433_v5 = vadd.f32 %v9364_v2, %v4432_v3  ;;  %v10118_v6 = vpop.f32.mrb[39].mxu1  ;;  %v4780_v2 = vld [vmem:[%s10919_s21 + $0x10] sm:$0xff]  ;;  %v10564_v3 = vpack.c.bf16 %v4779_v63, %v4778_v62 }
0x1a6c   :  { %v4777_v6 = vld [vmem:[%s10929_s29] sm:$0x1f] }
0x1a6d   :  { %v4437_v7 = vmul.f32 0.044715, %v4433_v5  ;;  %v4436_v32 = vmul.f32 0.5, %v4433_v5  ;;  %10565 = vmatpush3.bf16.msra.mxu1 %v10564_v3 }
0x1a6e   :  { %10566 = vmatprep.subr.bf16.mxu1 %v10842_v0 }
0x1a6f   :  { %v4438_v10 = vmul.f32 %v4437_v7, %v4433_v5 }
0x1a71   :  { %v4439_v11 = vmul.f32 %v4438_v10, %v4433_v5  ;;  %v9377_v10 = vld [vmem:[%s10924_s25 + $0x4] sm:$0x3] }
0x1a73   :  { %v4440_v12 = vadd.f32 %v4439_v11, %v4433_v5  ;;  %v4781_v5 = vld [vmem:[%s10919_s21 + $0x18] sm:$0xff]  ;;  %v9378_v11 = vld [vmem:[%s10924_s25 + $0x6] sm:$0x3]  ;;  %s10878_s21 = smov 29  }
0x1a74   :  { %v10567_v7 = vpack.c.bf16 %v4781_v5, %v4780_v2  ;;  %s11584_s9 = sld [smem:[%s12072_s0 + %s10878_s21]]  }
0x1a75   :  { %v4441_v15 = vmul.f32 0.7978846, %v4440_v12  ;;  %v4860_v12 = vcombine.low %v9377_v10, %v9378_v11 }
0x1a76   :  { %10568 = vmatpush3.bf16.msra.mxu1 %v10567_v7  ;;  %v9386_v7 = vld [vmem:[%s10981_s15] ss:$0 sm:$0xff] }
0x1a77   :  { %10780 = vtanh.f32 %v4441_v15  ;;  %v4867_v15 = vrot.slane %v4860_v12, %v10948_v21  ;;  %10569 = vmatprep.subr.bf16.mxu1 %v10842_v0 }
0x1a81   :  { %v10781_v44 = vpop.eup %10780 }
0x1a82   :  { %v4443_v16 = vadd.f32 1.0, %v10781_v44 }
0x1a84   :  { %v4444_v17 = vmul.f32 %v4443_v16, %v4436_v32 }
0x1a86   :  { %10128 = vmatmul.mubr.msk.f32.vlgmr.msra.gmra.mrb[36].mxu0 %vm301_vm10, %v4444_v17 }
0x1a87   :  { %10143 = vmatprep.mubr.msk.f32.mxu0 %vm10844_vm0, %v10845_v1  ;;  %10142 = vmatpush3.msk.msra.mxu0 %vm388_vm8, %v4777_v6 }
0x1a88   :  { %10573 = vmatprep.subr.bf16.mxu0 %v10842_v0 }
0x1a8a   :  { %10144 = vmatmul.mubr.msk.f32.vlgmr.msra.gmra.mrb[38].mxu0 %vm385_vm9, %v4867_v15 }
0x1a8b   :  { %10161 = vmatprep.mubr.msk.f32.mxu0 %vm10844_vm0, %v10845_v1 }
0x1b59   :  { %v4527_v19 = vpop.f32.mrb[36].mxu0 }
0x1b5a   :  { %v4528_v40 = vadd.f32 %v9371_v33, %v4527_v19  ;;  %v10129_v20 = vpop.f32.mrb[37].mxu0 }
0x1b5b   :  { %v9376_v20 = vld [vmem:[%s11355_s2 + $0x1] ss:$0 sm:$0xff] }
0x1b5c   :  { %v4532_v22 = vcombine.high %v4528_v40, %v4528_v40  ;;  %v4539_v23 = vrot.slane %v4528_v40, %v10948_v21  ;;  %v9375_v40 = vld [vmem:[%s11350_s18 + $0x1] ss:$0 sm:$0xff] }
0x1b5d   :  { %v4939_v62 = vpop.f32.mrb[38].mxu0 }
0x1b5e   :  { %v4540_v24 = vcombine.high %v4539_v23, %v4539_v23  ;;  %v4547_v25 = vrot.slane %v4532_v22, %v10948_v21  ;;  %v4553_v27 = vadd.f32 %v4539_v23, %v4326_v53  ;;  %v4716_v22 = vrot.slane %v9375_v40, %v10948_v21  ;;  %v10145_v63 = vpop.f32.mrb[39].mxu0 }
0x1b5f   :  { %v4735_v23 = vrot.slane %v9376_v20, %v10948_v21  ;;  %v5283_v63 = vld [vmem:[%s11041_s19 + $0x18] sm:$0xff] }
0x1b60   :  { %v4548_v26 = vcombine.high %v4547_v25, %v4547_v25  ;;  %v4554_v28 = vadd.f32 %v4540_v24, %v4327_v39  ;;  %v4555_v34 = vadd.f32 %v4547_v25, %v4328_v54 }
0x1b62   :  { %v4565_v29 = vcombine.low %v4553_v27, %v4554_v28  ;;  %v4556_v35 = vadd.f32 %v4548_v26, %v4329_v8 }
0x1b64   :  { %v4572_v36 = vrot.slane %v4565_v29, %v10948_v21  ;;  %v4573_v37 = vcombine.low %v4555_v34, %v4556_v35  ;;  %v4736_v29 = vcombine.high %v4735_v23, %v4735_v23 }
0x1b66   :  { %v4583_v38 = vsel %vm660_vm12, %v4572_v36, 0.0  ;;  %v4580_v41 = vrot.slane %v4573_v37, %v10948_v21 }
0x1b67   :  { %4584 = vadd.xlane.f32.xlu0 %v4583_v38 }
0x1b68   :  { %v4586_v18 = vsel %vm660_vm12, %v4580_v41, 0.0 }
0x1b69   :  { %4587 = vadd.xlane.f32.xlu1 %v4586_v18 }
0x1bf4   :  { %v4585_v42 = vpop.xlane.xlu0 %4584 }
0x1bf5   :  { %v4589_v45 = vmul.f32 0.03125, %v4585_v42 }
0x1bf6   :  { %v4588_v43 = vpop.xlane.xlu1 %4587 }
0x1bf7   :  { %v4599_v46 = vrot.slane %v4589_v45, %v11009_v30  ;;  %v4606_v47 = vrot.slane %v4589_v45, %v11012_v31  ;;  %v4590_v48 = vmul.f32 0.03125, %v4588_v43 }
0x1bf9   :  { %v4625_v50 = vsub.f32 %v4553_v27, %v4599_v46  ;;  %v4626_v51 = vsub.f32 %v4554_v28, %v4606_v47  ;;  %v4613_v52 = vrot.slane %v4590_v48, %v11009_v30  ;;  %v4620_v53 = vrot.slane %v4590_v48, %v11012_v31  ;;  %v9379_v48 = vld [vmem:[%s10943_s7 + $0x4] sm:$0x3] }
0x1bfa   :  { %v4717_v27 = vcombine.high %v4716_v22, %v4716_v22 }
0x1bfb   :  { %v4627_v39 = vsub.f32 %v4555_v34, %v4613_v52  ;;  %v4628_v54 = vsub.f32 %v4556_v35, %v4620_v53  ;;  %v4629_v8 = vmul.f32 %v4625_v50, %v4625_v50  ;;  %v4630_v55 = vmul.f32 %v4626_v51, %v4626_v51 }
0x1bfd   :  { %v4637_v9 = vcombine.low %v4629_v8, %v4630_v55  ;;  %v4631_v13 = vmul.f32 %v4627_v39, %v4627_v39  ;;  %v4632_v56 = vmul.f32 %v4628_v54, %v4628_v54  ;;  %v4944_v55 = vld [vmem:[%s10934_s3 + $0x8] sm:$0x3] }
0x1bff   :  { %v4644_v14 = vrot.slane %v4637_v9, %v10948_v21  ;;  %v4645_v57 = vcombine.low %v4631_v13, %v4632_v56 }
0x1c01   :  { %v4655_v59 = vsel %vm660_vm12, %v4644_v14, 0.0  ;;  %v4652_v60 = vrot.slane %v4645_v57, %v10948_v21 }
0x1c02   :  { %4656 = vadd.xlane.f32.xlu0 %v4655_v59 }
0x1c03   :  { %v4658_v61 = vsel %vm660_vm12, %v4652_v60, 0.0 }
0x1c04   :  { %4659 = vadd.xlane.f32.xlu1 %v4658_v61 }
0x1c8f   :  { %v4657_v44 = vpop.xlane.xlu0 %4656 }
0x1c90   :  { %v4661_v32 = vmul.f32 0.03125, %v4657_v44 }
0x1c91   :  { %v4660_v16 = vpop.xlane.xlu1 %4659 }
0x1c92   :  { %v4663_v17 = vadd.f32 1e-05, %v4661_v32  ;;  %v4662_v33 = vmul.f32 0.03125, %v4660_v16 }
0x1c94   :  { %10782 = vrsqrt.f32 %v4663_v17  ;;  %v4664_v19 = vadd.f32 1e-05, %v4662_v33 }
0x1c96   :  { %10784 = vrsqrt.f32 %v4664_v19 }
0x1c9e   :  { %v10783_v24 = vpop.eup %10782 }
0x1c9f   :  { %v4675_v25 = vrot.slane %v10783_v24, %v11009_v30  ;;  %v4682_v26 = vrot.slane %v10783_v24, %v11012_v31 }
0x1ca0   :  { %v10785_v28 = vpop.eup %10784 }
0x1ca1   :  { %v4701_v34 = vmul.f32 %v4675_v25, %v4625_v50  ;;  %v4702_v35 = vmul.f32 %v4682_v26, %v4626_v51  ;;  %v4689_v36 = vrot.slane %v10785_v28, %v11009_v30  ;;  %v4696_v37 = vrot.slane %v10785_v28, %v11012_v31  ;;  %v9380_v50 = vld [vmem:[%s10943_s7 + $0x6] sm:$0x3] }
0x1ca2   :  { %v4947_v56 = vcombine.low %v9379_v48, %v9380_v50 }
0x1ca3   :  { %v4720_v38 = vmul.f32 %v4716_v22, %v4701_v34  ;;  %v4703_v41 = vmul.f32 %v4689_v36, %v4627_v39  ;;  %v4704_v18 = vmul.f32 %v4696_v37, %v4628_v54  ;;  %v4721_v42 = vmul.f32 %v4717_v27, %v4702_v35  ;;  %v4943_v39 = vld [vmem:[%s10934_s3] sm:$0xff] }
0x1ca4   :  { %v10570_v14 = vpack.c.bf16 %v4944_v55, %v4943_v39  ;;  %v4954_v61 = vrot.slane %v4947_v56, %v10948_v21  ;;  %v5280_v56 = vld [vmem:[%s11041_s19] sm:$0xff] }
0x1ca5   :  { %v4722_v45 = vmul.f32 %v4716_v22, %v4703_v41  ;;  %v4723_v43 = vmul.f32 %v4717_v27, %v4704_v18  ;;  %v4739_v46 = vadd.f32 %v4735_v23, %v4720_v38  ;;  %v4740_v47 = vadd.f32 %v4736_v29, %v4721_v42 }
0x1ca7   :  { %v4741_v51 = vadd.f32 %v4735_v23, %v4722_v45  ;;  %v4742_v52 = vadd.f32 %v4736_v29, %v4723_v43  ;;  %v4750_v53 = vrot.slane %v4739_v46, %v10989_v58  ;;  %v4754_v8 = vrot.slane %v4740_v47, %v10989_v58 }
0x1ca9   :  { %v4758_v54 = vrot.slane %v4741_v51, %v10989_v58  ;;  %v4762_v9 = vrot.slane %v4742_v52, %v10989_v58  ;;  %v4764_v13 = vsel %vm4763_vm1, %v4754_v8, %v4750_v53 }
0x1caa   :  { %4769 = vst.msk [vmem:[%s11584_s9] sm:$0x3] %vm4768_vm2, %v4764_v13 }
0x1cab   :  { %v4765_v57 = vsel %vm4763_vm1, %v4762_v9, %v4758_v54  ;;  %v4783_v59 = vsel %vm4782_vm6, %v4758_v54, %v4764_v13 }
0x1cac   :  { %4770 = vst.msk [vmem:[%s11584_s9 + $0x2] sm:$0x3] %vm4768_vm2, %v4765_v57  ;;  %v4785_v60 = vsel %vm4784_vm7, %v4762_v9, %v4783_v59  ;;  %v5385_v59 = vld [vmem:[%s11046_s24] sm:$0xff] }
0x1cad   :  { %10139 = vmatmul.mubr.msk.f32.vlgmr.msra.gmra.mrb[40].mxu1 %vm301_vm10, %v4785_v60  ;;  %v5386_v60 = vld [vmem:[%s11046_s24 + $0x8] sm:$0xff] }
0x1cae   :  { %10572 = vmatpush3.bf16.msk.msra.mxu1 %vm10902_vm3, %v10570_v14  ;;  %10150 = vmatprep.mubr.msk.f32.mxu1 %vm10844_vm0, %v10845_v1  ;;  %v5281_v14 = vld [vmem:[%s11041_s19 + $0x8] sm:$0xff] }
0x1caf   :  { %10579 = vmatprep.subr.bf16.mxu1 %v10842_v0  ;;  %v10574_v57 = vpack.c.bf16 %v5281_v14, %v5280_v56 }
0x1cb1   :  { %10151 = vmatmul.mubr.msk.f32.vlgmr.msra.gmra.mrb[42].mxu1 %vm128_vm5, %v4954_v61  ;;  %v10580_v61 = vpack.c.bf16 %v5386_v60, %v5385_v59  ;;  %10575 = vmatpush3.bf16.msra.mxu0 %v10574_v57 }
0x1cb2   :  { %10172 = vmatprep.mubr.msk.f32.mxu1 %vm10844_vm0, %v10845_v1  ;;  %10576 = vmatprep.subr.bf16.mxu0 %v10842_v0 }
0x1cb3   :  { %10581 = vmatpush3.bf16.msra.mxu1 %v10580_v61  ;;  %v9394_v61 = vld [vmem:[%s11136_s27] ss:$0 sm:$0xff] }
0x1cb4   :  { %10582 = vmatprep.subr.bf16.mxu1 %v10842_v0 }
0x1d80   :  { %v4854_v2 = vpop.f32.mrb[40].mxu1 }
0x1d81   :  { %v4940_v3 = vadd.f32 %v4939_v62, %v4854_v2  ;;  %v10140_v5 = vpop.f32.mrb[41].mxu1  ;;  %v5282_v62 = vld [vmem:[%s11041_s19 + $0x10] sm:$0xff] }
0x1d82   :  { %v10577_v2 = vpack.c.bf16 %v5283_v63, %v5282_v62  ;;  %v5388_v5 = vld [vmem:[%s11046_s24 + $0x18] sm:$0xff] }
0x1d84   :  { %v5026_v6 = vpop.f32.mrb[42].mxu1  ;;  %10578 = vmatpush3.bf16.msra.mxu0 %v10577_v2 }
0x1d85   :  { %v5030_v10 = vadd.f32 %v5026_v6, %v4940_v3  ;;  %v10152_v4 = vpop.f32.mrb[43].mxu1  ;;  %v5387_v3 = vld [vmem:[%s11046_s24 + $0x10] sm:$0xff]  ;;  %10585 = vmatprep.subr.bf16.mxu0 %v10842_v0 }
0x1d86   :  { %v10583_v6 = vpack.c.bf16 %v5388_v5, %v5387_v3 }
0x1d87   :  { %v5038_v11 = vadd.f32 %v9386_v7, %v5030_v10 }
0x1d88   :  { %10584 = vmatpush3.bf16.msra.mxu1 %v10583_v6 }
0x1d89   :  { %v5046_v12 = vrot.slane %v5038_v11, %v10984_v49  ;;  %10186 = vmatprep.subr.mxu1 %v10845_v1 }
0x1d8b   :  { %v5047_v15 = vcombine.high %v5046_v12, %v5046_v12  ;;  %v5054_v44 = vrot.slane %v5046_v12, %v10984_v49 }
0x1d8d   :  { %v5061_v32 = vrot.slane %v5047_v15, %v10984_v49  ;;  %v5062_v16 = vcombine.high %v5054_v44, %v5054_v44  ;;  %v5067_v17 = vrot.slane %v5054_v44, %v10989_v58  ;;  %v9387_v44 = vld [vmem:[%s11063_s30] ss:$0 sm:$0xff] }
0x1d8f   :  { %v5063_v33 = vcombine.high %v5061_v32, %v5061_v32  ;;  %v5071_v19 = vrot.slane %v5061_v32, %v10989_v58  ;;  %v5075_v40 = vrot.slane %v5062_v16, %v10989_v58  ;;  %v5084_v20 = vsel %vm631_vm11, %v4739_v46, %v5067_v17  ;;  %v9388_v32 = vld [vmem:[%s11068_s5] ss:$0 sm:$0xff] }
0x1d90   :  { %v5245_v16 = vrot.slane %v9387_v44, %v10948_v21  ;;  %v5264_v17 = vrot.slane %v9388_v32, %v10948_v21 }
0x1d91   :  { %v5085_v22 = vsel %vm631_vm11, %v4740_v47, %v5071_v19  ;;  %v5079_v23 = vrot.slane %v5063_v33, %v10989_v58  ;;  %v5086_v25 = vsel %vm631_vm11, %v4741_v51, %v5075_v40 }
0x1d92   :  { %v5094_v24 = vcombine.low %v5084_v20, %v5085_v22  ;;  %v5246_v19 = vcombine.high %v5245_v16, %v5245_v16 }
0x1d93   :  { %v5087_v26 = vsel %vm631_vm11, %v4742_v52, %v5079_v23  ;;  %v5265_v23 = vcombine.high %v5264_v17, %v5264_v17 }
0x1d94   :  { %v5101_v49 = vrot.slane %v5094_v24, %v10948_v21  ;;  %v5102_v27 = vcombine.low %v5086_v25, %v5087_v26 }
0x1d96   :  { %v5112_v28 = vsel %vm660_vm12, %v5101_v49, 0.0  ;;  %v5109_v29 = vrot.slane %v5102_v27, %v10948_v21 }
0x1d97   :  { %5113 = vadd.xlane.f32.xlu0 %v5112_v28 }
0x1d98   :  { %v5115_v34 = vsel %vm660_vm12, %v5109_v29, 0.0 }
0x1d99   :  { %5116 = vadd.xlane.f32.xlu1 %v5115_v34 }
0x1e24   :  { %v5114_v35 = vpop.xlane.xlu0 %5113 }
0x1e25   :  { %v5118_v36 = vmul.f32 0.03125, %v5114_v35 }
0x1e26   :  { %v5117_v37 = vpop.xlane.xlu1 %5116 }
0x1e27   :  { %v5128_v38 = vrot.slane %v5118_v36, %v11009_v30  ;;  %v5135_v41 = vrot.slane %v5118_v36, %v11012_v31  ;;  %v5119_v18 = vmul.f32 0.03125, %v5117_v37 }
0x1e29   :  { %v5154_v42 = vsub.f32 %v5084_v20, %v5128_v38  ;;  %v5155_v45 = vsub.f32 %v5085_v22, %v5135_v41  ;;  %v5142_v43 = vrot.slane %v5119_v18, %v11009_v30  ;;  %v5149_v46 = vrot.slane %v5119_v18, %v11012_v31 }
0x1e2b   :  { %v5156_v47 = vsub.f32 %v5086_v25, %v5142_v43  ;;  %v5157_v48 = vsub.f32 %v5087_v26, %v5149_v46  ;;  %v5158_v50 = vmul.f32 %v5154_v42, %v5154_v42  ;;  %v5159_v51 = vmul.f32 %v5155_v45, %v5155_v45  ;;  %v5466_v43 = vld [vmem:[%s11083_s10] sm:$0xff]  ;;  %v5467_v46 = vld [vmem:[%s11083_s10 + $0x8] sm:$0xff] }
0x1e2d   :  { %v5166_v52 = vcombine.low %v5158_v50, %v5159_v51  ;;  %v5160_v53 = vmul.f32 %v5156_v47, %v5156_v47  ;;  %v5161_v8 = vmul.f32 %v5157_v48, %v5157_v48  ;;  %v10586_v50 = vpack.c.bf16 %v5467_v46, %v5466_v43  ;;  %v9420_v43 = vld [vmem:[%s11083_s10 + $0x28] sm:$0xff] }
0x1e2f   :  { %v5173_v39 = vrot.slane %v5166_v52, %v10948_v21  ;;  %v5174_v55 = vcombine.low %v5160_v53, %v5161_v8  ;;  %v5468_v52 = vld [vmem:[%s11083_s10 + $0x10] sm:$0xff]  ;;  %v5469_v53 = vld [vmem:[%s11083_s10 + $0x18] sm:$0xff] }
0x1e30   :  { %v10589_v8 = vpack.c.bf16 %v5469_v53, %v5468_v52  ;;  %v5873_v52 = vld [vmem:[%s11186_s4] sm:$0xff]  ;;  %v5874_v53 = vld [vmem:[%s11186_s4 + $0x8] sm:$0xff] }
0x1e31   :  { %v5184_v54 = vsel %vm660_vm12, %v5173_v39, 0.0  ;;  %v5181_v9 = vrot.slane %v5174_v55, %v10948_v21  ;;  %v9390_v39 = vld [vmem:[%s11124_s14] ss:$0 sm:$0xff] }
0x1e32   :  { %5185 = vadd.xlane.f32.xlu0 %v5184_v54  ;;  %v9392_v55 = vld [vmem:[%s11129_s20] ss:$0 sm:$0xff] }
0x1e33   :  { %v5187_v13 = vsel %vm660_vm12, %v5181_v9, 0.0 }
0x1e34   :  { %5188 = vadd.xlane.f32.xlu1 %v5187_v13 }
0x1ebf   :  { %v5186_v7 = vpop.xlane.xlu0 %5185 }
0x1ec0   :  { %v5190_v10 = vmul.f32 0.03125, %v5186_v7 }
0x1ec1   :  { %v5189_v4 = vpop.xlane.xlu1 %5188 }
0x1ec2   :  { %v5192_v11 = vadd.f32 1e-05, %v5190_v10  ;;  %v5191_v12 = vmul.f32 0.03125, %v5189_v4 }
0x1ec4   :  { %10786 = vrsqrt.f32 %v5192_v11  ;;  %v5193_v15 = vadd.f32 1e-05, %v5191_v12 }
0x1ec6   :  { %10788 = vrsqrt.f32 %v5193_v15 }
0x1ece   :  { %v10787_v33 = vpop.eup %10786 }
0x1ecf   :  { %v5204_v40 = vrot.slane %v10787_v33, %v11009_v30  ;;  %v5211_v20 = vrot.slane %v10787_v33, %v11012_v31 }
0x1ed0   :  { %v10789_v22 = vpop.eup %10788 }
0x1ed1   :  { %v5230_v24 = vmul.f32 %v5204_v40, %v5154_v42  ;;  %v5231_v25 = vmul.f32 %v5211_v20, %v5155_v45  ;;  %v5218_v26 = vrot.slane %v10789_v22, %v11009_v30  ;;  %v5225_v49 = vrot.slane %v10789_v22, %v11012_v31 }
0x1ed3   :  { %v5249_v27 = vmul.f32 %v5245_v16, %v5230_v24  ;;  %v5250_v28 = vmul.f32 %v5246_v19, %v5231_v25  ;;  %v5232_v29 = vmul.f32 %v5218_v26, %v5156_v47  ;;  %v5233_v34 = vmul.f32 %v5225_v49, %v5157_v48  ;;  %v9405_v49 = vld [vmem:[%s11041_s19 + $0x20] sm:$0xff] }
0x1ed5   :  { %v11654_v35 = vadd.f32 %v5264_v17, %v5249_v27  ;;  %v11656_v36 = vadd.f32 %v5265_v23, %v5250_v28  ;;  %v5251_v37 = vmul.f32 %v5245_v16, %v5232_v29  ;;  %v5252_v38 = vmul.f32 %v5246_v19, %v5233_v34  ;;  %v9406_v27 = vld [vmem:[%s11041_s19 + $0x28] sm:$0xff] }
0x1ed6   :  { %v10595_v29 = vpack.c.bf16 %v9406_v27, %v9405_v49 }
0x1ed7   :  { %v5295_v41 = vcombine.low %v11654_v35, %v11656_v36  ;;  %v11660_v18 = vadd.f32 %v5264_v17, %v5251_v37  ;;  %v11662_v42 = vadd.f32 %v5265_v23, %v5252_v38  ;;  %v9407_v37 = vld [vmem:[%s11041_s19 + $0x30] sm:$0xff]  ;;  %v9408_v38 = vld [vmem:[%s11041_s19 + $0x38] sm:$0xff] }
0x1ed9   :  { %v5296_v45 = vcombine.low %v11660_v18, %v11662_v42  ;;  %v5303_v47 = vrot.slane %v5295_v41, %v10948_v21  ;;  %v10598_v41 = vpack.c.bf16 %v9408_v38, %v9407_v37 }
0x1edb   :  { %v5310_v48 = vrot.slane %v5296_v45, %v10948_v21  ;;  %v9419_v45 = vld [vmem:[%s11083_s10 + $0x20] sm:$0xff] }
0x1edc   :  { %v10607_v46 = vpack.c.bf16 %v9420_v43, %v9419_v45 }
0x1edd   :  { %v11670_v51 = vcombine.low %v5303_v47, %v5310_v48  ;;  %v9421_v47 = vld [vmem:[%s11083_s10 + $0x30] sm:$0xff]  ;;  %v9422_v48 = vld [vmem:[%s11083_s10 + $0x38] sm:$0xff] }
0x1edf   :  { %10162 = vmatmul.mubr.msk.f32.vlgmr.msra.gmra.mrb[40].mxu0 %vm301_vm10, %v11670_v51  ;;  %10173 = vmatmul.mubr.msk.f32.vlgmr.msra.gmra.mrb[44].mxu1 %vm301_vm10, %v11670_v51 }
0x1ee0   :  { %10587 = vmatpush3.bf16.msra.mxu0 %v10586_v50  ;;  %10183 = vmatprep.mubr.msk.f32.mxu0 %vm10844_vm0, %v10845_v1  ;;  %v10610_v50 = vpack.c.bf16 %v9422_v48, %v9421_v47  ;;  %v9434_v48 = vld [vmem:[%s11186_s4 + $0x10] sm:$0xff] }
0x1ee1   :  { %10588 = vmatprep.subr.bf16.mxu0 %v10842_v0  ;;  %10188 = vmatprep.mubr.msk.f32.mxu1 %vm10844_vm0, %v10845_v1 }
0x1ee4   :  { %10590 = vmatpush3.bf16.msra.mxu0 %v10589_v8  ;;  %v10592_v8 = vpack.c.bf16 %v5874_v53, %v5873_v52 }
0x1ee5   :  { %10196 = vmatprep.subr.mxu0 %v10845_v1 }
0x1ee7   :  { %10184 = vmatmul.mubr.msk.f32.vlgmr.msra.gmra.mrb[42].mxu0 %vm301_vm10, %v11670_v51 }
0x1ee8   :  { %10198 = vmatprep.mubr.msk.f32.mxu0 %vm10844_vm0, %v10845_v1 }
0x1fb2   :  { %v5380_v54 = vpop.f32.mrb[40].mxu0  ;;  %v5462_v9 = vpop.f32.mrb[44].mxu1 }
0x1fb3   :  { %v5381_v13 = vadd.f32 %v9390_v39, %v5380_v54  ;;  %v5463_v56 = vadd.f32 %v9392_v55, %v5462_v9  ;;  %v10163_v14 = vpop.f32.mrb[41].mxu0  ;;  %v10174_v57 = vpop.f32.mrb[45].mxu1  ;;  %v9412_v54 = vld [vmem:[%s11046_s24 + $0x20] sm:$0xff]  ;;  %v9413_v9 = vld [vmem:[%s11046_s24 + $0x28] sm:$0xff] }
0x1fb5   :  { %v5384_v59 = vmul.f32 0.25, %v5381_v13  ;;  %10187 = vmatpush3.xpose.msk.msra.mxu1 %vm1103_vm13, %v5463_v56  ;;  %v5550_v60 = vcombine.high %v5463_v56, %v5463_v56  ;;  %v10601_v56 = vpack.c.bf16 %v9413_v9, %v9412_v54  ;;  %v9389_v9 = vld [vmem:[%s11240_s11] ss:$0 sm:$0xff] }
0x1fb6   :  { %10191 = vmatprep.subr.mxu1 %v10845_v1 }
0x1fb7   :  { %v5548_v62 = vcombine.high %v5384_v59, %v5384_v59 }
0x1fb8   :  { %10189 = vmatmul.mubr.msk.f32.vlgmr.msra.gmra.mrb[46].mxu1 %vm1103_vm13, %v5384_v59  ;;  %v9414_v59 = vld [vmem:[%s11046_s24 + $0x30] sm:$0xff] }
0x1fb9   :  { %10192 = vmatpush3.xpose.msk.msra.mxu1 %vm1103_vm13, %v5550_v60  ;;  %10193 = vmatprep.mubr.msk.f32.mxu1 %vm10844_vm0, %v10845_v1  ;;  %v9415_v60 = vld [vmem:[%s11046_s24 + $0x38] sm:$0xff] }
0x1fba   :  { %v5543_v63 = vpop.f32.mrb[42].mxu0  ;;  %10201 = vmatprep.subr.mxu1 %v10845_v1 }
0x1fbb   :  { %v5544_v2 = vadd.f32 %v9394_v61, %v5543_v63  ;;  %v10185_v3 = vpop.f32.mrb[43].mxu0  ;;  %v10604_v61 = vpack.c.bf16 %v9415_v60, %v9414_v59 }
0x1fbc   :  { %10194 = vmatmul.mubr.msk.f32.vlgmr.msra.gmra.mrb[48].mxu1 %vm1103_vm13, %v5548_v62 }
0x1fbd   :  { %v5552_v5 = vcombine.high %v5544_v2, %v5544_v2  ;;  %10197 = vmatpush3.msk.msra.mxu0 %vm210_vm4, %v5544_v2  ;;  %10203 = vmatprep.mubr.msk.f32.mxu1 %vm10844_vm0, %v10845_v1  ;;  %v9424_v2 = vld [vmem:[%s11136_s27 + $0x1] ss:$0 sm:$0xff] }
0x1fbe   :  { %10591 = vmatprep.subr.bf16.mxu0 %v10842_v0 }
0x1fbf   :  { %10202 = vmatpush3.msk.msra.mxu1 %vm210_vm4, %v5552_v5 }
0x1fc0   :  { %10594 = vmatprep.subr.bf16.mxu1 %v10842_v0 }
0x208b   :  { %v5623_v6 = vpop.f32.mrb[46].mxu1 }
0x208c   :  { %v10190_v7 = vpop.f32.mrb[47].mxu1  ;;  %v5701_v10 = vsel %vm1252_vm14, %v5623_v6, -inf }
0x208d   :  { %5702 = vmax.xlane.f32.xlu0 %v5701_v10  ;;  %v9410_v7 = vld [vmem:[%s11124_s14 + $0x1] ss:$0 sm:$0xff] }
0x208e   :  { %v9417_v10 = vld [vmem:[%s11129_s20 + $0x1] ss:$0 sm:$0xff] }
0x208f   :  { %v5697_v4 = vpop.f32.mrb[48].mxu1 }
0x2090   :  { %v10195_v11 = vpop.f32.mrb[49].mxu1  ;;  %v5704_v12 = vsel %vm1252_vm14, %v5697_v4, -inf }
0x2091   :  { %5705 = vmax.xlane.f32.xlu1 %v5704_v12 }
0x211a   :  { %v5703_v15 = vpop.xlane.xlu0 %5702 }
0x211b   :  { %v5707_v44 = vsub.f32 %v5623_v6, %v5703_v15 }
0x211d   :  { %v5709_v32 = vmul.f32 1.442695, %v5707_v44 }
0x211e   :  { %v5706_v16 = vpop.xlane.xlu1 %5705 }
0x211f   :  { %10790 = vpow2.f32 %v5709_v32  ;;  %v5708_v17 = vsub.f32 %v5697_v4, %v5706_v16 }
0x2121   :  { %v5711_v33 = vmul.f32 1.442695, %v5708_v17 }
0x2123   :  { %10792 = vpow2.f32 %v5711_v33 }
0x2129   :  { %v10791_v19 = vpop.eup %10790 }
0x212a   :  { %v5713_v40 = vsel %vm1252_vm14, %v10791_v19, 0.0 }
0x212b   :  { %5714 = vadd.xlane.f32.xlu0 %v5713_v40 }
0x212d   :  { %v10793_v20 = vpop.eup %10792 }
0x212e   :  { %v5716_v22 = vsel %vm1252_vm14, %v10793_v20, 0.0 }
0x212f   :  { %5717 = vadd.xlane.f32.xlu1 %v5716_v22 }
0x21b8   :  { %v5715_v23 = vpop.xlane.xlu0 %5714 }
0x21b9   :  { %10794 = vrcp.f32 %v5715_v23 }
0x21bc   :  { %v5718_v24 = vpop.xlane.xlu1 %5717 }
0x21bd   :  { %10796 = vrcp.f32 %v5718_v24 }
0x21c3   :  { %v10795_v25 = vpop.eup %10794 }
0x21c4   :  { %v5721_v26 = vmul.f32 %v10795_v25, %v10791_v19 }
0x21c6   :  { %10199 = vmatmul.mubr.msk.f32.vlgmr.msra.gmra.mrb[44].mxu0 %vm1275_vm15, %v5721_v26 }
0x21c7   :  { %v10797_v28 = vpop.eup %10796  ;;  %10210 = vmatprep.mubr.msk.f32.mxu0 %vm10844_vm0, %v10845_v1  ;;  %10593 = vmatpush3.bf16.msra.mxu0 %v10592_v8 }
0x21c8   :  { %v5722_v34 = vmul.f32 %v10797_v28, %v10793_v20  ;;  %10600 = vmatprep.subr.bf16.mxu0 %v10842_v0 }
0x21ca   :  { %10204 = vmatmul.mubr.msk.f32.vlgmr.msra.gmra.mrb[50].mxu1 %vm1275_vm15, %v5722_v34 }
0x21cb   :  { %10596 = vmatpush3.bf16.msra.mxu1 %v10595_v29  ;;  %10221 = vmatprep.mubr.msk.f32.mxu1 %vm10844_vm0, %v10845_v1 }
0x21cc   :  { %10597 = vmatprep.subr.bf16.mxu1 %v10842_v0 }
0x21cf   :  { %10599 = vmatpush3.bf16.msra.mxu1 %v10598_v41 }
0x21d0   :  { %10606 = vmatprep.subr.bf16.mxu1 %v10842_v0 }
0x21d2   :  { %10222 = vmatmul.mubr.msk.f32.vlgmr.msra.gmra.mrb[52].mxu1 %vm301_vm10, %v11670_v51 }
0x21d3   :  { %10608 = vmatpush3.bf16.msra.mxu1 %v10607_v46  ;;  %10243 = vmatprep.mubr.msk.f32.mxu1 %vm10844_vm0, %v10845_v1 }
0x21d4   :  { %10609 = vmatprep.subr.bf16.mxu1 %v10842_v0 }
0x21d7   :  { %10611 = vmatpush3.bf16.msra.mxu1 %v10610_v50  ;;  %v9435_v50 = vld [vmem:[%s11186_s4 + $0x18] sm:$0xff] }
0x21d8   :  { %10256 = vmatprep.subr.mxu1 %v10845_v1  ;;  %v10613_v52 = vpack.c.bf16 %v9435_v50, %v9434_v48 }
0x21da   :  { %10244 = vmatmul.mubr.msk.f32.vlgmr.msra.gmra.mrb[54].mxu1 %vm301_vm10, %v11670_v51 }
0x21db   :  { %10258 = vmatprep.mubr.msk.f32.mxu1 %vm10844_vm0, %v10845_v1 }
0x2299   :  { %v5794_v39 = vpop.f32.mrb[44].mxu0 }
0x229a   :  { %v10200_v55 = vpop.f32.mrb[45].mxu0 }
0x229d   :  { %v5869_v13 = vpop.f32.mrb[50].mxu1 }
0x229e   :  { %v5877_v14 = vcombine.low %v5794_v39, %v5869_v13  ;;  %v10205_v57 = vpop.f32.mrb[51].mxu1 }
0x22a0   :  { %10211 = vmatmul.mubr.msk.f32.vlgmr.msra.gmra.mrb[46].mxu0 %vm1103_vm13, %v5877_v14 }
0x22a1   :  { %10602 = vmatpush3.bf16.msra.mxu0 %v10601_v56  ;;  %10232 = vmatprep.mubr.msk.f32.mxu0 %vm10844_vm0, %v10845_v1 }
0x22a2   :  { %10603 = vmatprep.subr.bf16.mxu0 %v10842_v0 }
0x22a5   :  { %v6028_v62 = vpop.f32.mrb[52].mxu1  ;;  %10605 = vmatpush3.bf16.msra.mxu0 %v10604_v61 }
0x22a6   :  { %v10223_v63 = vpop.f32.mrb[53].mxu1  ;;  %10246 = vmatprep.subr.mxu0 %v10845_v1  ;;  %v6029_v4 = vadd.f32 %v9410_v7, %v6028_v62 }
0x22a8   :  { %10233 = vmatmul.mubr.msk.f32.vlgmr.msra.gmra.mrb[48].mxu0 %vm301_vm10, %v11670_v51  ;;  %v6032_v51 = vmul.f32 0.25, %v6029_v4 }
0x22a9   :  { %10248 = vmatprep.mubr.msk.f32.mxu0 %vm10844_vm0, %v10845_v1 }
0x22aa   :  { %v6196_v32 = vcombine.high %v6032_v51, %v6032_v51 }
0x22ad   :  { %v6191_v3 = vpop.f32.mrb[54].mxu1 }
0x22ae   :  { %v6192_v5 = vadd.f32 %v9424_v2, %v6191_v3  ;;  %v10245_v6 = vpop.f32.mrb[55].mxu1 }
0x22b0   :  { %10257 = vmatpush3.msk.msra.mxu1 %vm210_vm4, %v6192_v5  ;;  %v6200_v16 = vcombine.high %v6192_v5, %v6192_v5 }
0x22b1   :  { %10615 = vmatprep.subr.bf16.mxu1 %v10842_v0 }
0x237b   :  { %v6110_v11 = vpop.f32.mrb[48].mxu0 }
0x237c   :  { %v6111_v12 = vadd.f32 %v9417_v10, %v6110_v11  ;;  %v10234_v15 = vpop.f32.mrb[49].mxu0 }
0x237e   :  { %10247 = vmatpush3.xpose.msk.msra.mxu0 %vm1103_vm13, %v6111_v12  ;;  %v6198_v44 = vcombine.high %v6111_v12, %v6111_v12 }
0x237f   :  { %10251 = vmatprep.subr.mxu0 %v10845_v1 }
0x2381   :  { %10249 = vmatmul.mubr.msk.f32.vlgmr.msra.gmra.mrb[50].mxu0 %vm1103_vm13, %v6032_v51 }
0x2382   :  { %10252 = vmatpush3.xpose.msk.msra.mxu0 %vm1103_vm13, %v6198_v44  ;;  %10253 = vmatprep.mubr.msk.f32.mxu0 %vm10844_vm0, %v10845_v1 }
0x2383   :  { %10261 = vmatprep.subr.mxu0 %v10845_v1 }
0x2385   :  { %10254 = vmatmul.mubr.msk.f32.vlgmr.msra.gmra.mrb[52].mxu0 %vm1103_vm13, %v6196_v32 }
0x2386   :  { %10262 = vmatpush3.msk.msra.mxu0 %vm210_vm4, %v6200_v16  ;;  %10263 = vmatprep.mubr.msk.f32.mxu0 %vm10844_vm0, %v10845_v1 }
0x2387   :  { %10612 = vmatprep.subr.bf16.mxu0 %v10842_v0 }
0x2454   :  { %v6271_v17 = vpop.f32.mrb[50].mxu0 }
0x2455   :  { %v10250_v33 = vpop.f32.mrb[51].mxu0  ;;  %v6349_v19 = vsel %vm1252_vm14, %v6271_v17, -inf }
0x2456   :  { %6350 = vmax.xlane.f32.xlu0 %v6349_v19 }
0x2458   :  { %v6345_v40 = vpop.f32.mrb[52].mxu0 }
0x2459   :  { %v10255_v20 = vpop.f32.mrb[53].mxu0  ;;  %v6352_v22 = vsel %vm1252_vm14, %v6345_v40, -inf }
0x245a   :  { %6353 = vmax.xlane.f32.xlu1 %v6352_v22 }
0x24e3   :  { %v6351_v23 = vpop.xlane.xlu0 %6350 }
0x24e4   :  { %v6355_v24 = vsub.f32 %v6271_v17, %v6351_v23 }
0x24e6   :  { %v6357_v25 = vmul.f32 1.442695, %v6355_v24 }
0x24e7   :  { %v6354_v26 = vpop.xlane.xlu1 %6353 }
0x24e8   :  { %10798 = vpow2.f32 %v6357_v25  ;;  %v6356_v49 = vsub.f32 %v6345_v40, %v6354_v26 }
0x24ea   :  { %v6359_v27 = vmul.f32 1.442695, %v6356_v49 }
0x24ec   :  { %10800 = vpow2.f32 %v6359_v27 }
0x24f2   :  { %v10799_v28 = vpop.eup %10798 }
0x24f3   :  { %v6361_v29 = vsel %vm1252_vm14, %v10799_v28, 0.0 }
0x24f4   :  { %6362 = vadd.xlane.f32.xlu0 %v6361_v29  ;;  %v6809_v29 = vld [vmem:[%s11264_s17] sm:$0xff] }
0x24f6   :  { %v10801_v34 = vpop.eup %10800 }
0x24f7   :  { %v6364_v37 = vsel %vm1252_vm14, %v10801_v34, 0.0 }
0x24f8   :  { %6365 = vadd.xlane.f32.xlu1 %v6364_v37  ;;  %v6811_v37 = vld [vmem:[%s11264_s17 + $0x10] sm:$0xff] }
0x2581   :  { %v6363_v38 = vpop.xlane.xlu0 %6362 }
0x2582   :  { %10802 = vrcp.f32 %v6363_v38 }
0x2585   :  { %v6366_v41 = vpop.xlane.xlu1 %6365 }
0x2586   :  { %10804 = vrcp.f32 %v6366_v41  ;;  %v6812_v41 = vld [vmem:[%s11264_s17 + $0x18] sm:$0xff] }
0x258c   :  { %v10803_v45 = vpop.eup %10802 }
0x258d   :  { %v6369_v43 = vmul.f32 %v10803_v45, %v10799_v28  ;;  %v10619_v45 = vpack.c.bf16 %v6812_v41, %v6811_v37  ;;  %v9441_v37 = vld [vmem:[%s11318_s8] ss:$0 sm:$0xff] }
0x258f   :  { %10259 = vmatmul.mubr.msk.f32.vlgmr.msra.gmra.mrb[56].mxu1 %vm1275_vm15, %v6369_v43 }
0x2590   :  { %v10805_v46 = vpop.eup %10804  ;;  %10281 = vmatprep.mubr.msk.f32.mxu1 %vm10844_vm0, %v10845_v1 }
0x2591   :  { %v6370_v47 = vmul.f32 %v10805_v46, %v10801_v34  ;;  %v6810_v34 = vld [vmem:[%s11264_s17 + $0x8] sm:$0xff] }
0x2592   :  { %v10616_v38 = vpack.c.bf16 %v6810_v34, %v6809_v29 }
0x2593   :  { %10264 = vmatmul.mubr.msk.f32.vlgmr.msra.gmra.mrb[54].mxu0 %vm1275_vm15, %v6370_v47 }
0x2594   :  { %10270 = vmatprep.mubr.msk.f32.mxu0 %vm10844_vm0, %v10845_v1  ;;  %10614 = vmatpush3.bf16.msra.mxu0 %v10613_v52 }
0x2595   :  { %10621 = vmatprep.subr.bf16.mxu0 %v10842_v0  ;;  %10617 = vmatpush3.bf16.msra.mxu1 %v10616_v38 }
0x2596   :  { %10618 = vmatprep.subr.bf16.mxu1 %v10842_v0 }
0x2599   :  { %10620 = vmatpush3.bf16.msra.mxu1 %v10619_v45 }
0x259a   :  { %10627 = vmatprep.subr.bf16.mxu1 %v10842_v0 }
0x2662   :  { %v6442_v53 = vpop.f32.mrb[56].mxu1 }
0x2663   :  { %v10260_v8 = vpop.f32.mrb[57].mxu1 }
0x2664   :  { %v9438_v8 = vld [vmem:[%s11280_s6] ss:$0 sm:$0xff] }
0x2666   :  { %v6517_v39 = vpop.f32.mrb[54].mxu0 }
0x2667   :  { %v6525_v55 = vcombine.low %v6442_v53, %v6517_v39  ;;  %v10265_v54 = vpop.f32.mrb[55].mxu0  ;;  %v9437_v53 = vld [vmem:[%s11275_s26] ss:$0 sm:$0xff] }
0x2668   :  { %v6782_v39 = vrot.slane %v9437_v53, %v10948_v21 }
0x2669   :  { %10271 = vmatmul.mubr.msk.f32.vlgmr.msra.gmra.mrb[46].mxu0 %vm1103_vm13, %v6525_v55  ;;  %v6801_v55 = vrot.slane %v9438_v8, %v10948_v21 }
0x266a   :  { %10292 = vmatprep.mubr.msk.f32.mxu0 %vm10844_vm0, %v10845_v1 }
0x273c   :  { %v6594_v13 = vpop.f32.mrb[46].mxu0 }
0x273d   :  { %v10683_v56 = vadd.f32 %v9389_v9, %v6594_v13  ;;  %v10272_v14 = vpop.f32.mrb[47].mxu0  ;;  %v6783_v9 = vcombine.high %v6782_v39, %v6782_v39 }
0x273f   :  { %v6600_v57 = vcombine.high %v10683_v56, %v10683_v56  ;;  %v6607_v59 = vrot.slane %v10683_v56, %v10948_v21 }
0x2741   :  { %v6608_v60 = vcombine.high %v6607_v59, %v6607_v59  ;;  %v6615_v61 = vrot.slane %v6600_v57, %v10948_v21  ;;  %v6621_v63 = vadd.f32 %v6607_v59, %v11654_v35  ;;  %v6802_v57 = vcombine.high %v6801_v55, %v6801_v55 }
0x2743   :  { %v6616_v62 = vcombine.high %v6615_v61, %v6615_v61  ;;  %v6622_v2 = vadd.f32 %v6608_v60, %v11656_v36  ;;  %v6623_v5 = vadd.f32 %v6615_v61, %v11660_v18 }
0x2745   :  { %v6631_v3 = vcombine.low %v6621_v63, %v6622_v2  ;;  %v6624_v6 = vadd.f32 %v6616_v62, %v11662_v42 }
0x2747   :  { %v6638_v7 = vrot.slane %v6631_v3, %v10948_v21  ;;  %v6639_v10 = vcombine.low %v6623_v5, %v6624_v6 }
0x2749   :  { %v6649_v4 = vsel %vm660_vm12, %v6638_v7, 0.0  ;;  %v6646_v11 = vrot.slane %v6639_v10, %v10948_v21 }
0x274a   :  { %6650 = vadd.xlane.f32.xlu0 %v6649_v4 }
0x274b   :  { %v6652_v12 = vsel %vm660_vm12, %v6646_v11, 0.0 }
0x274c   :  { %6653 = vadd.xlane.f32.xlu1 %v6652_v12 }
0x27d7   :  { %v6651_v15 = vpop.xlane.xlu0 %6650 }
0x27d8   :  { %v6655_v35 = vmul.f32 0.03125, %v6651_v15 }
0x27d9   :  { %v6654_v51 = vpop.xlane.xlu1 %6653 }
0x27da   :  { %v6665_v36 = vrot.slane %v6655_v35, %v11009_v30  ;;  %v6672_v18 = vrot.slane %v6655_v35, %v11012_v31  ;;  %v6656_v44 = vmul.f32 0.03125, %v6654_v51 }
0x27dc   :  { %v6691_v42 = vsub.f32 %v6621_v63, %v6665_v36  ;;  %v6692_v32 = vsub.f32 %v6622_v2, %v6672_v18  ;;  %v6679_v16 = vrot.slane %v6656_v44, %v11009_v30  ;;  %v6686_v17 = vrot.slane %v6656_v44, %v11012_v31  ;;  %v6922_v44 = vld [vmem:[%s11298_s13] sm:$0xff] }
0x27de   :  { %v6693_v33 = vsub.f32 %v6623_v5, %v6679_v16  ;;  %v6694_v19 = vsub.f32 %v6624_v6, %v6686_v17  ;;  %v6695_v40 = vmul.f32 %v6691_v42, %v6691_v42  ;;  %v6696_v20 = vmul.f32 %v6692_v32, %v6692_v32  ;;  %v6925_v17 = vld [vmem:[%s11298_s13 + $0x18] sm:$0xff] }
0x27e0   :  { %v6703_v22 = vcombine.low %v6695_v40, %v6696_v20  ;;  %v6697_v23 = vmul.f32 %v6693_v33, %v6693_v33  ;;  %v6698_v24 = vmul.f32 %v6694_v19, %v6694_v19 }
0x27e2   :  { %v6710_v25 = vrot.slane %v6703_v22, %v10948_v21  ;;  %v6711_v26 = vcombine.low %v6697_v23, %v6698_v24 }
0x27e4   :  { %v6721_v49 = vsel %vm660_vm12, %v6710_v25, 0.0  ;;  %v6718_v27 = vrot.slane %v6711_v26, %v10948_v21 }
0x27e5   :  { %6722 = vadd.xlane.f32.xlu0 %v6721_v49 }
0x27e6   :  { %v6724_v28 = vsel %vm660_vm12, %v6718_v27, 0.0 }
0x27e7   :  { %6725 = vadd.xlane.f32.xlu1 %v6724_v28 }
0x2872   :  { %v6723_v43 = vpop.xlane.xlu0 %6722 }
0x2873   :  { %v6727_v46 = vmul.f32 0.03125, %v6723_v43 }
0x2874   :  { %v6726_v47 = vpop.xlane.xlu1 %6725 }
0x2875   :  { %v6729_v48 = vadd.f32 1e-05, %v6727_v46  ;;  %v6728_v50 = vmul.f32 0.03125, %v6726_v47 }
0x2877   :  { %10806 = vrsqrt.f32 %v6729_v48  ;;  %v6730_v52 = vadd.f32 1e-05, %v6728_v50 }
0x2879   :  { %10808 = vrsqrt.f32 %v6730_v52 }
0x2881   :  { %v10807_v54 = vpop.eup %10806 }
0x2882   :  { %v6741_v13 = vrot.slane %v10807_v54, %v11009_v30  ;;  %v6748_v56 = vrot.slane %v10807_v54, %v11012_v31 }
0x2883   :  { %v10809_v14 = vpop.eup %10808 }
0x2884   :  { %v6767_v59 = vmul.f32 %v6741_v13, %v6691_v42  ;;  %v6768_v60 = vmul.f32 %v6748_v56, %v6692_v32  ;;  %v6755_v61 = vrot.slane %v10809_v14, %v11009_v30  ;;  %v6762_v62 = vrot.slane %v10809_v14, %v11012_v31  ;;  %v6923_v42 = vld [vmem:[%s11298_s13 + $0x8] sm:$0xff]  ;;  %v6924_v32 = vld [vmem:[%s11298_s13 + $0x10] sm:$0xff] }
0x2885   :  { %v10622_v16 = vpack.c.bf16 %v6923_v42, %v6922_v44 }
0x2886   :  { %v6786_v63 = vmul.f32 %v6782_v39, %v6767_v59  ;;  %v6787_v2 = vmul.f32 %v6783_v9, %v6768_v60  ;;  %v6769_v3 = vmul.f32 %v6755_v61, %v6693_v33  ;;  %v6770_v5 = vmul.f32 %v6762_v62, %v6694_v19  ;;  %v9439_v19 = vld [vmem:[%s11309_s23] ss:$0 sm:$0xff] }
0x2887   :  { %10623 = vmatpush3.bf16.msra.mxu0 %v10622_v16  ;;  %v10625_v33 = vpack.c.bf16 %v6925_v17, %v6924_v32  ;;  %v9447_v32 = vld [vmem:[%s11041_s19 + $0x40] sm:$0xff]  ;;  %v9448_v16 = vld [vmem:[%s11041_s19 + $0x48] sm:$0xff] }
0x2888   :  { %v6788_v6 = vmul.f32 %v6782_v39, %v6769_v3  ;;  %v6789_v7 = vmul.f32 %v6783_v9, %v6770_v5  ;;  %v6805_v10 = vadd.f32 %v6801_v55, %v6786_v63  ;;  %v6806_v4 = vadd.f32 %v6802_v57, %v6787_v2  ;;  %10624 = vmatprep.subr.bf16.mxu0 %v10842_v0 }
0x2889   :  { %v10628_v17 = vpack.c.bf16 %v9448_v16, %v9447_v32 }
0x288a   :  { %v6807_v11 = vadd.f32 %v6801_v55, %v6788_v6  ;;  %v6808_v12 = vadd.f32 %v6802_v57, %v6789_v7  ;;  %v6824_v15 = vcombine.low %v6805_v10, %v6806_v4 }
0x288b   :  { %10626 = vmatpush3.bf16.msra.mxu0 %v10625_v33  ;;  %v9454_v33 = vld [vmem:[%s11046_s24 + $0x40] sm:$0xff] }
0x288c   :  { %v6825_v35 = vcombine.low %v6807_v11, %v6808_v12  ;;  %v6832_v51 = vrot.slane %v6824_v15, %v10948_v21  ;;  %10633 = vmatprep.subr.bf16.mxu0 %v10842_v0 }
0x288e   :  { %v6839_v36 = vrot.slane %v6825_v35, %v10948_v21 }
0x2890   :  { %v6840_v18 = vcombine.low %v6832_v51, %v6839_v36 }
0x2892   :  { %10282 = vmatmul.mubr.msk.f32.vlgmr.msra.gmra.mrb[58].mxu1 %vm301_vm10, %v6840_v18 }
0x2893   :  { %10303 = vmatprep.mubr.msk.f32.mxu1 %vm10844_vm0, %v10845_v1  ;;  %10629 = vmatpush3.bf16.msra.mxu1 %v10628_v17 }
0x2894   :  { %10630 = vmatprep.subr.bf16.mxu1 %v10842_v0 }
0x2965   :  { %v6909_v40 = vpop.f32.mrb[58].mxu1 }
0x2966   :  { %v6910_v20 = vadd.f32 %v9439_v19, %v6909_v40  ;;  %v10283_v22 = vpop.f32.mrb[59].mxu1  ;;  %v9455_v19 = vld [vmem:[%s11046_s24 + $0x48] sm:$0xff] }
0x2967   :  { %v10634_v40 = vpack.c.bf16 %v9455_v19, %v9454_v33  ;;  %v9450_v22 = vld [vmem:[%s11041_s19 + $0x58] sm:$0xff] }
0x2968   :  { %v6914_v23 = vmul.f32 0.044715, %v6910_v20  ;;  %v6913_v28 = vmul.f32 0.5, %v6910_v20 }
0x296a   :  { %v6915_v24 = vmul.f32 %v6914_v23, %v6910_v20 }
0x296c   :  { %v6916_v25 = vmul.f32 %v6915_v24, %v6910_v20  ;;  %v9456_v24 = vld [vmem:[%s11046_s24 + $0x50] sm:$0xff] }
0x296e   :  { %v6917_v26 = vadd.f32 %v6916_v25, %v6910_v20  ;;  %v9449_v20 = vld [vmem:[%s11041_s19 + $0x50] sm:$0xff]  ;;  %v9457_v25 = vld [vmem:[%s11046_s24 + $0x58] sm:$0xff] }
0x296f   :  { %v10631_v23 = vpack.c.bf16 %v9450_v22, %v9449_v20  ;;  %v9466_v20 = vld [vmem:[%s11136_s27 + $0x2] ss:$0 sm:$0xff] }
0x2970   :  { %v6918_v49 = vmul.f32 0.7978846, %v6917_v26  ;;  %v10637_v26 = vpack.c.bf16 %v9457_v25, %v9456_v24 }
0x2971   :  { %10632 = vmatpush3.bf16.msra.mxu1 %v10631_v23 }
0x2972   :  { %10810 = vtanh.f32 %v6918_v49  ;;  %10639 = vmatprep.subr.bf16.mxu1 %v10842_v0 }
0x297c   :  { %v10811_v27 = vpop.eup %10810 }
0x297d   :  { %v6920_v29 = vadd.f32 1.0, %v10811_v27 }
0x297f   :  { %v6921_v34 = vmul.f32 %v6920_v29, %v6913_v28 }
0x2981   :  { %10293 = vmatmul.mubr.msk.f32.vlgmr.msra.gmra.mrb[56].mxu0 %vm301_vm10, %v6921_v34 }
0x2982   :  { %10314 = vmatprep.mubr.msk.f32.mxu0 %vm10844_vm0, %v10845_v1  ;;  %10635 = vmatpush3.bf16.msra.mxu0 %v10634_v40 }
0x2983   :  { %10636 = vmatprep.subr.bf16.mxu0 %v10842_v0 }
0x2986   :  { %10638 = vmatpush3.bf16.msra.mxu0 %v10637_v26 }
0x2987   :  { %10328 = vmatprep.subr.mxu0 %v10845_v1 }
0x2a54   :  { %v7002_v38 = vpop.f32.mrb[56].mxu0 }
0x2a55   :  { %v7003_v41 = vadd.f32 %v9441_v37, %v7002_v38  ;;  %v10294_v45 = vpop.f32.mrb[57].mxu0  ;;  %v9443_v38 = vld [vmem:[%s11350_s18] ss:$0 sm:$0xff] }
0x2a56   :  { %v7189_v45 = vrot.slane %v9443_v38, %v10948_v21 }
0x2a57   :  { %v7007_v43 = vcombine.high %v7003_v41, %v7003_v41  ;;  %v7014_v46 = vrot.slane %v7003_v41, %v10948_v21  ;;  %v9444_v41 = vld [vmem:[%s11355_s2] ss:$0 sm:$0xff] }
0x2a59   :  { %v7015_v47 = vcombine.high %v7014_v46, %v7014_v46  ;;  %v7022_v48 = vrot.slane %v7007_v43, %v10948_v21  ;;  %v7028_v52 = vadd.f32 %v7014_v46, %v6805_v10  ;;  %v7208_v43 = vrot.slane %v9444_v41, %v10948_v21 }
0x2a5b   :  { %v7023_v50 = vcombine.high %v7022_v48, %v7022_v48  ;;  %v7029_v53 = vadd.f32 %v7015_v47, %v6806_v4  ;;  %v7030_v39 = vadd.f32 %v7022_v48, %v6807_v11  ;;  %v7190_v47 = vcombine.high %v7189_v45, %v7189_v45 }
0x2a5d   :  { %v7038_v8 = vcombine.low %v7028_v52, %v7029_v53  ;;  %v7031_v55 = vadd.f32 %v7023_v50, %v6808_v12 }
0x2a5f   :  { %v7045_v54 = vrot.slane %v7038_v8, %v10948_v21  ;;  %v7046_v9 = vcombine.low %v7030_v39, %v7031_v55 }
0x2a61   :  { %v7056_v13 = vsel %vm660_vm12, %v7045_v54, 0.0  ;;  %v7053_v56 = vrot.slane %v7046_v9, %v10948_v21 }
0x2a62   :  { %7057 = vadd.xlane.f32.xlu0 %v7056_v13 }
0x2a63   :  { %v7059_v14 = vsel %vm660_vm12, %v7053_v56, 0.0 }
0x2a64   :  { %7060 = vadd.xlane.f32.xlu1 %v7059_v14 }
0x2aef   :  { %v7058_v57 = vpop.xlane.xlu0 %7057 }
0x2af0   :  { %v7062_v59 = vmul.f32 0.03125, %v7058_v57 }
0x2af1   :  { %v7061_v60 = vpop.xlane.xlu1 %7060 }
0x2af2   :  { %v7072_v61 = vrot.slane %v7062_v59, %v11009_v30  ;;  %v7079_v62 = vrot.slane %v7062_v59, %v11012_v31  ;;  %v7063_v63 = vmul.f32 0.03125, %v7061_v60 }
0x2af4   :  { %v7098_v2 = vsub.f32 %v7028_v52, %v7072_v61  ;;  %v7099_v3 = vsub.f32 %v7029_v53, %v7079_v62  ;;  %v7086_v5 = vrot.slane %v7063_v63, %v11009_v30  ;;  %v7093_v6 = vrot.slane %v7063_v63, %v11012_v31 }
0x2af5   :  { %v7209_v53 = vcombine.high %v7208_v43, %v7208_v43 }
0x2af6   :  { %v7100_v7 = vsub.f32 %v7030_v39, %v7086_v5  ;;  %v7101_v10 = vsub.f32 %v7031_v55, %v7093_v6  ;;  %v7102_v4 = vmul.f32 %v7098_v2, %v7098_v2  ;;  %v7103_v11 = vmul.f32 %v7099_v3, %v7099_v3  ;;  %v9461_v5 = vld [vmem:[%s11083_s10 + $0x40] sm:$0xff]  ;;  %v9462_v6 = vld [vmem:[%s11083_s10 + $0x48] sm:$0xff] }
0x2af8   :  { %v7110_v12 = vcombine.low %v7102_v4, %v7103_v11  ;;  %v7104_v15 = vmul.f32 %v7100_v7, %v7100_v7  ;;  %v7105_v35 = vmul.f32 %v7101_v10, %v7101_v10  ;;  %v10640_v4 = vpack.c.bf16 %v9462_v6, %v9461_v5  ;;  %v9494_v5 = vld [vmem:[%s11083_s10 + $0x68] sm:$0xff] }
0x2afa   :  { %v7117_v51 = vrot.slane %v7110_v12, %v10948_v21  ;;  %v7118_v36 = vcombine.low %v7104_v15, %v7105_v35  ;;  %v9463_v12 = vld [vmem:[%s11083_s10 + $0x50] sm:$0xff]  ;;  %v9464_v15 = vld [vmem:[%s11083_s10 + $0x58] sm:$0xff] }
0x2afb   :  { %v10643_v35 = vpack.c.bf16 %v9464_v15, %v9463_v12  ;;  %v9476_v12 = vld [vmem:[%s11186_s4 + $0x20] sm:$0xff]  ;;  %v9477_v15 = vld [vmem:[%s11186_s4 + $0x28] sm:$0xff] }
0x2afc   :  { %v7128_v18 = vsel %vm660_vm12, %v7117_v51, 0.0  ;;  %v7125_v44 = vrot.slane %v7118_v36, %v10948_v21  ;;  %v9452_v51 = vld [vmem:[%s11124_s14 + $0x2] ss:$0 sm:$0xff] }
0x2afd   :  { %7129 = vadd.xlane.f32.xlu0 %v7128_v18  ;;  %v9459_v36 = vld [vmem:[%s11129_s20 + $0x2] ss:$0 sm:$0xff] }
0x2afe   :  { %v7131_v42 = vsel %vm660_vm12, %v7125_v44, 0.0 }
0x2aff   :  { %7132 = vadd.xlane.f32.xlu1 %v7131_v42 }
0x2b8a   :  { %v7130_v49 = vpop.xlane.xlu0 %7129 }
0x2b8b   :  { %v7134_v27 = vmul.f32 0.03125, %v7130_v49 }
0x2b8c   :  { %v7133_v28 = vpop.xlane.xlu1 %7132 }
0x2b8d   :  { %v7136_v29 = vadd.f32 1e-05, %v7134_v27  ;;  %v7135_v34 = vmul.f32 0.03125, %v7133_v28 }
0x2b8f   :  { %10812 = vrsqrt.f32 %v7136_v29  ;;  %v7137_v37 = vadd.f32 1e-05, %v7135_v34 }
0x2b91   :  { %10814 = vrsqrt.f32 %v7137_v37 }
0x2b99   :  { %v10813_v46 = vpop.eup %10812 }
0x2b9a   :  { %v7148_v48 = vrot.slane %v10813_v46, %v11009_v30  ;;  %v7155_v50 = vrot.slane %v10813_v46, %v11012_v31 }
0x2b9b   :  { %v10815_v52 = vpop.eup %10814 }
0x2b9c   :  { %v7174_v8 = vmul.f32 %v7148_v48, %v7098_v2  ;;  %v7175_v39 = vmul.f32 %v7155_v50, %v7099_v3  ;;  %v7162_v55 = vrot.slane %v10815_v52, %v11009_v30  ;;  %v7169_v54 = vrot.slane %v10815_v52, %v11012_v31 }
0x2b9e   :  { %v7193_v9 = vmul.f32 %v7189_v45, %v7174_v8  ;;  %v7194_v13 = vmul.f32 %v7190_v47, %v7175_v39  ;;  %v7176_v56 = vmul.f32 %v7162_v55, %v7100_v7  ;;  %v7177_v14 = vmul.f32 %v7169_v54, %v7101_v10  ;;  %v9479_v39 = vld [vmem:[%s11041_s19 + $0x60] sm:$0xff]  ;;  %v9480_v55 = vld [vmem:[%s11041_s19 + $0x68] sm:$0xff] }
0x2ba0   :  { %v11867_v57 = vadd.f32 %v7208_v43, %v7193_v9  ;;  %v11869_v59 = vadd.f32 %v7209_v53, %v7194_v13  ;;  %v7195_v60 = vmul.f32 %v7189_v45, %v7176_v56  ;;  %v7196_v61 = vmul.f32 %v7190_v47, %v7177_v14 }
0x2ba1   :  { %v10649_v56 = vpack.c.bf16 %v9480_v55, %v9479_v39 }
0x2ba2   :  { %v7239_v62 = vcombine.low %v11867_v57, %v11869_v59  ;;  %v11873_v63 = vadd.f32 %v7208_v43, %v7195_v60  ;;  %v11875_v2 = vadd.f32 %v7209_v53, %v7196_v61  ;;  %v9481_v60 = vld [vmem:[%s11041_s19 + $0x70] sm:$0xff]  ;;  %v9482_v61 = vld [vmem:[%s11041_s19 + $0x78] sm:$0xff] }
0x2ba4   :  { %v7240_v3 = vcombine.low %v11873_v63, %v11875_v2  ;;  %v7247_v7 = vrot.slane %v7239_v62, %v10948_v21  ;;  %v10652_v62 = vpack.c.bf16 %v9482_v61, %v9481_v60 }
0x2ba6   :  { %v7254_v10 = vrot.slane %v7240_v3, %v10948_v21  ;;  %v9493_v3 = vld [vmem:[%s11083_s10 + $0x60] sm:$0xff] }
0x2ba7   :  { %v10661_v6 = vpack.c.bf16 %v9494_v5, %v9493_v3 }
0x2ba8   :  { %v11883_v11 = vcombine.low %v7247_v7, %v7254_v10  ;;  %v9495_v7 = vld [vmem:[%s11083_s10 + $0x70] sm:$0xff]  ;;  %v9496_v10 = vld [vmem:[%s11083_s10 + $0x78] sm:$0xff] }
0x2baa   :  { %10304 = vmatmul.mubr.msk.f32.vlgmr.msra.gmra.mrb[60].mxu1 %vm301_vm10, %v11883_v11  ;;  %10315 = vmatmul.mubr.msk.f32.vlgmr.msra.gmra.mrb[58].mxu0 %vm301_vm10, %v11883_v11 }
0x2bab   :  { %10641 = vmatpush3.bf16.msra.mxu1 %v10640_v4  ;;  %10325 = vmatprep.mubr.msk.f32.mxu1 %vm10844_vm0, %v10845_v1  ;;  %v10664_v4 = vpack.c.bf16 %v9496_v10, %v9495_v7  ;;  %v9508_v10 = vld [vmem:[%s11186_s4 + $0x30] sm:$0xff] }
0x2bac   :  { %10642 = vmatprep.subr.bf16.mxu1 %v10842_v0  ;;  %10330 = vmatprep.mubr.msk.f32.mxu0 %vm10844_vm0, %v10845_v1 }
0x2baf   :  { %10644 = vmatpush3.bf16.msra.mxu1 %v10643_v35  ;;  %v10646_v35 = vpack.c.bf16 %v9477_v15, %v9476_v12 }
0x2bb0   :  { %10333 = vmatprep.subr.mxu1 %v10845_v1 }
0x2bb2   :  { %10326 = vmatmul.mubr.msk.f32.vlgmr.msra.gmra.mrb[62].mxu1 %vm301_vm10, %v11883_v11 }
0x2bb3   :  { %10335 = vmatprep.mubr.msk.f32.mxu1 %vm10844_vm0, %v10845_v1 }
0x2c7d   :  { %v7324_v18 = vpop.f32.mrb[60].mxu1  ;;  %v7406_v44 = vpop.f32.mrb[58].mxu0 }
0x2c7e   :  { %v7325_v42 = vadd.f32 %v9452_v51, %v7324_v18  ;;  %v7407_v32 = vadd.f32 %v9459_v36, %v7406_v44  ;;  %v10305_v16 = vpop.f32.mrb[61].mxu1  ;;  %v10316_v17 = vpop.f32.mrb[59].mxu0  ;;  %v9486_v51 = vld [vmem:[%s11046_s24 + $0x60] sm:$0xff]  ;;  %v9487_v36 = vld [vmem:[%s11046_s24 + $0x68] sm:$0xff] }
0x2c80   :  { %v7328_v33 = vmul.f32 0.25, %v7325_v42  ;;  %v7494_v19 = vcombine.high %v7407_v32, %v7407_v32  ;;  %10329 = vmatpush3.xpose.msk.msra.mxu0 %vm1103_vm13, %v7407_v32  ;;  %v10655_v32 = vpack.c.bf16 %v9487_v36, %v9486_v51 }
0x2c81   :  { %10338 = vmatprep.subr.mxu0 %v10845_v1 }
0x2c82   :  { %v7492_v40 = vcombine.high %v7328_v33, %v7328_v33  ;;  %10334 = vmatpush3.xpose.msk.msra.mxu1 %vm1103_vm13, %v7494_v19  ;;  %v9489_v19 = vld [vmem:[%s11046_s24 + $0x78] sm:$0xff] }
0x2c83   :  { %10331 = vmatmul.mubr.msk.f32.vlgmr.msra.gmra.mrb[60].mxu0 %vm1103_vm13, %v7328_v33  ;;  %10343 = vmatprep.subr.mxu1 %v10845_v1  ;;  %v9488_v33 = vld [vmem:[%s11046_s24 + $0x70] sm:$0xff] }
0x2c84   :  { %10340 = vmatprep.mubr.msk.f32.mxu0 %vm10844_vm0, %v10845_v1 }
0x2c85   :  { %v7487_v22 = vpop.f32.mrb[62].mxu1  ;;  %10336 = vmatmul.mubr.msk.f32.vlgmr.msra.gmra.mrb[64].mxu1 %vm1103_vm13, %v7492_v40  ;;  %v10658_v40 = vpack.c.bf16 %v9489_v19, %v9488_v33 }
0x2c86   :  { %v7488_v23 = vadd.f32 %v9466_v20, %v7487_v22  ;;  %v10327_v24 = vpop.f32.mrb[63].mxu1  ;;  %10345 = vmatprep.mubr.msk.f32.mxu1 %vm10844_vm0, %v10845_v1 }
0x2c88   :  { %v7496_v25 = vcombine.high %v7488_v23, %v7488_v23  ;;  %10339 = vmatpush3.msk.msra.mxu0 %vm210_vm4, %v7488_v23  ;;  %v9498_v23 = vld [vmem:[%s11136_s27 + $0x3] ss:$0 sm:$0xff] }
0x2c89   :  { %10645 = vmatprep.subr.bf16.mxu0 %v10842_v0 }
0x2c8a   :  { %10344 = vmatpush3.msk.msra.mxu1 %vm210_vm4, %v7496_v25 }
0x2c8b   :  { %10648 = vmatprep.subr.bf16.mxu1 %v10842_v0 }
0x2d56   :  { %v7567_v26 = vpop.f32.mrb[60].mxu0 }
0x2d57   :  { %v10332_v49 = vpop.f32.mrb[61].mxu0  ;;  %v7645_v27 = vsel %vm1252_vm14, %v7567_v26, -inf }
0x2d58   :  { %7646 = vmax.xlane.f32.xlu0 %v7645_v27  ;;  %v7641_v28 = vpop.f32.mrb[64].mxu1  ;;  %v9484_v49 = vld [vmem:[%s11124_s14 + $0x3] ss:$0 sm:$0xff] }
0x2d59   :  { %v10337_v29 = vpop.f32.mrb[65].mxu1  ;;  %v7648_v34 = vsel %vm1252_vm14, %v7641_v28, -inf  ;;  %v9491_v27 = vld [vmem:[%s11129_s20 + $0x3] ss:$0 sm:$0xff] }
0x2d5a   :  { %7649 = vmax.xlane.f32.xlu1 %v7648_v34 }
0x2de5   :  { %v7647_v37 = vpop.xlane.xlu0 %7646 }
0x2de6   :  { %v7651_v38 = vsub.f32 %v7567_v26, %v7647_v37 }
0x2de7   :  { %v7650_v41 = vpop.xlane.xlu1 %7649 }
0x2de8   :  { %v7653_v45 = vmul.f32 1.442695, %v7651_v38  ;;  %v7652_v43 = vsub.f32 %v7641_v28, %v7650_v41 }
0x2dea   :  { %10816 = vpow2.f32 %v7653_v45  ;;  %v7655_v46 = vmul.f32 1.442695, %v7652_v43 }
0x2dec   :  { %10818 = vpow2.f32 %v7655_v46 }
0x2df4   :  { %v10817_v47 = vpop.eup %10816 }
0x2df5   :  { %v7657_v48 = vsel %vm1252_vm14, %v10817_v47, 0.0 }
0x2df6   :  { %v10819_v50 = vpop.eup %10818  ;;  %7658 = vadd.xlane.f32.xlu0 %v7657_v48 }
0x2df7   :  { %v7660_v52 = vsel %vm1252_vm14, %v10819_v50, 0.0 }
0x2df8   :  { %7661 = vadd.xlane.f32.xlu1 %v7660_v52 }
0x2e83   :  { %v7659_v53 = vpop.xlane.xlu0 %7658 }
0x2e84   :  { %10820 = vrcp.f32 %v7659_v53 }
0x2e85   :  { %v7662_v8 = vpop.xlane.xlu1 %7661 }
0x2e86   :  { %10822 = vrcp.f32 %v7662_v8 }
0x2e8e   :  { %v10821_v54 = vpop.eup %10820 }
0x2e8f   :  { %v7665_v9 = vmul.f32 %v10821_v54, %v10817_v47 }
0x2e90   :  { %v10823_v13 = vpop.eup %10822 }
0x2e91   :  { %v7666_v14 = vmul.f32 %v10823_v13, %v10819_v50  ;;  %10341 = vmatmul.mubr.msk.f32.vlgmr.msra.gmra.mrb[62].mxu0 %vm1275_vm15, %v7665_v9 }
0x2e92   :  { %10352 = vmatprep.mubr.msk.f32.mxu0 %vm10844_vm0, %v10845_v1  ;;  %10647 = vmatpush3.bf16.msra.mxu0 %v10646_v35 }
0x2e93   :  { %10346 = vmatmul.mubr.msk.f32.vlgmr.msra.gmra.mrb[66].mxu1 %vm1275_vm15, %v7666_v14  ;;  %10654 = vmatprep.subr.bf16.mxu0 %v10842_v0 }
0x2e94   :  { %10650 = vmatpush3.bf16.msra.mxu1 %v10649_v56  ;;  %10363 = vmatprep.mubr.msk.f32.mxu1 %vm10844_vm0, %v10845_v1 }
0x2e95   :  { %10651 = vmatprep.subr.bf16.mxu1 %v10842_v0 }
0x2e98   :  { %10653 = vmatpush3.bf16.msra.mxu1 %v10652_v62 }
0x2e99   :  { %10660 = vmatprep.subr.bf16.mxu1 %v10842_v0 }
0x2e9b   :  { %10364 = vmatmul.mubr.msk.f32.vlgmr.msra.gmra.mrb[68].mxu1 %vm301_vm10, %v11883_v11 }
0x2e9c   :  { %10662 = vmatpush3.bf16.msra.mxu1 %v10661_v6  ;;  %10385 = vmatprep.mubr.msk.f32.mxu1 %vm10844_vm0, %v10845_v1 }
0x2e9d   :  { %10663 = vmatprep.subr.bf16.mxu1 %v10842_v0 }
0x2ea0   :  { %10665 = vmatpush3.bf16.msra.mxu1 %v10664_v4  ;;  %v9509_v4 = vld [vmem:[%s11186_s4 + $0x38] sm:$0xff] }
0x2ea1   :  { %10398 = vmatprep.subr.mxu1 %v10845_v1  ;;  %v10667_v12 = vpack.c.bf16 %v9509_v4, %v9508_v10 }
0x2ea3   :  { %10386 = vmatmul.mubr.msk.f32.vlgmr.msra.gmra.mrb[70].mxu1 %vm301_vm10, %v11883_v11 }
0x2ea4   :  { %10400 = vmatprep.mubr.msk.f32.mxu1 %vm10844_vm0, %v10845_v1 }
0x2f64   :  { %v7738_v18 = vpop.f32.mrb[62].mxu0 }
0x2f65   :  { %v10342_v44 = vpop.f32.mrb[63].mxu0 }
0x2f66   :  { %v7813_v42 = vpop.f32.mrb[66].mxu1  ;;  %v9446_v44 = vld [vmem:[%s11240_s11 + $0x1] ss:$0 sm:$0xff] }
0x2f67   :  { %v7821_v16 = vcombine.low %v7738_v18, %v7813_v42  ;;  %v10347_v17 = vpop.f32.mrb[67].mxu1 }
0x2f69   :  { %10353 = vmatmul.mubr.msk.f32.vlgmr.msra.gmra.mrb[64].mxu0 %vm1103_vm13, %v7821_v16 }
0x2f6a   :  { %10656 = vmatpush3.bf16.msra.mxu0 %v10655_v32  ;;  %10374 = vmatprep.mubr.msk.f32.mxu0 %vm10844_vm0, %v10845_v1 }
0x2f6b   :  { %10657 = vmatprep.subr.bf16.mxu0 %v10842_v0 }
0x2f6e   :  { %v7972_v20 = vpop.f32.mrb[68].mxu1  ;;  %10659 = vmatpush3.bf16.msra.mxu0 %v10658_v40 }
0x2f6f   :  { %v10365_v22 = vpop.f32.mrb[69].mxu1  ;;  %10388 = vmatprep.subr.mxu0 %v10845_v1  ;;  %v7973_v28 = vadd.f32 %v9484_v49, %v7972_v20 }
0x2f71   :  { %10375 = vmatmul.mubr.msk.f32.vlgmr.msra.gmra.mrb[66].mxu0 %vm301_vm10, %v11883_v11  ;;  %v7976_v11 = vmul.f32 0.25, %v7973_v28 }
0x2f72   :  { %10390 = vmatprep.mubr.msk.f32.mxu0 %vm10844_vm0, %v10845_v1 }
0x2f73   :  { %v8140_v41 = vcombine.high %v7976_v11, %v7976_v11 }
0x2f76   :  { %v8135_v24 = vpop.f32.mrb[70].mxu1 }
0x2f77   :  { %v8136_v25 = vadd.f32 %v9498_v23, %v8135_v24  ;;  %v10387_v26 = vpop.f32.mrb[71].mxu1 }
0x2f79   :  { %10399 = vmatpush3.msk.msra.mxu1 %vm210_vm4, %v8136_v25  ;;  %v8144_v45 = vcombine.high %v8136_v25, %v8136_v25 }
0x2f7a   :  { %10669 = vmatprep.subr.bf16.mxu1 %v10842_v0 }
0x3044   :  { %v8054_v29 = vpop.f32.mrb[66].mxu0 }
0x3045   :  { %v8055_v34 = vadd.f32 %v9491_v27, %v8054_v29  ;;  %v10376_v37 = vpop.f32.mrb[67].mxu0 }
0x3047   :  { %10389 = vmatpush3.xpose.msk.msra.mxu0 %vm1103_vm13, %v8055_v34  ;;  %v8142_v38 = vcombine.high %v8055_v34, %v8055_v34 }
0x3048   :  { %10393 = vmatprep.subr.mxu0 %v10845_v1 }
0x304a   :  { %10391 = vmatmul.mubr.msk.f32.vlgmr.msra.gmra.mrb[68].mxu0 %vm1103_vm13, %v7976_v11 }
0x304b   :  { %10394 = vmatpush3.xpose.msk.msra.mxu0 %vm1103_vm13, %v8142_v38  ;;  %10395 = vmatprep.mubr.msk.f32.mxu0 %vm10844_vm0, %v10845_v1 }
0x304c   :  { %10403 = vmatprep.subr.mxu0 %v10845_v1 }
0x304e   :  { %10396 = vmatmul.mubr.msk.f32.vlgmr.msra.gmra.mrb[70].mxu0 %vm1103_vm13, %v8140_v41 }
0x304f   :  { %10404 = vmatpush3.msk.msra.mxu0 %vm210_vm4, %v8144_v45  ;;  %10405 = vmatprep.mubr.msk.f32.mxu0 %vm10844_vm0, %v10845_v1 }
0x3050   :  { %10666 = vmatprep.subr.bf16.mxu0 %v10842_v0 }
0x311d   :  { %v8215_v43 = vpop.f32.mrb[68].mxu0 }
0x311e   :  { %v10392_v46 = vpop.f32.mrb[69].mxu0  ;;  %v8293_v47 = vsel %vm1252_vm14, %v8215_v43, -inf }
0x311f   :  { %8294 = vmax.xlane.f32.xlu0 %v8293_v47 }
0x3121   :  { %v8289_v48 = vpop.f32.mrb[70].mxu0 }
0x3122   :  { %v10397_v50 = vpop.f32.mrb[71].mxu0  ;;  %v8296_v52 = vsel %vm1252_vm14, %v8289_v48, -inf }
0x3123   :  { %8297 = vmax.xlane.f32.xlu1 %v8296_v52 }
0x31ac   :  { %v8295_v53 = vpop.xlane.xlu0 %8294 }
0x31ad   :  { %v8299_v8 = vsub.f32 %v8215_v43, %v8295_v53 }
0x31af   :  { %v8301_v39 = vmul.f32 1.442695, %v8299_v8 }
0x31b0   :  { %v8298_v55 = vpop.xlane.xlu1 %8297 }
0x31b1   :  { %10824 = vpow2.f32 %v8301_v39  ;;  %v8300_v54 = vsub.f32 %v8289_v48, %v8298_v55 }
0x31b3   :  { %v8303_v9 = vmul.f32 1.442695, %v8300_v54 }
0x31b5   :  { %10826 = vpow2.f32 %v8303_v9 }
0x31bb   :  { %v10825_v13 = vpop.eup %10824 }
0x31bc   :  { %v8305_v56 = vsel %vm1252_vm14, %v10825_v13, 0.0 }
0x31bd   :  { %8306 = vadd.xlane.f32.xlu0 %v8305_v56  ;;  %v9516_v56 = vld [vmem:[%s11264_s17 + $0x28] sm:$0xff] }
0x31bf   :  { %v10827_v14 = vpop.eup %10826 }
0x31c0   :  { %v8308_v60 = vsel %vm1252_vm14, %v10827_v14, 0.0 }
0x31c1   :  { %8309 = vadd.xlane.f32.xlu1 %v8308_v60 }
0x324a   :  { %v8307_v61 = vpop.xlane.xlu0 %8306 }
0x324b   :  { %10828 = vrcp.f32 %v8307_v61  ;;  %v9518_v61 = vld [vmem:[%s11264_s17 + $0x38] sm:$0xff] }
0x324e   :  { %v8310_v62 = vpop.xlane.xlu1 %8309 }
0x324f   :  { %10830 = vrcp.f32 %v8310_v62 }
0x3255   :  { %v10829_v3 = vpop.eup %10828 }
0x3256   :  { %v8313_v5 = vmul.f32 %v10829_v3, %v10825_v13  ;;  %v9515_v13 = vld [vmem:[%s11264_s17 + $0x20] sm:$0xff] }
0x3257   :  { %v10670_v60 = vpack.c.bf16 %v9516_v56, %v9515_v13  ;;  %v9527_v56 = vld [vmem:[%s11318_s8 + $0x1] ss:$0 sm:$0xff] }
0x3258   :  { %10401 = vmatmul.mubr.msk.f32.vlgmr.msra.gmra.mrb[72].mxu1 %vm1275_vm15, %v8313_v5 }
0x3259   :  { %v10831_v6 = vpop.eup %10830  ;;  %10423 = vmatprep.mubr.msk.f32.mxu1 %vm10844_vm0, %v10845_v1  ;;  %10671 = vmatpush3.bf16.msra.mxu1 %v10670_v60 }
0x325a   :  { %v8314_v7 = vmul.f32 %v10831_v6, %v10827_v14  ;;  %v9517_v14 = vld [vmem:[%s11264_s17 + $0x30] sm:$0xff]  ;;  %10672 = vmatprep.subr.bf16.mxu1 %v10842_v0 }
0x325b   :  { %v10673_v62 = vpack.c.bf16 %v9518_v61, %v9517_v14 }
0x325c   :  { %10406 = vmatmul.mubr.msk.f32.vlgmr.msra.gmra.mrb[72].mxu0 %vm1275_vm15, %v8314_v7 }
0x325d   :  { %10412 = vmatprep.mubr.msk.f32.mxu0 %vm10844_vm0, %v10845_v1  ;;  %10668 = vmatpush3.bf16.msra.mxu0 %v10667_v12  ;;  %v9513_v12 = vld [vmem:[%s11275_s26 + $0x1] ss:$0 sm:$0xff] }
0x325e   :  { %10675 = vmatprep.subr.bf16.mxu0 %v10842_v0  ;;  %10674 = vmatpush3.bf16.msra.mxu1 %v10673_v62 }
0x332b   :  { %v8386_v15 = vpop.f32.mrb[72].mxu1 }
0x332c   :  { %v10402_v35 = vpop.f32.mrb[73].mxu1 }
0x332d   :  { %v8726_v35 = vrot.slane %v9513_v12, %v10948_v21 }
0x332f   :  { %v8461_v51 = vpop.f32.mrb[72].mxu0 }
0x3330   :  { %v8469_v36 = vcombine.low %v8386_v15, %v8461_v51  ;;  %v10407_v18 = vpop.f32.mrb[73].mxu0  ;;  %v9514_v15 = vld [vmem:[%s11280_s6 + $0x1] ss:$0 sm:$0xff] }
0x3331   :  { %v8745_v51 = vrot.slane %v9514_v15, %v10948_v21  ;;  %v8727_v18 = vcombine.high %v8726_v35, %v8726_v35 }
0x3332   :  { %10413 = vmatmul.mubr.msk.f32.vlgmr.msra.gmra.mrb[64].mxu0 %vm1103_vm13, %v8469_v36 }
0x3333   :  { %10434 = vmatprep.mubr.msk.f32.mxu0 %vm10844_vm0, %v10845_v1 }
0x3405   :  { %v8538_v42 = vpop.f32.mrb[64].mxu0 }
0x3406   :  { %v10684_v32 = vadd.f32 %v9446_v44, %v8538_v42  ;;  %v10414_v16 = vpop.f32.mrb[65].mxu0 }
0x3407   :  { %v8746_v16 = vcombine.high %v8745_v51, %v8745_v51 }
0x3408   :  { %v8544_v17 = vcombine.high %v10684_v32, %v10684_v32  ;;  %v8551_v33 = vrot.slane %v10684_v32, %v10948_v21 }
0x340a   :  { %v8552_v19 = vcombine.high %v8551_v33, %v8551_v33  ;;  %v8559_v40 = vrot.slane %v8544_v17, %v10948_v21  ;;  %v8565_v22 = vadd.f32 %v8551_v33, %v11867_v57 }
0x340c   :  { %v8560_v20 = vcombine.high %v8559_v40, %v8559_v40  ;;  %v8566_v23 = vadd.f32 %v8552_v19, %v11869_v59  ;;  %v8567_v25 = vadd.f32 %v8559_v40, %v11873_v63 }
0x340e   :  { %v8575_v24 = vcombine.low %v8565_v22, %v8566_v23  ;;  %v8568_v1 = vadd.f32 %v8560_v20, %v11875_v2 }
0x3410   :  { %v8582_v26 = vrot.slane %v8575_v24, %v10948_v21  ;;  %v8583_v49 = vcombine.low %v8567_v25, %v8568_v1 }
0x3412   :  { %v8593_v27 = vsel %vm660_vm12, %v8582_v26, 0.0  ;;  %v8590_v28 = vrot.slane %v8583_v49, %v10948_v21 }
0x3413   :  { %8594 = vadd.xlane.f32.xlu0 %v8593_v27 }
0x3414   :  { %v8596_v29 = vsel %vm660_vm12, %v8590_v28, 0.0 }
0x3415   :  { %8597 = vadd.xlane.f32.xlu1 %v8596_v29 }
0x34a0   :  { %v8595_v34 = vpop.xlane.xlu0 %8594 }
0x34a1   :  { %v8599_v57 = vmul.f32 0.03125, %v8595_v34 }
0x34a2   :  { %v8598_v37 = vpop.xlane.xlu1 %8597 }
0x34a3   :  { %v8609_v59 = vrot.slane %v8599_v57, %v11009_v30  ;;  %v8616_v63 = vrot.slane %v8599_v57, %v11012_v31  ;;  %v8600_v11 = vmul.f32 0.03125, %v8598_v37 }
0x34a5   :  { %v8635_v2 = vsub.f32 %v8565_v22, %v8609_v59  ;;  %v8636_v38 = vsub.f32 %v8566_v23, %v8616_v63  ;;  %v8623_v41 = vrot.slane %v8600_v11, %v11009_v30  ;;  %v8630_v45 = vrot.slane %v8600_v11, %v11012_v31  ;;  %v9522_v63 = vld [vmem:[%s11298_s13 + $0x20] sm:$0xff]  ;;  %v9523_v11 = vld [vmem:[%s11298_s13 + $0x28] sm:$0xff] }
0x34a7   :  { %v8637_v43 = vsub.f32 %v8567_v25, %v8623_v41  ;;  %v8638_v46 = vsub.f32 %v8568_v1, %v8630_v45  ;;  %v8639_v47 = vmul.f32 %v8635_v2, %v8635_v2  ;;  %v8640_v48 = vmul.f32 %v8636_v38, %v8636_v38  ;;  %v9525_v41 = vld [vmem:[%s11298_s13 + $0x38] sm:$0xff] }
0x34a9   :  { %v8647_v50 = vcombine.low %v8639_v47, %v8640_v48  ;;  %v8641_v52 = vmul.f32 %v8637_v43, %v8637_v43  ;;  %v8642_v53 = vmul.f32 %v8638_v46, %v8638_v46 }
0x34ab   :  { %v8654_v8 = vrot.slane %v8647_v50, %v10948_v21  ;;  %v8655_v39 = vcombine.low %v8641_v52, %v8642_v53 }
0x34ad   :  { %v8665_v55 = vsel %vm660_vm12, %v8654_v8, 0.0  ;;  %v8662_v54 = vrot.slane %v8655_v39, %v10948_v21 }
0x34ae   :  { %8666 = vadd.xlane.f32.xlu0 %v8665_v55 }
0x34af   :  { %v8668_v9 = vsel %vm660_vm12, %v8662_v54, 0.0 }
0x34b0   :  { %8669 = vadd.xlane.f32.xlu1 %v8668_v9 }
0x353b   :  { %v8667_v3 = vpop.xlane.xlu0 %8666 }
0x353c   :  { %v8671_v5 = vmul.f32 0.03125, %v8667_v3 }
0x353d   :  { %v8670_v6 = vpop.xlane.xlu1 %8669 }
0x353e   :  { %v8673_v7 = vadd.f32 1e-05, %v8671_v5  ;;  %v8672_v10 = vmul.f32 0.03125, %v8670_v6 }
0x3540   :  { %10832 = vrsqrt.f32 %v8673_v7  ;;  %v8674_v4 = vadd.f32 1e-05, %v8672_v10 }
0x3542   :  { %10834 = vrsqrt.f32 %v8674_v4 }
0x354a   :  { %v10833_v36 = vpop.eup %10832 }
0x354b   :  { %v8685_v44 = vrot.slane %v10833_v36, %v11009_v30  ;;  %v8692_v42 = vrot.slane %v10833_v36, %v11012_v31 }
0x354c   :  { %v10835_v32 = vpop.eup %10834 }
0x354d   :  { %v8711_v17 = vmul.f32 %v8685_v44, %v8635_v2  ;;  %v8712_v33 = vmul.f32 %v8692_v42, %v8636_v38  ;;  %v8699_v19 = vrot.slane %v10835_v32, %v11009_v30  ;;  %v8706_v40 = vrot.slane %v10835_v32, %v11012_v31  ;;  %v9524_v2 = vld [vmem:[%s11298_s13 + $0x30] sm:$0xff] }
0x354e   :  { %v10676_v38 = vpack.c.bf16 %v9523_v11, %v9522_v63  ;;  %v10679_v45 = vpack.c.bf16 %v9525_v41, %v9524_v2 }
0x354f   :  { %v8730_v20 = vmul.f32 %v8726_v35, %v8711_v17  ;;  %v8731_v22 = vmul.f32 %v8727_v18, %v8712_v33  ;;  %v8713_v23 = vmul.f32 %v8699_v19, %v8637_v43  ;;  %v8714_v24 = vmul.f32 %v8706_v40, %v8638_v46  ;;  %v9520_v43 = vld [vmem:[%s11309_s23 + $0x1] ss:$0 sm:$0xff] }
0x3550   :  { %10677 = vmatpush3.bf16.msra.mxu0 %v10676_v38 }
0x3551   :  { %v8732_v25 = vmul.f32 %v8726_v35, %v8713_v23  ;;  %v8733_v1 = vmul.f32 %v8727_v18, %v8714_v24  ;;  %v8749_v26 = vadd.f32 %v8745_v51, %v8730_v20  ;;  %v8750_v49 = vadd.f32 %v8746_v16, %v8731_v22  ;;  %10678 = vmatprep.subr.bf16.mxu0 %v10842_v0 }
0x3553   :  { %v8751_v27 = vadd.f32 %v8745_v51, %v8732_v25  ;;  %v8752_v28 = vadd.f32 %v8746_v16, %v8733_v1  ;;  %v8768_v29 = vcombine.low %v8749_v26, %v8750_v49 }
0x3554   :  { %10680 = vmatpush3.bf16.msra.mxu0 %v10679_v45 }
0x3555   :  { %v8769_v34 = vcombine.low %v8751_v27, %v8752_v28  ;;  %v8776_v57 = vrot.slane %v8768_v29, %v10948_v21 }
0x3557   :  { %v8783_v37 = vrot.slane %v8769_v34, %v10948_v21 }
0x3559   :  { %v8784_v59 = vcombine.low %v8776_v57, %v8783_v37 }
0x355b   :  { %10424 = vmatmul.mubr.msk.f32.vlgmr.msra.gmra.mrb[74].mxu1 %vm301_vm10, %v8784_v59 }
0x362e   :  { %v8853_v46 = vpop.f32.mrb[74].mxu1 }
0x362f   :  { %v8854_v47 = vadd.f32 %v9520_v43, %v8853_v46  ;;  %v10425_v48 = vpop.f32.mrb[75].mxu1  ;;  %v9531_v43 = vld [vmem:[%s11350_s18 + $0x1] ss:$0 sm:$0xff] }
0x3630   :  { %v9532_v46 = vld [vmem:[%s11355_s2 + $0x1] ss:$0 sm:$0xff] }
0x3631   :  { %v8858_v50 = vmul.f32 0.044715, %v8854_v47  ;;  %v8857_v54 = vmul.f32 0.5, %v8854_v47  ;;  %v9152_v48 = vrot.slane %v9532_v46, %v10948_v21 }
0x3633   :  { %v8859_v52 = vmul.f32 %v8858_v50, %v8854_v47 }
0x3635   :  { %v8860_v53 = vmul.f32 %v8859_v52, %v8854_v47 }
0x3637   :  { %v8861_v8 = vadd.f32 %v8860_v53, %v8854_v47  ;;  %v9133_v47 = vrot.slane %v9531_v43, %v10948_v21 }
0x3639   :  { %v8862_v39 = vmul.f32 0.7978846, %v8861_v8  ;;  %v9134_v52 = vcombine.high %v9133_v47, %v9133_v47 }
0x363b   :  { %10836 = vtanh.f32 %v8862_v39 }
0x3645   :  { %v10837_v55 = vpop.eup %10836 }
0x3646   :  { %v8864_v9 = vadd.f32 1.0, %v10837_v55  ;;  %v9153_v55 = vcombine.high %v9152_v48, %v9152_v48 }
0x3648   :  { %v8865_v13 = vmul.f32 %v8864_v9, %v8857_v54 }
0x364a   :  { %10435 = vmatmul.mubr.msk.f32.vlgmr.msra.gmra.mrb[74].mxu0 %vm301_vm10, %v8865_v13 }
0x371d   :  { %v8946_v0 = vpop.f32.mrb[74].mxu0 }
0x371e   :  { %v8947_v14 = vadd.f32 %v9527_v56, %v8946_v0  ;;  %v10436_v60 = vpop.f32.mrb[75].mxu0 }
0x3720   :  { %v8951_v61 = vcombine.high %v8947_v14, %v8947_v14  ;;  %v8958_v62 = vrot.slane %v8947_v14, %v10948_v21 }
0x3722   :  { %v8959_v3 = vcombine.high %v8958_v62, %v8958_v62  ;;  %v8966_v5 = vrot.slane %v8951_v61, %v10948_v21  ;;  %v8972_v7 = vadd.f32 %v8958_v62, %v8749_v26 }
0x3724   :  { %v8967_v6 = vcombine.high %v8966_v5, %v8966_v5  ;;  %v8973_v10 = vadd.f32 %v8959_v3, %v8750_v49  ;;  %v8974_v12 = vadd.f32 %v8966_v5, %v8751_v27 }
0x3726   :  { %v8982_v4 = vcombine.low %v8972_v7, %v8973_v10  ;;  %v8975_v15 = vadd.f32 %v8967_v6, %v8752_v28 }
0x3728   :  { %v8989_v35 = vrot.slane %v8982_v4, %v10948_v21  ;;  %v8990_v51 = vcombine.low %v8974_v12, %v8975_v15 }
0x372a   :  { %v9000_v36 = vsel %vm660_vm12, %v8989_v35, 0.0  ;;  %v8997_v18 = vrot.slane %v8990_v51, %v10948_v21 }
0x372b   :  { %9001 = vadd.xlane.f32.xlu0 %v9000_v36 }
0x372c   :  { %v9003_v44 = vsel %vm660_vm12, %v8997_v18, 0.0 }
0x372d   :  { %9004 = vadd.xlane.f32.xlu1 %v9003_v44 }
0x37b8   :  { %v9002_v42 = vpop.xlane.xlu0 %9001 }
0x37b9   :  { %v9006_v32 = vmul.f32 0.03125, %v9002_v42 }
0x37ba   :  { %v9005_v16 = vpop.xlane.xlu1 %9004 }
0x37bb   :  { %v9016_v17 = vrot.slane %v9006_v32, %v11009_v30  ;;  %v9023_v33 = vrot.slane %v9006_v32, %v11012_v31  ;;  %v9007_v19 = vmul.f32 0.03125, %v9005_v16 }
0x37bd   :  { %v9042_v40 = vsub.f32 %v8972_v7, %v9016_v17  ;;  %v9043_v20 = vsub.f32 %v8973_v10, %v9023_v33  ;;  %v9030_v22 = vrot.slane %v9007_v19, %v11009_v30  ;;  %v9037_v23 = vrot.slane %v9007_v19, %v11012_v31 }
0x37bf   :  { %v9044_v24 = vsub.f32 %v8974_v12, %v9030_v22  ;;  %v9045_v25 = vsub.f32 %v8975_v15, %v9037_v23  ;;  %v9046_v1 = vmul.f32 %v9042_v40, %v9042_v40  ;;  %v9047_v26 = vmul.f32 %v9043_v20, %v9043_v20 }
0x37c1   :  { %v9054_v49 = vcombine.low %v9046_v1, %v9047_v26  ;;  %v9048_v27 = vmul.f32 %v9044_v24, %v9044_v24  ;;  %v9049_v28 = vmul.f32 %v9045_v25, %v9045_v25 }
0x37c3   :  { %v9061_v29 = vrot.slane %v9054_v49, %v10948_v21  ;;  %v9062_v34 = vcombine.low %v9048_v27, %v9049_v28 }
0x37c5   :  { %v9072_v57 = vsel %vm660_vm12, %v9061_v29, 0.0  ;;  %v9069_v37 = vrot.slane %v9062_v34, %v10948_v21 }
0x37c6   :  { %9073 = vadd.xlane.f32.xlu0 %v9072_v57 }
0x37c7   :  { %v9075_v59 = vsel %vm660_vm12, %v9069_v37, 0.0 }
0x37c8   :  { %9076 = vadd.xlane.f32.xlu1 %v9075_v59 }
0x3853   :  { %v9074_v63 = vpop.xlane.xlu0 %9073 }
0x3854   :  { %v9078_v11 = vmul.f32 0.03125, %v9074_v63 }
0x3855   :  { %v9077_v2 = vpop.xlane.xlu1 %9076 }
0x3856   :  { %v9080_v38 = vadd.f32 1e-05, %v9078_v11  ;;  %v9079_v41 = vmul.f32 0.03125, %v9077_v2 }
0x3858   :  { %10838 = vrsqrt.f32 %v9080_v38  ;;  %v9081_v45 = vadd.f32 1e-05, %v9079_v41 }
0x385a   :  { %10840 = vrsqrt.f32 %v9081_v45 }
0x3862   :  { %v10839_v50 = vpop.eup %10838 }
0x3863   :  { %v9092_v53 = vrot.slane %v10839_v50, %v11009_v30  ;;  %v9099_v8 = vrot.slane %v10839_v50, %v11012_v31 }
0x3864   :  { %v10841_v39 = vpop.eup %10840 }
0x3865   :  { %v9118_v54 = vmul.f32 %v9092_v53, %v9042_v40  ;;  %v9119_v9 = vmul.f32 %v9099_v8, %v9043_v20  ;;  %v9106_v13 = vrot.slane %v10841_v39, %v11009_v30  ;;  %v9113_v56 = vrot.slane %v10841_v39, %v11012_v31 }
0x3867   :  { %v9137_v0 = vmul.f32 %v9133_v47, %v9118_v54  ;;  %v9138_v14 = vmul.f32 %v9134_v52, %v9119_v9  ;;  %v9120_v60 = vmul.f32 %v9106_v13, %v9044_v24  ;;  %v9121_v21 = vmul.f32 %v9113_v56, %v9045_v25 }
0x3869   :  { %v9156_v61 = vadd.f32 %v9152_v48, %v9137_v0  ;;  %v9157_v62 = vadd.f32 %v9153_v55, %v9138_v14  ;;  %v9139_v3 = vmul.f32 %v9133_v47, %v9120_v60  ;;  %v9140_v5 = vmul.f32 %v9134_v52, %v9121_v21 }
0x386b   :  { %v9167_v6 = vrot.slane %v9156_v61, %v10989_v58  ;;  %v9171_v7 = vrot.slane %v9157_v62, %v10989_v58  ;;  %v9158_v10 = vadd.f32 %v9152_v48, %v9139_v3  ;;  %v9159_v4 = vadd.f32 %v9153_v55, %v9140_v5 }
0x386d   :  { %v9180_v30 = vsel %vm4763_vm1, %v9171_v7, %v9167_v6  ;;  %v9175_v31 = vrot.slane %v9158_v10, %v10989_v58  ;;  %v9179_v12 = vrot.slane %v9159_v4, %v10989_v58 }
0x386e   :  { %9533 = vst.msk [vmem:[%s11584_s9 + $0x4] sm:$0x3] %vm4768_vm2, %v9180_v30 }
0x386f   :  { %v9181_v15 = vsel %vm4763_vm1, %v9179_v12, %v9175_v31 }
0x3870   :  { %9534 = vst.msk [vmem:[%s11584_s9 + $0x6] sm:$0x3] %vm4768_vm2, %v9181_v15 }

</bundles_post_ra>
